<compile_context>
chip_gen: v7x
topology: tpu7x:2x2x1
jax: 0.10.0
libtpu: 0.0.40
codegen_flags: <defaults>
</compile_context>

<pallas_src>
import jax
import jax.numpy as jnp
from jax import lax
from jax.experimental import pallas as pl
from jax.experimental.pallas import tpu as pltpu


def _pick_tile(dim, target, align):
    """Largest divisor of `dim` that is <= target and a multiple of `align`.
    Falls back to the full dim (which always satisfies the block rules)."""
    if dim <= target:
        return dim
    t = (target // align) * align
    while t >= align:
        if dim % t == 0:
            return t
        t -= align
    return dim


def _vmem_budget():
    """Generation-aware (vmem_limit_bytes, per-H-tile byte target).

    v7x has 64 MiB VMEM per TC -> keep the double-buffered H stream under
    ~32 MiB (8 MiB tile target, 48 MiB scoped limit).  v5e/v6e have 128 MiB
    -> 16 MiB tiles / 64 MiB limit."""
    try:
        cap = int(pltpu.get_tpu_info().vmem_capacity_bytes)
    except Exception:
        cap = 64 * 1024 * 1024          # conservative fallback (v7x-sized)
    if cap <= 64 * 1024 * 1024:
        return 48 * 1024 * 1024, 8 * 1024 * 1024
    return 64 * 1024 * 1024, 16 * 1024 * 1024


# ----------------------------------------------------------------------------
# Kernel 1: fused projector D(gen_im) + image-domain loss partials.
#
#   gen_lr_tile = x_bf16 @ H_bf16[:, tile]   (native bf16x bf16 -> f32 MXU,
#   K-tiled into an f32 VMEM accumulator; no in-kernel upcast of H so the
#   dominant HBM stream never gets an extra VMEM copy).  On the last K step
#   the per-batch loss partials rg=sum(ref*g), ex=sum(exp(-g)),
#   l2=sum((g-r)^2), l1=sum(|g-r|) are reduced for that N tile and written
#   out as a single packed (B, 4) store per tile — gen_im_lr never
#   round-trips to HBM.
# TODO(synk): the real CT projector uses a sparse CSC system matrix (H_csc);
#             here it is modeled as a deterministic dense matrix -> MXU matmul.
# TODO(synk): if accuracy allows, store H as int8 (v5e/v6e) or fp8-e4m3 (v7x)
#             with per-column scales applied in the epilogue for ~2x more BW.
# ----------------------------------------------------------------------------
def _proj_loss_kernel(x_ref, h_ref, ref_ref, out_ref, acc_ref):
    k = pl.program_id(1)

    @pl.when(k == 0)
    def _init():
        acc_ref[...] = jnp.zeros_like(acc_ref)

    # Native bf16 x bf16 MXU matmul, f32 accumulation (no astype on H).
    acc_ref[...] += jnp.dot(x_ref[...], h_ref[...],
                            preferred_element_type=jnp.float32)

    @pl.when(k == pl.num_programs(1) - 1)
    def _epilogue():
        g = acc_ref[...]                      # (B, tn) f32, full K reduction
        r = ref_ref[...]
        d = g - r
        part = jnp.concatenate(
            [jnp.sum(r * g, axis=1, keepdims=True),
             jnp.sum(jnp.exp(-g), axis=1, keepdims=True),
             jnp.sum(d * d, axis=1, keepdims=True),
             jnp.sum(jnp.abs(d), axis=1, keepdims=True)],
            axis=1)                           # (B, 4) packed -> one store
        out_ref[0] = part


def project_and_loss_partials(gen_im, ref_flat, h_bf16, mu_max,
                              tk_target=2048):
    B = gen_im.shape[0]
    K, N = h_bf16.shape
    # x is tiny (B x K); cast to bf16 in the wrapper so the MXU runs in its
    # native bf16 mode.  Accumulation stays f32 in VMEM scratch.
    x = (mu_max * gen_im.astype(jnp.float32)).reshape(B, K).astype(jnp.bfloat16)

    vmem_limit, h_tile_bytes = _vmem_budget()
    tk = _pick_tile(K, tk_target, 128)
    tn = _pick_tile(N, max(128, h_tile_bytes // (2 * tk)), 128)
    nt, kt = N // tn, K // tk

    out = pl.pallas_call(
        _proj_loss_kernel,
        out_shape=jax.ShapeDtypeStruct((nt, B, 4), jnp.float32),
        grid_spec=pltpu.PrefetchScalarGridSpec(
            num_scalar_prefetch=0,
            grid=(nt, kt),                    # N tiles outer (parallel), K inner
            in_specs=[pl.BlockSpec((B, tk), lambda j, k: (0, k)),
                      pl.BlockSpec((tk, tn), lambda j, k: (k, j)),
                      pl.BlockSpec((B, tn), lambda j, k: (0, j))],
            out_specs=pl.BlockSpec((1, B, 4), lambda j, k: (j, 0, 0)),
            scratch_shapes=[pltpu.VMEM((B, tn), jnp.float32)]),
        # NOTE(v7x): if xprof shows one idle TensorCore, switch the outer axis
        # to pltpu.CORE_PARALLEL; on v5e/v6e "parallel" is already fine.
        compiler_params=pltpu.CompilerParams(
            dimension_semantics=("parallel", "arbitrary"),
            vmem_limit_bytes=vmem_limit),
    )(x, h_bf16, ref_flat)

    # per-N-tile packed partials -> per-batch sums (tiny jnp reduction)
    part = out.sum(axis=0)                    # (B, 4)
    return part[:, 0], part[:, 1], part[:, 2], part[:, 3]


# ----------------------------------------------------------------------------
# GEOCROSS / EUCLIDEAN: ~0.5 MFLOP on a (B, 16, 512) latent — launch overhead
# of a dedicated pallas_call exceeds the compute (per perf review), so this is
# plain jnp using the *direct* ||x_i - x_j|| form of the PyTorch reference
# (no Gram-matrix cancellation).
# ----------------------------------------------------------------------------
def geocross_euclidean(latent):
    lat = latent.astype(jnp.float32).reshape(-1, 16, 512)
    X = lat[:, None, :, :]                    # (B, 1, 16, 512)
    Y = lat[:, :, None, :]                    # (B, 16, 1, 512)
    A2 = jnp.sum((X - Y) ** 2, axis=-1) + 1e-9     # (B, 16, 16)
    B2 = jnp.sum((X + Y) ** 2, axis=-1) + 1e-9
    D = 2.0 * jnp.arctan2(jnp.sqrt(A2), jnp.sqrt(B2))
    geo = jnp.sum(jnp.mean(D * D * 512.0, axis=(1, 2)) / 8.0)
    euc = jnp.sum(A2)
    return geo, euc


# ----------------------------------------------------------------------------
# NOISE_L2: a few KiB of input — plain jnp; a dedicated pallas_call would be
# pure launch overhead.
# ----------------------------------------------------------------------------
def noise_l2(noise_vars):
    noise_vars = noise_vars if isinstance(noise_vars, (list, tuple)) else [noise_vars]
    total = jnp.float32(0.0)
    for n in noise_vars:
        total = total + 0.5 * jnp.sum(n.astype(jnp.float32) ** 2)
    return total


# ----------------------------------------------------------------------------
# LossBuilder (Pallas version)
# ----------------------------------------------------------------------------
class LossBuilderPallas:
    def __init__(self, ref_im, loss_str, loss_domain, I, n_proj, mu_max,
                 H_dense, df_constant, eps):
        assert ref_im.shape[2] == 768 * n_proj
        del loss_domain  # TODO(synk): loss_domain selects the real projector variant
        self.I = I
        self.n_proj = n_proj
        self.mu_max = mu_max
        self.df_constant = df_constant
        self.eps = eps
        # H is the dominant HBM stream (read every forward): store it bf16 once.
        self.H_bf16 = H_dense.astype(jnp.bfloat16)
        self.ref_flat = ref_im.reshape(ref_im.shape[0], -1).astype(jnp.float32)
        self.n_per_batch = self.ref_flat.shape[1]
        self.parsed_loss = [t.split('*') for t in loss_str.split('+')]

    def forward(self, latent, noise_vars, gen_im):
        # NOTE: arithmetic intensity of the H stream scales linearly with the
        # caller's batch size B at ~constant wall time (HBM-bound) — batch more
        # candidates per call if the application allows.
        rg, ex, l2p, l1p = project_and_loss_partials(
            gen_im, self.ref_flat, self.H_bf16, self.mu_max)

        geo_cache = None
        if latent.shape[1] != 1:
            geo_cache = geocross_euclidean(latent)

        def _kl():
            # NOTE: exp(-gen_lr) may overflow for strongly negative projections,
            # matching the PyTorch reference (no clamp).
            return jnp.sum(rg) + self.I * jnp.sum(ex) + self.df_constant

        def _l2():
            return jnp.sum(l2p)

        def _l1():
            return 10.0 * jnp.sum(
                jnp.maximum(l1p / float(self.n_per_batch), self.eps))

        def _geocross():
            if latent.shape[1] == 1:
                return 0.0
            return geo_cache[0]

        def _euclidean():
            if latent.shape[1] == 1:
                return 0.0
            return geo_cache[1]

        def _noise():
            return noise_l2(noise_vars)

        fns = {'KL': _kl, 'L2': _l2, 'L1': _l1, 'GEOCROSS': _geocross,
               'EUCLIDEAN': _euclidean, 'NOISE_L2': _noise}

        loss = 0.0
        losses = {}
        for weight, loss_type in self.parsed_loss:
            v = fns[loss_type]()
            losses[loss_type] = v
            loss = loss + float(weight) * v
        return loss, losses


if __name__ == "__main__":
    key = jax.random.PRNGKey(0)
    k1, k2, k3, k4, k5, k6 = jax.random.split(key, 6)

    B, C, Himg, Wimg = 2, 1, 16, 16
    n_proj, W_DET = 1, 8
    P = 768 * n_proj
    K = C * Himg * Wimg
    N = P * W_DET

    gen_im = jax.random.uniform(k1, (B, C, Himg, Wimg), jnp.float32)
    ref_im = jax.random.uniform(k2, (B, 1, P, W_DET), jnp.float32,
                                minval=0.0, maxval=10.0)
    latent = jax.random.normal(k3, (B, 16, 512), jnp.float32)
    noise_vars = [jax.random.normal(k4, (1, 1, 8, 8), jnp.float32),
                  jax.random.normal(k5, (1, 1, 16, 16), jnp.float32)]
    # Deterministic synthetic dense projector matrix (stands in for H_csc).
    H_dense = jax.random.uniform(k6, (K, N), jnp.float32) / K

    builder = LossBuilderPallas(
        ref_im,
        loss_str='1*KL+1*L2+1*L1+0.1*GEOCROSS+0.001*EUCLIDEAN+0.05*NOISE_L2',
        loss_domain='proj', I=100.0, n_proj=n_proj, mu_max=0.02,
        H_dense=H_dense, df_constant=3.0, eps=1e-2)

    loss, losses = builder.forward(latent, noise_vars, gen_im)
    jax.block_until_ready(loss)
    _ = {k: jax.block_until_ready(v) for k, v in losses.items()}
    print("KERNEL_OK")
</pallas_src>

<mosaic_0001>
module attributes {stable_mosaic.version = 11 : i64} {
  func.func @_proj_loss_kernel(%arg0: i32, %arg1: i32, %arg2: memref<2x256xbf16, #tpu.memory_space<vmem>>, %arg3: memref<256x6144xbf16, #tpu.memory_space<vmem>>, %arg4: memref<2x6144xf32, #tpu.memory_space<vmem>>, %arg5: memref<1x2x4xf32, #tpu.memory_space<vmem>>, %arg6: memref<2x6144xf32, #tpu.memory_space<vmem>>) attributes {dimension_semantics = [#tpu.dimension_semantics<parallel>, #tpu.dimension_semantics<arbitrary>], iteration_bounds = array<i64: 1, 1>, scalar_prefetch = 0 : i64, scratch_operands = 1 : i64, tpu.core_type = #tpu.core_type<tc>, window_params = [{transform_indices = @transform_0, window_bounds = array<i64: 2, 256>}, {transform_indices = @transform_1, window_bounds = array<i64: 256, 6144>}, {transform_indices = @transform_2, window_bounds = array<i64: 2, 6144>}, {transform_indices = @transform_3, window_bounds = array<i64: 1, 2, 4>}]} {
    %c0_i32 = arith.constant 0 : i32
    %0 = arith.cmpi eq, %arg1, %c0_i32 : i32
    %1 = arith.extui %0 : i1 to i32
    %c0_i32_0 = arith.constant 0 : i32
    %2 = arith.cmpi ne, %1, %c0_i32_0 : i32
    scf.if %2 {
      %cst_10 = arith.constant 0.000000e+00 : f32
      %12 = vector.broadcast %cst_10 : f32 to vector<2x6144xf32>
      %c0_11 = arith.constant 0 : index
      %c0_12 = arith.constant 0 : index
      %13 = vector.load %arg6[%c0_11, %c0_12] : memref<2x6144xf32, #tpu.memory_space<vmem>>, vector<2x6144xf32>
      tpu.vector_store %arg6[%c0_11, %c0_12], %12 {strides = array<i32>} : memref<2x6144xf32, #tpu.memory_space<vmem>>, vector<2x6144xf32>,
    } else {
    }
    %c0 = arith.constant 0 : index
    %c0_1 = arith.constant 0 : index
    %3 = vector.load %arg6[%c0, %c0_1] : memref<2x6144xf32, #tpu.memory_space<vmem>>, vector<2x6144xf32>
    %c0_2 = arith.constant 0 : index
    %c0_3 = arith.constant 0 : index
    %4 = vector.load %arg2[%c0_2, %c0_3] : memref<2x256xbf16, #tpu.memory_space<vmem>>, vector<2x256xbf16>
    %c0_4 = arith.constant 0 : index
    %c0_5 = arith.constant 0 : index
    %5 = vector.load %arg3[%c0_4, %c0_5] : memref<256x6144xbf16, #tpu.memory_space<vmem>>, vector<256x6144xbf16>
    %cst = arith.constant dense<0.000000e+00> : vector<2x6144xf32>
    %6 = tpu.matmul %4, %5, %cst {dimension_numbers = #tpu.dot_dimension_numbers<[1], [0], [0], [1], [0, 0, 1, 1], [], []>} : vector<2x256xbf16>, vector<256x6144xbf16>, vector<2x6144xf32> -> vector<2x6144xf32>
    %7 = arith.addf %3, %6 : vector<2x6144xf32>
    %c0_6 = arith.constant 0 : index
    %c0_7 = arith.constant 0 : index
    %8 = vector.load %arg6[%c0_6, %c0_7] : memref<2x6144xf32, #tpu.memory_space<vmem>>, vector<2x6144xf32>
    tpu.vector_store %arg6[%c0_6, %c0_7], %7 {strides = array<i32>} : memref<2x6144xf32, #tpu.memory_space<vmem>>, vector<2x6144xf32>,
    %c0_i32_8 = arith.constant 0 : i32
    %9 = arith.cmpi eq, %arg1, %c0_i32_8 : i32
    %10 = arith.extui %9 : i1 to i32
    %c0_i32_9 = arith.constant 0 : i32
    %11 = arith.cmpi ne, %10, %c0_i32_9 : i32
    scf.if %11 {
      %c0_10 = arith.constant 0 : index
      %c0_11 = arith.constant 0 : index
      %12 = vector.load %arg6[%c0_10, %c0_11] : memref<2x6144xf32, #tpu.memory_space<vmem>>, vector<2x6144xf32>
      %c0_12 = arith.constant 0 : index
      %c0_13 = arith.constant 0 : index
      %13 = vector.load %arg4[%c0_12, %c0_13] : memref<2x6144xf32, #tpu.memory_space<vmem>>, vector<2x6144xf32>
      %14 = arith.subf %12, %13 : vector<2x6144xf32>
      %15 = arith.mulf %13, %12 : vector<2x6144xf32>
      %cst_14 = arith.constant dense<0.000000e+00> : vector<2xf32>
      %16 = vector.multi_reduction <add>, %15, %cst_14 [1] : vector<2x6144xf32> to vector<2xf32>
      %17 = vector.shape_cast %16 : vector<2xf32> to vector<2x1xf32>
      %cst_15 = arith.constant 0.000000e+00 : f32
      %18 = vector.broadcast %cst_15 : f32 to vector<2x6144xf32>
      %19 = arith.subf %18, %12 : vector<2x6144xf32>
      %20 = math.exp %19 : vector<2x6144xf32>
      %cst_16 = arith.constant dense<0.000000e+00> : vector<2xf32>
      %21 = vector.multi_reduction <add>, %20, %cst_16 [1] : vector<2x6144xf32> to vector<2xf32>
      %22 = vector.shape_cast %21 : vector<2xf32> to vector<2x1xf32>
      %23 = arith.mulf %14, %14 : vector<2x6144xf32>
      %cst_17 = arith.constant dense<0.000000e+00> : vector<2xf32>
      %24 = vector.multi_reduction <add>, %23, %cst_17 [1] : vector<2x6144xf32> to vector<2xf32>
      %25 = vector.shape_cast %24 : vector<2xf32> to vector<2x1xf32>
      %26 = math.absf %14 : vector<2x6144xf32>
      %cst_18 = arith.constant dense<0.000000e+00> : vector<2xf32>
      %27 = vector.multi_reduction <add>, %26, %cst_18 [1] : vector<2x6144xf32> to vector<2xf32>
      %28 = vector.shape_cast %27 : vector<2xf32> to vector<2x1xf32>
      %29 = tpu.concatenate %17, %22, %25, %28 in 1 : vector<2x1xf32>, vector<2x1xf32>, vector<2x1xf32>, vector<2x1xf32> -> vector<2x4xf32>
      %c0_19 = arith.constant 0 : index
      %c0_20 = arith.constant 0 : index
      %c0_21 = arith.constant 0 : index
      %30 = vector.load %arg5[%c0_19, %c0_20, %c0_21] : memref<1x2x4xf32, #tpu.memory_space<vmem>>, vector<1x2x4xf32>
      %31 = vector.shape_cast %30 : vector<1x2x4xf32> to vector<2x4xf32>
      %32 = vector.shape_cast %29 : vector<2x4xf32> to vector<1x2x4xf32>
      tpu.vector_store %arg5[%c0_19, %c0_20, %c0_21], %32 {strides = array<i32>} : memref<1x2x4xf32, #tpu.memory_space<vmem>>, vector<1x2x4xf32>,
    } else {
    }
    return
  }
  func.func @transform_0(%arg0: i32, %arg1: i32) -> (i32, i32) {
    %c0_i32 = arith.constant 0 : i32
    %c0_i32_0 = arith.constant 0 : i32
    return %c0_i32, %arg1 : i32, i32
  }
  func.func @transform_1(%arg0: i32, %arg1: i32) -> (i32, i32) {
    %c0_i32 = arith.constant 0 : i32
    return %arg1, %arg0 : i32, i32
  }
  func.func @transform_2(%arg0: i32, %arg1: i32) -> (i32, i32) {
    %c0_i32 = arith.constant 0 : i32
    %c0_i32_0 = arith.constant 0 : i32
    return %c0_i32, %arg0 : i32, i32
  }
  func.func @transform_3(%arg0: i32, %arg1: i32) -> (i32, i32, i32) {
    %c0_i32 = arith.constant 0 : i32
    %c0_i32_0 = arith.constant 0 : i32
    %c0_i32_1 = arith.constant 0 : i32
    return %arg0, %c0_i32, %c0_i32_0 : i32, i32, i32
  }
}

</mosaic_0001>

<bundles_post_ra>
// kernel: tpu_custom_call.1
= control target key start
LH: loop header
LB: loop body
LE: loop exit
PB: predicated region body
PF: predicated region fallthrough
CT: control target
= control target key end

     0   :  { %8 = vsyncpa [#allocation4], 0  ;;  %s9418_s0 = inlined_call_operand.hbm [shape: bf16[2,256], index: 0, kind: input, shape index: {}]   ;;  %s9419_s1 = inlined_call_operand.hbm [shape: bf16[256,6144], index: 1, kind: input, shape index: {}]   ;;  %s9420_s2 = inlined_call_operand.hbm [shape: f32[2,6144], index: 2, kind: input, shape index: {}]   ;;  %s9421_s3 = inlined_call_operand.hbm [shape: f32[1,2,4], index: 3, kind: output, shape index: {}]  }
   0x1   :  { %9 = vsyncpa [#allocation7], 0 }
   0x2   :  { %10 = vsyncpa [#allocation5], 0  ;;  %s8461_s12 = smov [#allocation6]   ;;  %s8367_s16 = scalar_lea.hbm %s9419_s1, 98304 }
   0x3   :  { %s26_s13 = sshll.u32 %s8461_s12, 4  ;;  %p8368_p0 = scmp.ne.s32.totalorder %s9419_s1, %s8367_s16  ;;  %s27_s13 = int_to_ptr.vmem [resolvable:$true] %s26_s13 }
   0x4   :  { %p8371_p1 = scmp.lt.u32.totalorder %s8367_s16, %s9419_s1 }
   0x6   :  { %p8373_p2 = pnand %p8371_p1, %p8368_p0 }
   0x8   :  { %8376 = shalt.err (!%p8373_p2)
}
   0x9   :  { %s8377_s21 = scalar_lea.vmem %s27_s13, 98304  ;;  %p8382_p4 = scmp.lt.s32.totalorder %s27_s13, %s27_s13 }
   0xa   :  { %p8378_p3 = scmp.ne.s32.totalorder %s27_s13, %s8377_s21  ;;  %p8383_p5 = scmp.lt.s32.totalorder %s8377_s21, %s8377_s21 }
   0xc   :  { %p8384_p6 = por %p8383_p5, %p8382_p4 }
   0xe   :  { %p8385_p7 = pnand %p8384_p6, %p8378_p3 }
  0x10   :  { %8388 = shalt.err (!%p8385_p7)
}
  0x11   :  { %s8462_s22 = smov 3072   ;;  %s8463_s23 = smov 192  }
  0x12   :  { %32 = dma.hbm_to_vmem [thread:$0]  %s9419_s1, 98304, %s27_s13, [#allocation7], %s8462_s22, %s8462_s22, %s8463_s23  }
  0x13   :  { %s8464_s26 = smov [#allocation3]   ;;  %s8465_s28 = smov [#allocation8]  }
  0x14   :  { %s17_s27 = sshll.u32 %s8464_s26, 4  ;;  %s39_s29 = sshll.u32 %s8465_s28, 4  ;;  %s18_s27 = int_to_ptr.vmem [resolvable:$true] %s17_s27  ;;  %s40_s29 = int_to_ptr.vmem [resolvable:$true] %s39_s29 }
  0x15   :  { %s8389_s5 = scalar_lea.hbm %s9418_s0, 32 }
  0x16   :  { %p8390_p8 = scmp.ne.s32.totalorder %s9418_s0, %s8389_s5  ;;  %p8393_p9 = scmp.lt.u32.totalorder %s8389_s5, %s9418_s0 }
  0x18   :  { %p8395_p10 = pnand %p8393_p9, %p8390_p8 }
  0x1a   :  { %8398 = shalt.err (!%p8395_p10)
}
  0x1b   :  { %s8399_s1 = scalar_lea.vmem %s18_s27, 32  ;;  %p8404_p12 = scmp.lt.s32.totalorder %s18_s27, %s18_s27 }
  0x1c   :  { %p8400_p11 = scmp.ne.s32.totalorder %s18_s27, %s8399_s1  ;;  %p8405_p13 = scmp.lt.s32.totalorder %s8399_s1, %s8399_s1 }
  0x1e   :  { %p8406_p0 = por %p8405_p13, %p8404_p12 }
  0x20   :  { %p8407_p1 = pnand %p8406_p0, %p8400_p11 }
  0x22   :  { %8410 = shalt.err (!%p8407_p1)
}
  0x23   :  { %20 = dma.hbm_to_vmem [thread:$0]  %s9418_s0, 32, %s18_s27, [#allocation4]  }
  0x24   :  { %s8411_s14 = scalar_lea.hbm %s9420_s2, 1536 }
  0x25   :  { %p8412_p2 = scmp.ne.s32.totalorder %s9420_s2, %s8411_s14  ;;  %p8415_p3 = scmp.lt.u32.totalorder %s8411_s14, %s9420_s2 }
  0x27   :  { %p8417_p4 = pnand %p8415_p3, %p8412_p2 }
  0x29   :  { %8420 = shalt.err (!%p8417_p4)
}
  0x2a   :  { %s8421_s19 = scalar_lea.vmem %s40_s29, 1536  ;;  %p8426_p6 = scmp.lt.s32.totalorder %s40_s29, %s40_s29 }
  0x2b   :  { %p8422_p5 = scmp.ne.s32.totalorder %s40_s29, %s8421_s19  ;;  %p8427_p7 = scmp.lt.s32.totalorder %s8421_s19, %s8421_s19 }
  0x2d   :  { %p8428_p8 = por %p8427_p7, %p8426_p6 }
  0x2f   :  { %p8429_p9 = pnand %p8428_p8, %p8422_p5 }
  0x31   :  { %8432 = shalt.err (!%p8429_p9)
}
  0x32   :  { %42 = dma.hbm_to_vmem [thread:$0]  %s9420_s2, 1536, %s40_s29, [#allocation7]  }
  0x33   :  { %8455 = dma.done.wait [#allocation4], 32  }
  0x34   :  { %8456 = vsyncadd [#allocation4], 4294967264 }
  0x35   :  { %8457 = dma.done.wait [#allocation7], 99840  }
  0x36   :  { %8458 = vsyncadd [#allocation7], 4294867456  ;;  %v81_v0 = vld [vmem:[#allocation6] sm:$0xff]  ;;  %v82_v2 = vld [vmem:[#allocation6 + $0x8] sm:$0xff]  ;;  %v8466_v35 = vmov 1966171168   ;;  %v861_v37 = vlaneseq }
  0x37   :  { %v105_v1 = vld [vmem:[#allocation6 + $0xc0] sm:$0xff]  ;;  %v106_v4 = vld [vmem:[#allocation6 + $0xc8] sm:$0xff]  ;;  %v859_v36 = vunpack.c.l.s4 %v8466_v35  ;;  %v8530_v59 = vld.sshfl [vmem:[#allocation3] sm:$0x11 pattern:$0x75316420] }
  0x38   :  { %v7568_v3 = vcombine.high %v81_v0, %v105_v1  ;;  %v7567_v5 = vcombine.low %v81_v0, %v105_v1  ;;  %v129_v6 = vld [vmem:[#allocation6 + $0x180] sm:$0xff]  ;;  %v7570_v8 = vcombine.high %v82_v2, %v106_v4  ;;  %v7569_v9 = vcombine.low %v82_v2, %v106_v4  ;;  %v130_v11 = vld [vmem:[#allocation6 + $0x188] sm:$0xff]  ;;  %s8468_s2 = smov [#allocation9]  }
  0x39   :  { %v153_v7 = vld [vmem:[#allocation6 + $0x240] sm:$0xff]  ;;  %v154_v12 = vld [vmem:[#allocation6 + $0x248] sm:$0xff]  ;;  %v860_v46 = vunpack.c.0.s8 %v859_v36  ;;  %v8525_v47 = vshrl.u32 %v861_v37, 7  ;;  %v857_v63 = vcombine.high %v8530_v59, %v8530_v59  ;;  %vm6301_vm0 = vcmask 1041408   ;;  %s7556_s21 = sshll.u32 %s8468_s2, 4  ;;  %s7557_s21 = int_to_ptr.vmem [resolvable:$true] %s7556_s21 }
  0x3a   :  { %v7616_v10 = vcombine.high %v129_v6, %v153_v7  ;;  %v177_v13 = vld [vmem:[#allocation6 + $0x300] sm:$0xff]  ;;  %4714 = vmatprep.subr.bf16.mxu0 %v7568_v3  ;;  %v7618_v14 = vcombine.high %v130_v11, %v154_v12  ;;  %v178_v16 = vld [vmem:[#allocation6 + $0x308] sm:$0xff]  ;;  %4755 = vmatprep.subr.bf16.mxu1 %v7570_v8  ;;  %v7615_v18 = vcombine.low %v129_v6, %v153_v7  ;;  %vm7542_vm1 = vcmask 7168   ;;  %s8433_s22 = scalar_lea.vmem %s7557_s21, 32  ;;  %p8438_p11 = scmp.lt.s32.totalorder %s7557_s21, %s7557_s21 }
  0x3b   :  { %v201_v15 = vld [vmem:[#allocation6 + $0x3c0] sm:$0xff]  ;;  %v202_v17 = vld [vmem:[#allocation6 + $0x3c8] sm:$0xff]  ;;  %4715 = vmatpush1.bf16.msra.mxu0 %v7567_v5  ;;  %4756 = vmatpush1.bf16.msra.mxu1 %v7569_v9  ;;  %v7617_v19 = vcombine.low %v130_v11, %v154_v12  ;;  %v8528_v56 = vsub.s32 %v860_v46, %v8525_v47  ;;  %vm7544_vm2 = vcmask 15360   ;;  %vm7546_vm3 = vcmask 23552   ;;  %p8434_p10 = scmp.ne.s32.totalorder %s7557_s21, %s8433_s22  ;;  %p8439_p12 = scmp.lt.s32.totalorder %s8433_s22, %s8433_s22 }
  0x3c   :  { %4716 = vmatprep.subr.bf16.mxu0 %v7616_v10  ;;  %v7664_v20 = vcombine.high %v177_v13, %v201_v15  ;;  %4757 = vmatprep.subr.bf16.mxu1 %v7618_v14  ;;  %v7666_v21 = vcombine.high %v178_v16, %v202_v17  ;;  %v225_v22 = vld [vmem:[#allocation6 + $0x480] sm:$0xff]  ;;  %v226_v24 = vld [vmem:[#allocation6 + $0x488] sm:$0xff]  ;;  %v7663_v26 = vcombine.low %v177_v13, %v201_v15  ;;  %vm7548_vm4 = vcmask 25600  }
  0x3d   :  { %v249_v23 = vld [vmem:[#allocation6 + $0x540] sm:$0xff]  ;;  %v250_v25 = vld [vmem:[#allocation6 + $0x548] sm:$0xff]  ;;  %v7665_v27 = vcombine.low %v178_v16, %v202_v17  ;;  %v8535_v3 = vrot.slane %v857_v63, %v8528_v56  ;;  %p8440_p13 = por %p8439_p12, %p8438_p11 }
  0x3e   :  { %v7712_v28 = vcombine.high %v225_v22, %v249_v23  ;;  %v7714_v29 = vcombine.high %v226_v24, %v250_v25  ;;  %v273_v30 = vld [vmem:[#allocation6 + $0x600] sm:$0xff]  ;;  %v274_v32 = vld [vmem:[#allocation6 + $0x608] sm:$0xff]  ;;  %v7711_v34 = vcombine.low %v225_v22, %v249_v23  ;;  %v7713_v38 = vcombine.low %v226_v24, %v250_v25 }
  0x3f   :  { %4717 = vmatpush1.bf16.msra.mxu0 %v7615_v18  ;;  %4758 = vmatpush1.bf16.msra.mxu1 %v7617_v19  ;;  %v297_v31 = vld [vmem:[#allocation6 + $0x6c0] sm:$0xff]  ;;  %v298_v33 = vld [vmem:[#allocation6 + $0x6c8] sm:$0xff]  ;;  %p8441_p0 = pnand %p8440_p13, %p8434_p10 }
  0x40   :  { %4718 = vmatprep.subr.bf16.mxu0 %v7664_v20  ;;  %4759 = vmatprep.subr.bf16.mxu1 %v7666_v21  ;;  %v7760_v39 = vcombine.high %v273_v30, %v297_v31  ;;  %v7762_v40 = vcombine.high %v274_v32, %v298_v33  ;;  %v321_v41 = vld [vmem:[#allocation6 + $0x780] sm:$0xff]  ;;  %v322_v43 = vld [vmem:[#allocation6 + $0x788] sm:$0xff]  ;;  %v7759_v45 = vcombine.low %v273_v30, %v297_v31 }
  0x41   :  { %v345_v42 = vld [vmem:[#allocation6 + $0x840] sm:$0xff]  ;;  %v346_v44 = vld [vmem:[#allocation6 + $0x848] sm:$0xff]  ;;  %v7761_v48 = vcombine.low %v274_v32, %v298_v33  ;;  %4746 = vmatprep.mubr.bf16.mxu0 %v8535_v3  ;;  %4787 = vmatprep.mubr.bf16.mxu1 %v8535_v3 }
  0x42   :  { %v7808_v49 = vcombine.high %v321_v41, %v345_v42  ;;  %v7810_v50 = vcombine.high %v322_v43, %v346_v44  ;;  %v369_v51 = vld [vmem:[#allocation6 + $0x900] sm:$0xff]  ;;  %v370_v53 = vld [vmem:[#allocation6 + $0x908] sm:$0xff]  ;;  %v7807_v55 = vcombine.low %v321_v41, %v345_v42  ;;  %v7809_v57 = vcombine.low %v322_v43, %v346_v44 }
  0x43   :  { %4719 = vmatpush1.bf16.msra.mxu0 %v7663_v26  ;;  %4760 = vmatpush1.bf16.msra.mxu1 %v7665_v27  ;;  %v393_v52 = vld [vmem:[#allocation6 + $0x9c0] sm:$0xff]  ;;  %v394_v54 = vld [vmem:[#allocation6 + $0x9c8] sm:$0xff] }
  0x44   :  { %4720 = vmatprep.subr.bf16.mxu0 %v7712_v28  ;;  %4761 = vmatprep.subr.bf16.mxu1 %v7714_v29  ;;  %v7856_v58 = vcombine.high %v369_v51, %v393_v52  ;;  %v7858_v60 = vcombine.high %v370_v53, %v394_v54  ;;  %v417_v61 = vld [vmem:[#allocation6 + $0xa80] sm:$0xff]  ;;  %v418_v0 = vld [vmem:[#allocation6 + $0xa88] sm:$0xff]  ;;  %v7855_v2 = vcombine.low %v369_v51, %v393_v52 }
  0x45   :  { %v441_v62 = vld [vmem:[#allocation6 + $0xb40] sm:$0xff]  ;;  %v442_v1 = vld [vmem:[#allocation6 + $0xb48] sm:$0xff]  ;;  %v7857_v4 = vcombine.low %v370_v53, %v394_v54 }
  0x46   :  { %v7904_v5 = vcombine.high %v417_v61, %v441_v62  ;;  %v7906_v6 = vcombine.high %v418_v0, %v442_v1  ;;  %v465_v7 = vld [vmem:[#allocation6 + $0xc00] sm:$0xff]  ;;  %v466_v9 = vld [vmem:[#allocation6 + $0xc08] sm:$0xff]  ;;  %v7903_v11 = vcombine.low %v417_v61, %v441_v62  ;;  %v7905_v12 = vcombine.low %v418_v0, %v442_v1 }
  0x47   :  { %4721 = vmatpush1.bf16.msra.mxu0 %v7711_v34  ;;  %4762 = vmatpush1.bf16.msra.mxu1 %v7713_v38  ;;  %v489_v8 = vld [vmem:[#allocation6 + $0xcc0] sm:$0xff]  ;;  %v490_v10 = vld [vmem:[#allocation6 + $0xcc8] sm:$0xff] }
  0x48   :  { %4722 = vmatprep.subr.bf16.mxu0 %v7760_v39  ;;  %4763 = vmatprep.subr.bf16.mxu1 %v7762_v40  ;;  %v7952_v13 = vcombine.high %v465_v7, %v489_v8  ;;  %v7954_v14 = vcombine.high %v466_v9, %v490_v10  ;;  %v513_v15 = vld [vmem:[#allocation6 + $0xd80] sm:$0xff]  ;;  %v514_v17 = vld [vmem:[#allocation6 + $0xd88] sm:$0xff]  ;;  %v7951_v19 = vcombine.low %v465_v7, %v489_v8 }
  0x49   :  { %v537_v16 = vld [vmem:[#allocation6 + $0xe40] sm:$0xff]  ;;  %v538_v18 = vld [vmem:[#allocation6 + $0xe48] sm:$0xff]  ;;  %v7953_v20 = vcombine.low %v466_v9, %v490_v10 }
  0x4a   :  { %v8000_v21 = vcombine.high %v513_v15, %v537_v16  ;;  %v8002_v22 = vcombine.high %v514_v17, %v538_v18  ;;  %v561_v23 = vld [vmem:[#allocation6 + $0xf00] sm:$0xff]  ;;  %v562_v25 = vld [vmem:[#allocation6 + $0xf08] sm:$0xff]  ;;  %v7999_v27 = vcombine.low %v513_v15, %v537_v16  ;;  %v8001_v28 = vcombine.low %v514_v17, %v538_v18 }
  0x4b   :  { %4723 = vmatpush1.bf16.msra.mxu0 %v7759_v45  ;;  %4764 = vmatpush1.bf16.msra.mxu1 %v7761_v48  ;;  %v585_v24 = vld [vmem:[#allocation6 + $0xfc0] sm:$0xff]  ;;  %v586_v26 = vld [vmem:[#allocation6 + $0xfc8] sm:$0xff] }
  0x4c   :  { %4724 = vmatprep.subr.bf16.mxu0 %v7808_v49  ;;  %4765 = vmatprep.subr.bf16.mxu1 %v7810_v50  ;;  %v8048_v29 = vcombine.high %v561_v23, %v585_v24  ;;  %v8050_v30 = vcombine.high %v562_v25, %v586_v26  ;;  %v609_v31 = vld [vmem:[#allocation6 + $0x1080] sm:$0xff]  ;;  %v610_v33 = vld [vmem:[#allocation6 + $0x1088] sm:$0xff]  ;;  %v8047_v35 = vcombine.low %v561_v23, %v585_v24  ;;  %v156_v23 = vld [vmem:[#allocation6 + $0x258] sm:$0xff] }
  0x4d   :  { %v633_v32 = vld [vmem:[#allocation6 + $0x1140] sm:$0xff]  ;;  %v634_v34 = vld [vmem:[#allocation6 + $0x1148] sm:$0xff]  ;;  %v8049_v36 = vcombine.low %v562_v25, %v586_v26 }
  0x4e   :  { %v8096_v37 = vcombine.high %v609_v31, %v633_v32  ;;  %v8098_v38 = vcombine.high %v610_v33, %v634_v34  ;;  %v657_v39 = vld [vmem:[#allocation6 + $0x1200] sm:$0xff]  ;;  %v658_v41 = vld [vmem:[#allocation6 + $0x1208] sm:$0xff]  ;;  %v8095_v43 = vcombine.low %v609_v31, %v633_v32  ;;  %v8097_v44 = vcombine.low %v610_v33, %v634_v34  ;;  %v204_v31 = vld [vmem:[#allocation6 + $0x3d8] sm:$0xff] }
  0x4f   :  { %4725 = vmatpush1.bf16.msra.mxu0 %v7807_v55  ;;  %4766 = vmatpush1.bf16.msra.mxu1 %v7809_v57  ;;  %v681_v40 = vld [vmem:[#allocation6 + $0x12c0] sm:$0xff]  ;;  %v682_v42 = vld [vmem:[#allocation6 + $0x12c8] sm:$0xff]  ;;  %v227_v34 = vld [vmem:[#allocation6 + $0x490] sm:$0xff] }
  0x50   :  { %4726 = vmatprep.subr.bf16.mxu0 %v7856_v58  ;;  %4767 = vmatprep.subr.bf16.mxu1 %v7858_v60  ;;  %v8144_v45 = vcombine.high %v657_v39, %v681_v40  ;;  %v8146_v46 = vcombine.high %v658_v41, %v682_v42  ;;  %v705_v48 = vld [vmem:[#allocation6 + $0x1380] sm:$0xff]  ;;  %v706_v50 = vld [vmem:[#allocation6 + $0x1388] sm:$0xff]  ;;  %v8143_v52 = vcombine.low %v657_v39, %v681_v40 }
  0x51   :  { %v729_v49 = vld [vmem:[#allocation6 + $0x1440] sm:$0xff]  ;;  %v730_v51 = vld [vmem:[#allocation6 + $0x1448] sm:$0xff]  ;;  %v8145_v53 = vcombine.low %v658_v41, %v682_v42  ;;  %v275_v42 = vld [vmem:[#allocation6 + $0x610] sm:$0xff] }
  0x52   :  { %v8192_v54 = vcombine.high %v705_v48, %v729_v49  ;;  %v8194_v55 = vcombine.high %v706_v50, %v730_v51  ;;  %v753_v57 = vld [vmem:[#allocation6 + $0x1500] sm:$0xff]  ;;  %v754_v60 = vld [vmem:[#allocation6 + $0x1508] sm:$0xff]  ;;  %v8191_v62 = vcombine.low %v705_v48, %v729_v49  ;;  %v8193_v63 = vcombine.low %v706_v50, %v730_v51  ;;  %v323_v51 = vld [vmem:[#allocation6 + $0x790] sm:$0xff] }
  0x53   :  { %4727 = vmatpush1.bf16.msra.mxu0 %v7855_v2  ;;  %4768 = vmatpush1.bf16.msra.mxu1 %v7857_v4  ;;  %v777_v58 = vld [vmem:[#allocation6 + $0x15c0] sm:$0xff]  ;;  %v778_v61 = vld [vmem:[#allocation6 + $0x15c8] sm:$0xff] }
  0x54   :  { %4728 = vmatprep.subr.bf16.mxu0 %v7904_v5  ;;  %4769 = vmatprep.subr.bf16.mxu1 %v7906_v6  ;;  %v8240_v0 = vcombine.high %v753_v57, %v777_v58  ;;  %v8242_v1 = vcombine.high %v754_v60, %v778_v61  ;;  %v801_v2 = vld [vmem:[#allocation6 + $0x1680] sm:$0xff]  ;;  %v802_v5 = vld [vmem:[#allocation6 + $0x1688] sm:$0xff]  ;;  %v8239_v7 = vcombine.low %v753_v57, %v777_v58 }
  0x55   :  { %v825_v4 = vld [vmem:[#allocation6 + $0x1740] sm:$0xff]  ;;  %v826_v6 = vld [vmem:[#allocation6 + $0x1748] sm:$0xff]  ;;  %v8241_v8 = vcombine.low %v754_v60, %v778_v61  ;;  %v371_v61 = vld [vmem:[#allocation6 + $0x910] sm:$0xff] }
  0x56   :  { %v8288_v9 = vcombine.high %v801_v2, %v825_v4  ;;  %v8290_v10 = vcombine.high %v802_v5, %v826_v6  ;;  %v8287_v15 = vcombine.low %v801_v2, %v825_v4  ;;  %v8289_v16 = vcombine.low %v802_v5, %v826_v6  ;;  %v419_v6 = vld [vmem:[#allocation6 + $0xa90] sm:$0xff] }
  0x57   :  { %4729 = vmatpush1.bf16.msra.mxu0 %v7903_v11  ;;  %4770 = vmatpush1.bf16.msra.mxu1 %v7905_v12  ;;  %v83_v11 = vld [vmem:[#allocation6 + $0x10] sm:$0xff] }
  0x58   :  { %4730 = vmatprep.subr.bf16.mxu0 %v7952_v13  ;;  %4771 = vmatprep.subr.bf16.mxu1 %v7954_v14  ;;  %v107_v12 = vld [vmem:[#allocation6 + $0xd0] sm:$0xff]  ;;  %v84_v13 = vld [vmem:[#allocation6 + $0x18] sm:$0xff] }
  0x59   :  { %v108_v14 = vld [vmem:[#allocation6 + $0xd8] sm:$0xff]  ;;  %v7572_v17 = vcombine.high %v83_v11, %v107_v12  ;;  %v7571_v24 = vcombine.low %v83_v11, %v107_v12 }
  0x5a   :  { %v7574_v18 = vcombine.high %v84_v13, %v108_v14  ;;  %v7573_v25 = vcombine.low %v84_v13, %v108_v14  ;;  %v467_v14 = vld [vmem:[#allocation6 + $0xc10] sm:$0xff] }
  0x5b   :  { %4731 = vmatpush1.bf16.msra.mxu0 %v7951_v19  ;;  %4772 = vmatpush1.bf16.msra.mxu1 %v7953_v20  ;;  %v131_v19 = vld [vmem:[#allocation6 + $0x190] sm:$0xff] }
  0x5c   :  { %4732 = vmatprep.subr.bf16.mxu0 %v8000_v21  ;;  %4773 = vmatprep.subr.bf16.mxu1 %v8002_v22  ;;  %v155_v20 = vld [vmem:[#allocation6 + $0x250] sm:$0xff]  ;;  %v8541_v21 = vrot.slane %v8530_v59, %v8528_v56  ;;  %v132_v22 = vld [vmem:[#allocation6 + $0x198] sm:$0xff] }
  0x5d   :  { %v7620_v26 = vcombine.high %v131_v19, %v155_v20  ;;  %v7619_v56 = vcombine.low %v131_v19, %v155_v20  ;;  %v7621_v59 = vcombine.low %v132_v22, %v156_v23 }
  0x5f   :  { %4733 = vmatpush1.bf16.msra.mxu0 %v7999_v27  ;;  %4774 = vmatpush1.bf16.msra.mxu1 %v8001_v28  ;;  %v7622_v27 = vcombine.high %v132_v22, %v156_v23  ;;  %v179_v28 = vld [vmem:[#allocation6 + $0x310] sm:$0xff] }
  0x60   :  { %4734 = vmatprep.subr.bf16.mxu0 %v8048_v29  ;;  %4775 = vmatprep.subr.bf16.mxu1 %v8050_v30  ;;  %v203_v29 = vld [vmem:[#allocation6 + $0x3d0] sm:$0xff]  ;;  %v180_v30 = vld [vmem:[#allocation6 + $0x318] sm:$0xff] }
  0x61   :  { %v7668_v32 = vcombine.high %v179_v28, %v203_v29  ;;  %v7670_v33 = vcombine.high %v180_v30, %v204_v31  ;;  %v7669_v39 = vcombine.low %v180_v30, %v204_v31  ;;  %v515_v23 = vld [vmem:[#allocation6 + $0xd90] sm:$0xff] }
  0x62   :  { %v563_v31 = vld [vmem:[#allocation6 + $0xf10] sm:$0xff] }
  0x63   :  { %4735 = vmatpush1.bf16.msra.mxu0 %v8047_v35  ;;  %4776 = vmatpush1.bf16.msra.mxu1 %v8049_v36  ;;  %v251_v35 = vld [vmem:[#allocation6 + $0x550] sm:$0xff]  ;;  %v228_v36 = vld [vmem:[#allocation6 + $0x498] sm:$0xff] }
  0x64   :  { %4736 = vmatprep.subr.bf16.mxu0 %v8096_v37  ;;  %4777 = vmatprep.subr.bf16.mxu1 %v8098_v38  ;;  %v252_v37 = vld [vmem:[#allocation6 + $0x558] sm:$0xff]  ;;  %v7667_v38 = vcombine.low %v179_v28, %v203_v29  ;;  %v7716_v40 = vcombine.high %v227_v34, %v251_v35 }
  0x65   :  { %v7718_v41 = vcombine.high %v228_v36, %v252_v37  ;;  %v7717_v48 = vcombine.low %v228_v36, %v252_v37  ;;  %v611_v37 = vld [vmem:[#allocation6 + $0x1090] sm:$0xff] }
  0x67   :  { %4737 = vmatpush1.bf16.msra.mxu0 %v8095_v43  ;;  %4778 = vmatpush1.bf16.msra.mxu1 %v8097_v44  ;;  %v299_v43 = vld [vmem:[#allocation6 + $0x6d0] sm:$0xff]  ;;  %v276_v44 = vld [vmem:[#allocation6 + $0x618] sm:$0xff] }
  0x68   :  { %4738 = vmatprep.subr.bf16.mxu0 %v8144_v45  ;;  %4779 = vmatprep.subr.bf16.mxu1 %v8146_v46  ;;  %v300_v45 = vld [vmem:[#allocation6 + $0x6d8] sm:$0xff]  ;;  %v7715_v46 = vcombine.low %v227_v34, %v251_v35  ;;  %v7764_v49 = vcombine.high %v275_v42, %v299_v43 }
  0x69   :  { %v7766_v50 = vcombine.high %v276_v44, %v300_v45  ;;  %v7765_v57 = vcombine.low %v276_v44, %v300_v45  ;;  %v659_v45 = vld [vmem:[#allocation6 + $0x1210] sm:$0xff] }
  0x6b   :  { %4739 = vmatpush1.bf16.msra.mxu0 %v8143_v52  ;;  %4780 = vmatpush1.bf16.msra.mxu1 %v8145_v53  ;;  %v347_v52 = vld [vmem:[#allocation6 + $0x850] sm:$0xff]  ;;  %v324_v53 = vld [vmem:[#allocation6 + $0x798] sm:$0xff] }
  0x6c   :  { %4740 = vmatprep.subr.bf16.mxu0 %v8192_v54  ;;  %4781 = vmatprep.subr.bf16.mxu1 %v8194_v55  ;;  %v348_v54 = vld [vmem:[#allocation6 + $0x858] sm:$0xff]  ;;  %v7763_v55 = vcombine.low %v275_v42, %v299_v43  ;;  %v7812_v58 = vcombine.high %v323_v51, %v347_v52 }
  0x6d   :  { %v7814_v60 = vcombine.high %v324_v53, %v348_v54  ;;  %v7813_v2 = vcombine.low %v324_v53, %v348_v54  ;;  %v707_v54 = vld [vmem:[#allocation6 + $0x1390] sm:$0xff] }
  0x6f   :  { %4741 = vmatpush1.bf16.msra.mxu0 %v8191_v62  ;;  %4782 = vmatpush1.bf16.msra.mxu1 %v8193_v63  ;;  %v395_v62 = vld [vmem:[#allocation6 + $0x9d0] sm:$0xff]  ;;  %v372_v63 = vld [vmem:[#allocation6 + $0x918] sm:$0xff] }
  0x70   :  { %4742 = vmatprep.subr.bf16.mxu0 %v8240_v0  ;;  %4783 = vmatprep.subr.bf16.mxu1 %v8242_v1  ;;  %v396_v0 = vld [vmem:[#allocation6 + $0x9d8] sm:$0xff]  ;;  %v7811_v1 = vcombine.low %v323_v51, %v347_v52  ;;  %v7860_v4 = vcombine.high %v371_v61, %v395_v62 }
  0x71   :  { %v7862_v5 = vcombine.high %v372_v63, %v396_v0  ;;  %v7861_v11 = vcombine.low %v372_v63, %v396_v0  ;;  %v755_v0 = vld [vmem:[#allocation6 + $0x1510] sm:$0xff] }
  0x73   :  { %4743 = vmatpush1.bf16.msra.mxu0 %v8239_v7  ;;  %4784 = vmatpush1.bf16.msra.mxu1 %v8241_v8  ;;  %v443_v7 = vld [vmem:[#allocation6 + $0xb50] sm:$0xff]  ;;  %v420_v8 = vld [vmem:[#allocation6 + $0xa98] sm:$0xff] }
  0x74   :  { %4744 = vmatprep.subr.bf16.mxu0 %v8288_v9  ;;  %4785 = vmatprep.subr.bf16.mxu1 %v8290_v10  ;;  %v444_v9 = vld [vmem:[#allocation6 + $0xb58] sm:$0xff]  ;;  %v7859_v10 = vcombine.low %v371_v61, %v395_v62  ;;  %v7908_v12 = vcombine.high %v419_v6, %v443_v7 }
  0x75   :  { %v7910_v13 = vcombine.high %v420_v8, %v444_v9  ;;  %v7909_v19 = vcombine.low %v420_v8, %v444_v9  ;;  %v803_v9 = vld [vmem:[#allocation6 + $0x1690] sm:$0xff] }
  0x77   :  { %4745 = vmatpush1.bf16.msra.mxu0 %v8287_v15  ;;  %4786 = vmatpush1.bf16.msra.mxu1 %v8289_v16  ;;  %v491_v15 = vld [vmem:[#allocation6 + $0xcd0] sm:$0xff]  ;;  %v468_v16 = vld [vmem:[#allocation6 + $0xc18] sm:$0xff] }
  0x78   :  { %4796 = vmatprep.subr.bf16.mxu0 %v7572_v17  ;;  %4837 = vmatprep.subr.bf16.mxu1 %v7574_v18  ;;  %v492_v17 = vld [vmem:[#allocation6 + $0xcd8] sm:$0xff]  ;;  %v7907_v18 = vcombine.low %v419_v6, %v443_v7  ;;  %v7956_v20 = vcombine.high %v467_v14, %v491_v15 }
  0x79   :  { %v7958_v22 = vcombine.high %v468_v16, %v492_v17  ;;  %v7957_v28 = vcombine.low %v468_v16, %v492_v17  ;;  %v85_v17 = vld [vmem:[#allocation6 + $0x20] sm:$0xff] }
  0x7a   :  { %4747 = vmatmul.mubr.bf16.vlgmr.msra.gmra.mrb[0].mxu0 %v8541_v21  ;;  %4788 = vmatmul.mubr.bf16.vlgmr.msra.gmra.mrb[0].mxu1 %v8541_v21 }
  0x7b   :  { %4797 = vmatpush1.bf16.msra.mxu0 %v7571_v24  ;;  %4838 = vmatpush1.bf16.msra.mxu1 %v7573_v25  ;;  %v539_v24 = vld [vmem:[#allocation6 + $0xe50] sm:$0xff]  ;;  %v516_v25 = vld [vmem:[#allocation6 + $0xd98] sm:$0xff] }
  0x7c   :  { %4798 = vmatprep.subr.bf16.mxu0 %v7620_v26  ;;  %4839 = vmatprep.subr.bf16.mxu1 %v7622_v27  ;;  %v540_v26 = vld [vmem:[#allocation6 + $0xe58] sm:$0xff]  ;;  %v7955_v27 = vcombine.low %v467_v14, %v491_v15  ;;  %v8004_v29 = vcombine.high %v515_v23, %v539_v24 }
  0x7d   :  { %4828 = vmatprep.mubr.bf16.mxu0 %v8535_v3  ;;  %4869 = vmatprep.mubr.bf16.mxu1 %v8535_v3  ;;  %v8006_v30 = vcombine.high %v516_v25, %v540_v26  ;;  %v8005_v34 = vcombine.low %v516_v25, %v540_v26  ;;  %v133_v26 = vld [vmem:[#allocation6 + $0x1a0] sm:$0xff] }
  0x7f   :  { %4799 = vmatpush1.bf16.msra.mxu0 %v7619_v56  ;;  %4840 = vmatpush1.bf16.msra.mxu1 %v7621_v59  ;;  %v587_v56 = vld [vmem:[#allocation6 + $0xfd0] sm:$0xff]  ;;  %v564_v59 = vld [vmem:[#allocation6 + $0xf18] sm:$0xff] }
  0x80   :  { %4800 = vmatprep.subr.bf16.mxu0 %v7668_v32  ;;  %4841 = vmatprep.subr.bf16.mxu1 %v7670_v33  ;;  %v588_v32 = vld [vmem:[#allocation6 + $0xfd8] sm:$0xff]  ;;  %v8003_v33 = vcombine.low %v515_v23, %v539_v24  ;;  %v8052_v35 = vcombine.high %v563_v31, %v587_v56 }
  0x81   :  { %v8054_v36 = vcombine.high %v564_v59, %v588_v32  ;;  %v8053_v42 = vcombine.low %v564_v59, %v588_v32  ;;  %v181_v32 = vld [vmem:[#allocation6 + $0x320] sm:$0xff] }
  0x83   :  { %4801 = vmatpush1.bf16.msra.mxu0 %v7667_v38  ;;  %4842 = vmatpush1.bf16.msra.mxu1 %v7669_v39  ;;  %v635_v38 = vld [vmem:[#allocation6 + $0x1150] sm:$0xff]  ;;  %v612_v39 = vld [vmem:[#allocation6 + $0x1098] sm:$0xff] }
  0x84   :  { %4802 = vmatprep.subr.bf16.mxu0 %v7716_v40  ;;  %4843 = vmatprep.subr.bf16.mxu1 %v7718_v41  ;;  %v636_v40 = vld [vmem:[#allocation6 + $0x1158] sm:$0xff]  ;;  %v8051_v41 = vcombine.low %v563_v31, %v587_v56  ;;  %v8100_v43 = vcombine.high %v611_v37, %v635_v38 }
  0x85   :  { %v8102_v44 = vcombine.high %v612_v39, %v636_v40  ;;  %v8101_v51 = vcombine.low %v612_v39, %v636_v40  ;;  %v229_v40 = vld [vmem:[#allocation6 + $0x4a0] sm:$0xff] }
  0x87   :  { %4803 = vmatpush1.bf16.msra.mxu0 %v7715_v46  ;;  %4844 = vmatpush1.bf16.msra.mxu1 %v7717_v48  ;;  %v683_v46 = vld [vmem:[#allocation6 + $0x12d0] sm:$0xff]  ;;  %v660_v48 = vld [vmem:[#allocation6 + $0x1218] sm:$0xff] }
  0x88   :  { %4804 = vmatprep.subr.bf16.mxu0 %v7764_v49  ;;  %4845 = vmatprep.subr.bf16.mxu1 %v7766_v50  ;;  %v684_v49 = vld [vmem:[#allocation6 + $0x12d8] sm:$0xff]  ;;  %v8099_v50 = vcombine.low %v611_v37, %v635_v38  ;;  %v8148_v52 = vcombine.high %v659_v45, %v683_v46 }
  0x89   :  { %v8150_v53 = vcombine.high %v660_v48, %v684_v49  ;;  %v8149_v61 = vcombine.low %v660_v48, %v684_v49  ;;  %v277_v49 = vld [vmem:[#allocation6 + $0x620] sm:$0xff] }
  0x8b   :  { %4805 = vmatpush1.bf16.msra.mxu0 %v7763_v55  ;;  %4846 = vmatpush1.bf16.msra.mxu1 %v7765_v57  ;;  %v731_v55 = vld [vmem:[#allocation6 + $0x1450] sm:$0xff]  ;;  %v708_v57 = vld [vmem:[#allocation6 + $0x1398] sm:$0xff] }
  0x8c   :  { %4806 = vmatprep.subr.bf16.mxu0 %v7812_v58  ;;  %4847 = vmatprep.subr.bf16.mxu1 %v7814_v60  ;;  %v732_v58 = vld [vmem:[#allocation6 + $0x1458] sm:$0xff]  ;;  %v8147_v60 = vcombine.low %v659_v45, %v683_v46  ;;  %v8196_v62 = vcombine.high %v707_v54, %v731_v55 }
  0x8d   :  { %v8198_v63 = vcombine.high %v708_v57, %v732_v58  ;;  %v8197_v6 = vcombine.low %v708_v57, %v732_v58  ;;  %v325_v58 = vld [vmem:[#allocation6 + $0x7a0] sm:$0xff] }
  0x8f   :  { %4807 = vmatpush1.bf16.msra.mxu0 %v7811_v1  ;;  %4848 = vmatpush1.bf16.msra.mxu1 %v7813_v2  ;;  %v779_v1 = vld [vmem:[#allocation6 + $0x15d0] sm:$0xff]  ;;  %v756_v2 = vld [vmem:[#allocation6 + $0x1518] sm:$0xff] }
  0x90   :  { %4808 = vmatprep.subr.bf16.mxu0 %v7860_v4  ;;  %4849 = vmatprep.subr.bf16.mxu1 %v7862_v5  ;;  %v780_v4 = vld [vmem:[#allocation6 + $0x15d8] sm:$0xff]  ;;  %v8195_v5 = vcombine.low %v707_v54, %v731_v55  ;;  %v8244_v7 = vcombine.high %v755_v0, %v779_v1 }
  0x91   :  { %v8246_v8 = vcombine.high %v756_v2, %v780_v4  ;;  %v8245_v14 = vcombine.low %v756_v2, %v780_v4  ;;  %v373_v4 = vld [vmem:[#allocation6 + $0x920] sm:$0xff] }
  0x93   :  { %4809 = vmatpush1.bf16.msra.mxu0 %v7859_v10  ;;  %4850 = vmatpush1.bf16.msra.mxu1 %v7861_v11  ;;  %v827_v10 = vld [vmem:[#allocation6 + $0x1750] sm:$0xff]  ;;  %v804_v11 = vld [vmem:[#allocation6 + $0x1698] sm:$0xff] }
  0x94   :  { %4810 = vmatprep.subr.bf16.mxu0 %v7908_v12  ;;  %4851 = vmatprep.subr.bf16.mxu1 %v7910_v13  ;;  %v828_v12 = vld [vmem:[#allocation6 + $0x1758] sm:$0xff]  ;;  %v8243_v13 = vcombine.low %v755_v0, %v779_v1  ;;  %v8292_v15 = vcombine.high %v803_v9, %v827_v10 }
  0x95   :  { %v8294_v16 = vcombine.high %v804_v11, %v828_v12  ;;  %v8293_v23 = vcombine.low %v804_v11, %v828_v12  ;;  %v421_v12 = vld [vmem:[#allocation6 + $0xaa0] sm:$0xff] }
  0x97   :  { %4811 = vmatpush1.bf16.msra.mxu0 %v7907_v18  ;;  %4852 = vmatpush1.bf16.msra.mxu1 %v7909_v19  ;;  %v109_v18 = vld [vmem:[#allocation6 + $0xe0] sm:$0xff]  ;;  %v86_v19 = vld [vmem:[#allocation6 + $0x28] sm:$0xff] }
  0x98   :  { %4812 = vmatprep.subr.bf16.mxu0 %v7956_v20  ;;  %4853 = vmatprep.subr.bf16.mxu1 %v7958_v22  ;;  %v110_v20 = vld [vmem:[#allocation6 + $0xe8] sm:$0xff]  ;;  %v8291_v22 = vcombine.low %v803_v9, %v827_v10  ;;  %v7576_v24 = vcombine.high %v85_v17, %v109_v18 }
  0x99   :  { %v7578_v25 = vcombine.high %v86_v19, %v110_v20  ;;  %v7577_v31 = vcombine.low %v86_v19, %v110_v20  ;;  %v469_v20 = vld [vmem:[#allocation6 + $0xc20] sm:$0xff] }
  0x9b   :  { %4813 = vmatpush1.bf16.msra.mxu0 %v7955_v27  ;;  %4854 = vmatpush1.bf16.msra.mxu1 %v7957_v28  ;;  %v157_v27 = vld [vmem:[#allocation6 + $0x260] sm:$0xff]  ;;  %v134_v28 = vld [vmem:[#allocation6 + $0x1a8] sm:$0xff] }
  0x9c   :  { %4814 = vmatprep.subr.bf16.mxu0 %v8004_v29  ;;  %4855 = vmatprep.subr.bf16.mxu1 %v8006_v30  ;;  %v158_v29 = vld [vmem:[#allocation6 + $0x268] sm:$0xff]  ;;  %v7575_v30 = vcombine.low %v85_v17, %v109_v18  ;;  %v7624_v56 = vcombine.high %v133_v26, %v157_v27 }
  0x9d   :  { %v7626_v59 = vcombine.high %v134_v28, %v158_v29  ;;  %v7625_v37 = vcombine.low %v134_v28, %v158_v29  ;;  %v517_v29 = vld [vmem:[#allocation6 + $0xda0] sm:$0xff] }
  0x9f   :  { %4815 = vmatpush1.bf16.msra.mxu0 %v8003_v33  ;;  %4856 = vmatpush1.bf16.msra.mxu1 %v8005_v34  ;;  %v205_v33 = vld [vmem:[#allocation6 + $0x3e0] sm:$0xff]  ;;  %v182_v34 = vld [vmem:[#allocation6 + $0x328] sm:$0xff] }
  0xa0   :  { %4816 = vmatprep.subr.bf16.mxu0 %v8052_v35  ;;  %4857 = vmatprep.subr.bf16.mxu1 %v8054_v36  ;;  %v206_v35 = vld [vmem:[#allocation6 + $0x3e8] sm:$0xff]  ;;  %v7623_v36 = vcombine.low %v133_v26, %v157_v27  ;;  %v7672_v38 = vcombine.high %v181_v32, %v205_v33 }
  0xa1   :  { %v7674_v39 = vcombine.high %v182_v34, %v206_v35  ;;  %v7673_v45 = vcombine.low %v182_v34, %v206_v35  ;;  %v565_v35 = vld [vmem:[#allocation6 + $0xf20] sm:$0xff] }
  0xa3   :  { %4817 = vmatpush1.bf16.msra.mxu0 %v8051_v41  ;;  %4858 = vmatpush1.bf16.msra.mxu1 %v8053_v42  ;;  %v253_v41 = vld [vmem:[#allocation6 + $0x560] sm:$0xff]  ;;  %v230_v42 = vld [vmem:[#allocation6 + $0x4a8] sm:$0xff] }
  0xa4   :  { %4818 = vmatprep.subr.bf16.mxu0 %v8100_v43  ;;  %4859 = vmatprep.subr.bf16.mxu1 %v8102_v44  ;;  %v254_v43 = vld [vmem:[#allocation6 + $0x568] sm:$0xff]  ;;  %v7671_v44 = vcombine.low %v181_v32, %v205_v33  ;;  %v7720_v46 = vcombine.high %v229_v40, %v253_v41 }
  0xa5   :  { %v7722_v48 = vcombine.high %v230_v42, %v254_v43  ;;  %v7721_v54 = vcombine.low %v230_v42, %v254_v43  ;;  %v613_v43 = vld [vmem:[#allocation6 + $0x10a0] sm:$0xff] }
  0xa7   :  { %4819 = vmatpush1.bf16.msra.mxu0 %v8099_v50  ;;  %4860 = vmatpush1.bf16.msra.mxu1 %v8101_v51  ;;  %v301_v50 = vld [vmem:[#allocation6 + $0x6e0] sm:$0xff]  ;;  %v278_v51 = vld [vmem:[#allocation6 + $0x628] sm:$0xff] }
  0xa8   :  { %4820 = vmatprep.subr.bf16.mxu0 %v8148_v52  ;;  %4861 = vmatprep.subr.bf16.mxu1 %v8150_v53  ;;  %v302_v52 = vld [vmem:[#allocation6 + $0x6e8] sm:$0xff]  ;;  %v7719_v53 = vcombine.low %v229_v40, %v253_v41  ;;  %v7768_v55 = vcombine.high %v277_v49, %v301_v50 }
  0xa9   :  { %v7770_v57 = vcombine.high %v278_v51, %v302_v52  ;;  %v7769_v0 = vcombine.low %v278_v51, %v302_v52  ;;  %v661_v52 = vld [vmem:[#allocation6 + $0x1220] sm:$0xff] }
  0xab   :  { %4821 = vmatpush1.bf16.msra.mxu0 %v8147_v60  ;;  %4862 = vmatpush1.bf16.msra.mxu1 %v8149_v61  ;;  %v349_v60 = vld [vmem:[#allocation6 + $0x860] sm:$0xff]  ;;  %v326_v61 = vld [vmem:[#allocation6 + $0x7a8] sm:$0xff] }
  0xac   :  { %4822 = vmatprep.subr.bf16.mxu0 %v8196_v62  ;;  %4863 = vmatprep.subr.bf16.mxu1 %v8198_v63  ;;  %v350_v62 = vld [vmem:[#allocation6 + $0x868] sm:$0xff]  ;;  %v7767_v63 = vcombine.low %v277_v49, %v301_v50  ;;  %v7816_v1 = vcombine.high %v325_v58, %v349_v60 }
  0xad   :  { %v7818_v2 = vcombine.high %v326_v61, %v350_v62  ;;  %v7817_v9 = vcombine.low %v326_v61, %v350_v62  ;;  %v709_v62 = vld [vmem:[#allocation6 + $0x13a0] sm:$0xff] }
  0xaf   :  { %4823 = vmatpush1.bf16.msra.mxu0 %v8195_v5  ;;  %4864 = vmatpush1.bf16.msra.mxu1 %v8197_v6  ;;  %v397_v5 = vld [vmem:[#allocation6 + $0x9e0] sm:$0xff]  ;;  %v374_v6 = vld [vmem:[#allocation6 + $0x928] sm:$0xff] }
  0xb0   :  { %4824 = vmatprep.subr.bf16.mxu0 %v8244_v7  ;;  %4865 = vmatprep.subr.bf16.mxu1 %v8246_v8  ;;  %v398_v7 = vld [vmem:[#allocation6 + $0x9e8] sm:$0xff]  ;;  %v7815_v8 = vcombine.low %v325_v58, %v349_v60  ;;  %v7864_v10 = vcombine.high %v373_v4, %v397_v5 }
  0xb1   :  { %v7866_v11 = vcombine.high %v374_v6, %v398_v7  ;;  %v7865_v17 = vcombine.low %v374_v6, %v398_v7  ;;  %v757_v7 = vld [vmem:[#allocation6 + $0x1520] sm:$0xff] }
  0xb3   :  { %4825 = vmatpush1.bf16.msra.mxu0 %v8243_v13  ;;  %4866 = vmatpush1.bf16.msra.mxu1 %v8245_v14  ;;  %v445_v13 = vld [vmem:[#allocation6 + $0xb60] sm:$0xff]  ;;  %v422_v14 = vld [vmem:[#allocation6 + $0xaa8] sm:$0xff] }
  0xb4   :  { %4826 = vmatprep.subr.bf16.mxu0 %v8292_v15  ;;  %4867 = vmatprep.subr.bf16.mxu1 %v8294_v16  ;;  %v446_v15 = vld [vmem:[#allocation6 + $0xb68] sm:$0xff]  ;;  %v7863_v16 = vcombine.low %v373_v4, %v397_v5  ;;  %v7912_v18 = vcombine.high %v421_v12, %v445_v13 }
  0xb5   :  { %v7914_v19 = vcombine.high %v422_v14, %v446_v15  ;;  %v7913_v26 = vcombine.low %v422_v14, %v446_v15  ;;  %v805_v15 = vld [vmem:[#allocation6 + $0x16a0] sm:$0xff] }
  0xb7   :  { %4827 = vmatpush1.bf16.msra.mxu0 %v8291_v22  ;;  %4868 = vmatpush1.bf16.msra.mxu1 %v8293_v23  ;;  %v493_v22 = vld [vmem:[#allocation6 + $0xce0] sm:$0xff]  ;;  %v470_v23 = vld [vmem:[#allocation6 + $0xc28] sm:$0xff] }
  0xb8   :  { %4878 = vmatprep.subr.bf16.mxu0 %v7576_v24  ;;  %4919 = vmatprep.subr.bf16.mxu1 %v7578_v25  ;;  %v494_v24 = vld [vmem:[#allocation6 + $0xce8] sm:$0xff]  ;;  %v7911_v25 = vcombine.low %v421_v12, %v445_v13  ;;  %v7960_v27 = vcombine.high %v469_v20, %v493_v22 }
  0xb9   :  { %v7962_v28 = vcombine.high %v470_v23, %v494_v24  ;;  %v7961_v32 = vcombine.low %v470_v23, %v494_v24  ;;  %v87_v24 = vld [vmem:[#allocation6 + $0x30] sm:$0xff] }
  0xba   :  { %4829 = vmatmul.mubr.bf16.vlgmr.msra.gmra.mrb[4].mxu0 %v8541_v21  ;;  %4870 = vmatmul.mubr.bf16.vlgmr.msra.gmra.mrb[4].mxu1 %v8541_v21 }
  0xbb   :  { %4879 = vmatpush1.bf16.msra.mxu0 %v7575_v30  ;;  %4920 = vmatpush1.bf16.msra.mxu1 %v7577_v31  ;;  %v541_v30 = vld [vmem:[#allocation6 + $0xe60] sm:$0xff]  ;;  %v518_v31 = vld [vmem:[#allocation6 + $0xda8] sm:$0xff] }
  0xbc   :  { %4880 = vmatprep.subr.bf16.mxu0 %v7624_v56  ;;  %4921 = vmatprep.subr.bf16.mxu1 %v7626_v59  ;;  %v542_v56 = vld [vmem:[#allocation6 + $0xe68] sm:$0xff]  ;;  %v7959_v59 = vcombine.low %v469_v20, %v493_v22  ;;  %v8008_v33 = vcombine.high %v517_v29, %v541_v30 }
  0xbd   :  { %4910 = vmatprep.mubr.bf16.mxu0 %v8535_v3  ;;  %4951 = vmatprep.mubr.bf16.mxu1 %v8535_v3  ;;  %v8010_v34 = vcombine.high %v518_v31, %v542_v56  ;;  %v8009_v40 = vcombine.low %v518_v31, %v542_v56  ;;  %v135_v56 = vld [vmem:[#allocation6 + $0x1b0] sm:$0xff] }
  0xbf   :  { %4881 = vmatpush1.bf16.msra.mxu0 %v7623_v36  ;;  %4922 = vmatpush1.bf16.msra.mxu1 %v7625_v37  ;;  %v589_v36 = vld [vmem:[#allocation6 + $0xfe0] sm:$0xff]  ;;  %v566_v37 = vld [vmem:[#allocation6 + $0xf28] sm:$0xff] }
  0xc0   :  { %4882 = vmatprep.subr.bf16.mxu0 %v7672_v38  ;;  %4923 = vmatprep.subr.bf16.mxu1 %v7674_v39  ;;  %v590_v38 = vld [vmem:[#allocation6 + $0xfe8] sm:$0xff]  ;;  %v8007_v39 = vcombine.low %v517_v29, %v541_v30  ;;  %v8056_v41 = vcombine.high %v565_v35, %v589_v36 }
  0xc1   :  { %v8058_v42 = vcombine.high %v566_v37, %v590_v38  ;;  %v8057_v49 = vcombine.low %v566_v37, %v590_v38  ;;  %v183_v38 = vld [vmem:[#allocation6 + $0x330] sm:$0xff] }
  0xc3   :  { %4883 = vmatpush1.bf16.msra.mxu0 %v7671_v44  ;;  %4924 = vmatpush1.bf16.msra.mxu1 %v7673_v45  ;;  %v637_v44 = vld [vmem:[#allocation6 + $0x1160] sm:$0xff]  ;;  %v614_v45 = vld [vmem:[#allocation6 + $0x10a8] sm:$0xff] }
  0xc4   :  { %4884 = vmatprep.subr.bf16.mxu0 %v7720_v46  ;;  %4925 = vmatprep.subr.bf16.mxu1 %v7722_v48  ;;  %v638_v46 = vld [vmem:[#allocation6 + $0x1168] sm:$0xff]  ;;  %v8055_v48 = vcombine.low %v565_v35, %v589_v36  ;;  %v8104_v50 = vcombine.high %v613_v43, %v637_v44 }
  0xc5   :  { %v8106_v51 = vcombine.high %v614_v45, %v638_v46  ;;  %v8105_v58 = vcombine.low %v614_v45, %v638_v46  ;;  %v231_v46 = vld [vmem:[#allocation6 + $0x4b0] sm:$0xff] }
  0xc7   :  { %4885 = vmatpush1.bf16.msra.mxu0 %v7719_v53  ;;  %4926 = vmatpush1.bf16.msra.mxu1 %v7721_v54  ;;  %v685_v53 = vld [vmem:[#allocation6 + $0x12e0] sm:$0xff]  ;;  %v662_v54 = vld [vmem:[#allocation6 + $0x1228] sm:$0xff] }
  0xc8   :  { %4886 = vmatprep.subr.bf16.mxu0 %v7768_v55  ;;  %4927 = vmatprep.subr.bf16.mxu1 %v7770_v57  ;;  %v686_v55 = vld [vmem:[#allocation6 + $0x12e8] sm:$0xff]  ;;  %v8103_v57 = vcombine.low %v613_v43, %v637_v44  ;;  %v8152_v60 = vcombine.high %v661_v52, %v685_v53 }
  0xc9   :  { %v8154_v61 = vcombine.high %v662_v54, %v686_v55  ;;  %v8153_v4 = vcombine.low %v662_v54, %v686_v55  ;;  %v279_v55 = vld [vmem:[#allocation6 + $0x630] sm:$0xff] }
  0xcb   :  { %4887 = vmatpush1.bf16.msra.mxu0 %v7767_v63  ;;  %4928 = vmatpush1.bf16.msra.mxu1 %v7769_v0  ;;  %v733_v63 = vld [vmem:[#allocation6 + $0x1460] sm:$0xff]  ;;  %v710_v0 = vld [vmem:[#allocation6 + $0x13a8] sm:$0xff] }
  0xcc   :  { %4888 = vmatprep.subr.bf16.mxu0 %v7816_v1  ;;  %4929 = vmatprep.subr.bf16.mxu1 %v7818_v2  ;;  %v734_v1 = vld [vmem:[#allocation6 + $0x1468] sm:$0xff]  ;;  %v8151_v2 = vcombine.low %v661_v52, %v685_v53  ;;  %v8200_v5 = vcombine.high %v709_v62, %v733_v63 }
  0xcd   :  { %v8202_v6 = vcombine.high %v710_v0, %v734_v1  ;;  %v8201_v12 = vcombine.low %v710_v0, %v734_v1  ;;  %v327_v1 = vld [vmem:[#allocation6 + $0x7b0] sm:$0xff] }
  0xcf   :  { %4889 = vmatpush1.bf16.msra.mxu0 %v7815_v8  ;;  %4930 = vmatpush1.bf16.msra.mxu1 %v7817_v9  ;;  %v781_v8 = vld [vmem:[#allocation6 + $0x15e0] sm:$0xff]  ;;  %v758_v9 = vld [vmem:[#allocation6 + $0x1528] sm:$0xff] }
  0xd0   :  { %4890 = vmatprep.subr.bf16.mxu0 %v7864_v10  ;;  %4931 = vmatprep.subr.bf16.mxu1 %v7866_v11  ;;  %v782_v10 = vld [vmem:[#allocation6 + $0x15e8] sm:$0xff]  ;;  %v8199_v11 = vcombine.low %v709_v62, %v733_v63  ;;  %v8248_v13 = vcombine.high %v757_v7, %v781_v8 }
  0xd1   :  { %v8250_v14 = vcombine.high %v758_v9, %v782_v10  ;;  %v8249_v20 = vcombine.low %v758_v9, %v782_v10  ;;  %v375_v10 = vld [vmem:[#allocation6 + $0x930] sm:$0xff] }
  0xd3   :  { %4891 = vmatpush1.bf16.msra.mxu0 %v7863_v16  ;;  %4932 = vmatpush1.bf16.msra.mxu1 %v7865_v17  ;;  %v829_v16 = vld [vmem:[#allocation6 + $0x1760] sm:$0xff]  ;;  %v806_v17 = vld [vmem:[#allocation6 + $0x16a8] sm:$0xff] }
  0xd4   :  { %4892 = vmatprep.subr.bf16.mxu0 %v7912_v18  ;;  %4933 = vmatprep.subr.bf16.mxu1 %v7914_v19  ;;  %v830_v18 = vld [vmem:[#allocation6 + $0x1768] sm:$0xff]  ;;  %v8247_v19 = vcombine.low %v757_v7, %v781_v8  ;;  %v8296_v22 = vcombine.high %v805_v15, %v829_v16 }
  0xd5   :  { %v8298_v23 = vcombine.high %v806_v17, %v830_v18  ;;  %v8297_v29 = vcombine.low %v806_v17, %v830_v18  ;;  %v423_v18 = vld [vmem:[#allocation6 + $0xab0] sm:$0xff] }
  0xd7   :  { %4893 = vmatpush1.bf16.msra.mxu0 %v7911_v25  ;;  %4934 = vmatpush1.bf16.msra.mxu1 %v7913_v26  ;;  %v111_v25 = vld [vmem:[#allocation6 + $0xf0] sm:$0xff]  ;;  %v88_v26 = vld [vmem:[#allocation6 + $0x38] sm:$0xff] }
  0xd8   :  { %4894 = vmatprep.subr.bf16.mxu0 %v7960_v27  ;;  %4935 = vmatprep.subr.bf16.mxu1 %v7962_v28  ;;  %v112_v27 = vld [vmem:[#allocation6 + $0xf8] sm:$0xff]  ;;  %v8295_v28 = vcombine.low %v805_v15, %v829_v16  ;;  %v7580_v30 = vcombine.high %v87_v24, %v111_v25 }
  0xd9   :  { %v7582_v31 = vcombine.high %v88_v26, %v112_v27  ;;  %v7581_v35 = vcombine.low %v88_v26, %v112_v27  ;;  %v471_v27 = vld [vmem:[#allocation6 + $0xc30] sm:$0xff] }
  0xdb   :  { %4895 = vmatpush1.bf16.msra.mxu0 %v7959_v59  ;;  %4936 = vmatpush1.bf16.msra.mxu1 %v7961_v32  ;;  %v159_v59 = vld [vmem:[#allocation6 + $0x270] sm:$0xff]  ;;  %v136_v32 = vld [vmem:[#allocation6 + $0x1b8] sm:$0xff] }
  0xdc   :  { %4896 = vmatprep.subr.bf16.mxu0 %v8008_v33  ;;  %4937 = vmatprep.subr.bf16.mxu1 %v8010_v34  ;;  %v160_v33 = vld [vmem:[#allocation6 + $0x278] sm:$0xff]  ;;  %v7579_v34 = vcombine.low %v87_v24, %v111_v25  ;;  %v7628_v36 = vcombine.high %v135_v56, %v159_v59 }
  0xdd   :  { %v7630_v37 = vcombine.high %v136_v32, %v160_v33  ;;  %v7629_v43 = vcombine.low %v136_v32, %v160_v33  ;;  %v519_v33 = vld [vmem:[#allocation6 + $0xdb0] sm:$0xff] }
  0xdf   :  { %4897 = vmatpush1.bf16.msra.mxu0 %v8007_v39  ;;  %4938 = vmatpush1.bf16.msra.mxu1 %v8009_v40  ;;  %v207_v39 = vld [vmem:[#allocation6 + $0x3f0] sm:$0xff]  ;;  %v184_v40 = vld [vmem:[#allocation6 + $0x338] sm:$0xff] }
  0xe0   :  { %4898 = vmatprep.subr.bf16.mxu0 %v8056_v41  ;;  %4939 = vmatprep.subr.bf16.mxu1 %v8058_v42  ;;  %v208_v41 = vld [vmem:[#allocation6 + $0x3f8] sm:$0xff]  ;;  %v7627_v42 = vcombine.low %v135_v56, %v159_v59  ;;  %v7676_v44 = vcombine.high %v183_v38, %v207_v39 }
  0xe1   :  { %v7678_v45 = vcombine.high %v184_v40, %v208_v41  ;;  %v7677_v52 = vcombine.low %v184_v40, %v208_v41  ;;  %v567_v41 = vld [vmem:[#allocation6 + $0xf30] sm:$0xff] }
  0xe3   :  { %4899 = vmatpush1.bf16.msra.mxu0 %v8055_v48  ;;  %4940 = vmatpush1.bf16.msra.mxu1 %v8057_v49  ;;  %v255_v48 = vld [vmem:[#allocation6 + $0x570] sm:$0xff]  ;;  %v232_v49 = vld [vmem:[#allocation6 + $0x4b8] sm:$0xff] }
  0xe4   :  { %4900 = vmatprep.subr.bf16.mxu0 %v8104_v50  ;;  %4941 = vmatprep.subr.bf16.mxu1 %v8106_v51  ;;  %v256_v50 = vld [vmem:[#allocation6 + $0x578] sm:$0xff]  ;;  %v7675_v51 = vcombine.low %v183_v38, %v207_v39  ;;  %v7724_v53 = vcombine.high %v231_v46, %v255_v48 }
  0xe5   :  { %v7726_v54 = vcombine.high %v232_v49, %v256_v50  ;;  %v7725_v62 = vcombine.low %v232_v49, %v256_v50  ;;  %v615_v50 = vld [vmem:[#allocation6 + $0x10b0] sm:$0xff] }
  0xe7   :  { %4901 = vmatpush1.bf16.msra.mxu0 %v8103_v57  ;;  %4942 = vmatpush1.bf16.msra.mxu1 %v8105_v58  ;;  %v303_v57 = vld [vmem:[#allocation6 + $0x6f0] sm:$0xff]  ;;  %v280_v58 = vld [vmem:[#allocation6 + $0x638] sm:$0xff] }
  0xe8   :  { %4902 = vmatprep.subr.bf16.mxu0 %v8152_v60  ;;  %4943 = vmatprep.subr.bf16.mxu1 %v8154_v61  ;;  %v304_v60 = vld [vmem:[#allocation6 + $0x6f8] sm:$0xff]  ;;  %v7723_v61 = vcombine.low %v231_v46, %v255_v48  ;;  %v7772_v63 = vcombine.high %v279_v55, %v303_v57 }
  0xe9   :  { %v7774_v0 = vcombine.high %v280_v58, %v304_v60  ;;  %v7773_v7 = vcombine.low %v280_v58, %v304_v60  ;;  %v663_v60 = vld [vmem:[#allocation6 + $0x1230] sm:$0xff] }
  0xeb   :  { %4903 = vmatpush1.bf16.msra.mxu0 %v8151_v2  ;;  %4944 = vmatpush1.bf16.msra.mxu1 %v8153_v4  ;;  %v351_v2 = vld [vmem:[#allocation6 + $0x870] sm:$0xff]  ;;  %v328_v4 = vld [vmem:[#allocation6 + $0x7b8] sm:$0xff] }
  0xec   :  { %4904 = vmatprep.subr.bf16.mxu0 %v8200_v5  ;;  %4945 = vmatprep.subr.bf16.mxu1 %v8202_v6  ;;  %v352_v5 = vld [vmem:[#allocation6 + $0x878] sm:$0xff]  ;;  %v7771_v6 = vcombine.low %v279_v55, %v303_v57  ;;  %v7820_v8 = vcombine.high %v327_v1, %v351_v2 }
  0xed   :  { %v7822_v9 = vcombine.high %v328_v4, %v352_v5  ;;  %v7821_v15 = vcombine.low %v328_v4, %v352_v5  ;;  %v711_v5 = vld [vmem:[#allocation6 + $0x13b0] sm:$0xff] }
  0xef   :  { %4905 = vmatpush1.bf16.msra.mxu0 %v8199_v11  ;;  %4946 = vmatpush1.bf16.msra.mxu1 %v8201_v12  ;;  %v399_v11 = vld [vmem:[#allocation6 + $0x9f0] sm:$0xff]  ;;  %v376_v12 = vld [vmem:[#allocation6 + $0x938] sm:$0xff] }
  0xf0   :  { %4906 = vmatprep.subr.bf16.mxu0 %v8248_v13  ;;  %4947 = vmatprep.subr.bf16.mxu1 %v8250_v14  ;;  %v400_v13 = vld [vmem:[#allocation6 + $0x9f8] sm:$0xff]  ;;  %v7819_v14 = vcombine.low %v327_v1, %v351_v2  ;;  %v7868_v16 = vcombine.high %v375_v10, %v399_v11 }
  0xf1   :  { %v7870_v17 = vcombine.high %v376_v12, %v400_v13  ;;  %v7869_v24 = vcombine.low %v376_v12, %v400_v13  ;;  %v759_v13 = vld [vmem:[#allocation6 + $0x1530] sm:$0xff] }
  0xf3   :  { %4907 = vmatpush1.bf16.msra.mxu0 %v8247_v19  ;;  %4948 = vmatpush1.bf16.msra.mxu1 %v8249_v20  ;;  %v447_v19 = vld [vmem:[#allocation6 + $0xb70] sm:$0xff]  ;;  %v424_v20 = vld [vmem:[#allocation6 + $0xab8] sm:$0xff] }
  0xf4   :  { %4908 = vmatprep.subr.bf16.mxu0 %v8296_v22  ;;  %4949 = vmatprep.subr.bf16.mxu1 %v8298_v23  ;;  %v448_v22 = vld [vmem:[#allocation6 + $0xb78] sm:$0xff]  ;;  %v7867_v23 = vcombine.low %v375_v10, %v399_v11  ;;  %v7916_v25 = vcombine.high %v423_v18, %v447_v19 }
  0xf5   :  { %v7918_v26 = vcombine.high %v424_v20, %v448_v22  ;;  %v7917_v56 = vcombine.low %v424_v20, %v448_v22  ;;  %v807_v22 = vld [vmem:[#allocation6 + $0x16b0] sm:$0xff] }
  0xf7   :  { %4909 = vmatpush1.bf16.msra.mxu0 %v8295_v28  ;;  %4950 = vmatpush1.bf16.msra.mxu1 %v8297_v29  ;;  %v495_v28 = vld [vmem:[#allocation6 + $0xcf0] sm:$0xff]  ;;  %v472_v29 = vld [vmem:[#allocation6 + $0xc38] sm:$0xff] }
  0xf8   :  { %4960 = vmatprep.subr.bf16.mxu0 %v7580_v30  ;;  %5001 = vmatprep.subr.bf16.mxu1 %v7582_v31  ;;  %v496_v30 = vld [vmem:[#allocation6 + $0xcf8] sm:$0xff]  ;;  %v7915_v31 = vcombine.low %v423_v18, %v447_v19  ;;  %v7964_v59 = vcombine.high %v471_v27, %v495_v28 }
  0xf9   :  { %v7966_v32 = vcombine.high %v472_v29, %v496_v30  ;;  %v7965_v38 = vcombine.low %v472_v29, %v496_v30  ;;  %v89_v30 = vld [vmem:[#allocation6 + $0x40] sm:$0xff] }
  0xfa   :  { %4911 = vmatmul.mubr.bf16.vlgmr.msra.gmra.mrb[8].mxu0 %v8541_v21  ;;  %4952 = vmatmul.mubr.bf16.vlgmr.msra.gmra.mrb[8].mxu1 %v8541_v21 }
  0xfb   :  { %4961 = vmatpush1.bf16.msra.mxu0 %v7579_v34  ;;  %5002 = vmatpush1.bf16.msra.mxu1 %v7581_v35  ;;  %v543_v34 = vld [vmem:[#allocation6 + $0xe70] sm:$0xff]  ;;  %v520_v35 = vld [vmem:[#allocation6 + $0xdb8] sm:$0xff] }
  0xfc   :  { %4962 = vmatprep.subr.bf16.mxu0 %v7628_v36  ;;  %5003 = vmatprep.subr.bf16.mxu1 %v7630_v37  ;;  %v544_v36 = vld [vmem:[#allocation6 + $0xe78] sm:$0xff]  ;;  %v7963_v37 = vcombine.low %v471_v27, %v495_v28  ;;  %v8012_v39 = vcombine.high %v519_v33, %v543_v34 }
  0xfd   :  { %4992 = vmatprep.mubr.bf16.mxu0 %v8535_v3  ;;  %5033 = vmatprep.mubr.bf16.mxu1 %v8535_v3  ;;  %v8014_v40 = vcombine.high %v520_v35, %v544_v36  ;;  %v8013_v46 = vcombine.low %v520_v35, %v544_v36  ;;  %v137_v36 = vld [vmem:[#allocation6 + $0x1c0] sm:$0xff] }
  0xff   :  { %4963 = vmatpush1.bf16.msra.mxu0 %v7627_v42  ;;  %5004 = vmatpush1.bf16.msra.mxu1 %v7629_v43  ;;  %v591_v42 = vld [vmem:[#allocation6 + $0xff0] sm:$0xff]  ;;  %v568_v43 = vld [vmem:[#allocation6 + $0xf38] sm:$0xff] }
 0x100   :  { %4964 = vmatprep.subr.bf16.mxu0 %v7676_v44  ;;  %5005 = vmatprep.subr.bf16.mxu1 %v7678_v45  ;;  %v592_v44 = vld [vmem:[#allocation6 + $0xff8] sm:$0xff]  ;;  %v8011_v45 = vcombine.low %v519_v33, %v543_v34  ;;  %v8060_v48 = vcombine.high %v567_v41, %v591_v42 }
 0x101   :  { %v8062_v49 = vcombine.high %v568_v43, %v592_v44  ;;  %v8061_v55 = vcombine.low %v568_v43, %v592_v44  ;;  %v185_v44 = vld [vmem:[#allocation6 + $0x340] sm:$0xff] }
 0x103   :  { %4965 = vmatpush1.bf16.msra.mxu0 %v7675_v51  ;;  %5006 = vmatpush1.bf16.msra.mxu1 %v7677_v52  ;;  %v639_v51 = vld [vmem:[#allocation6 + $0x1170] sm:$0xff]  ;;  %v616_v52 = vld [vmem:[#allocation6 + $0x10b8] sm:$0xff] }
 0x104   :  { %4966 = vmatprep.subr.bf16.mxu0 %v7724_v53  ;;  %5007 = vmatprep.subr.bf16.mxu1 %v7726_v54  ;;  %v640_v53 = vld [vmem:[#allocation6 + $0x1178] sm:$0xff]  ;;  %v8059_v54 = vcombine.low %v567_v41, %v591_v42  ;;  %v8108_v57 = vcombine.high %v615_v50, %v639_v51 }
 0x105   :  { %v8110_v58 = vcombine.high %v616_v52, %v640_v53  ;;  %v8109_v1 = vcombine.low %v616_v52, %v640_v53  ;;  %v233_v53 = vld [vmem:[#allocation6 + $0x4c0] sm:$0xff] }
 0x107   :  { %4967 = vmatpush1.bf16.msra.mxu0 %v7723_v61  ;;  %5008 = vmatpush1.bf16.msra.mxu1 %v7725_v62  ;;  %v687_v61 = vld [vmem:[#allocation6 + $0x12f0] sm:$0xff]  ;;  %v664_v62 = vld [vmem:[#allocation6 + $0x1238] sm:$0xff] }
 0x108   :  { %4968 = vmatprep.subr.bf16.mxu0 %v7772_v63  ;;  %5009 = vmatprep.subr.bf16.mxu1 %v7774_v0  ;;  %v688_v63 = vld [vmem:[#allocation6 + $0x12f8] sm:$0xff]  ;;  %v8107_v0 = vcombine.low %v615_v50, %v639_v51  ;;  %v8156_v2 = vcombine.high %v663_v60, %v687_v61 }
 0x109   :  { %v8158_v4 = vcombine.high %v664_v62, %v688_v63  ;;  %v8157_v10 = vcombine.low %v664_v62, %v688_v63  ;;  %v281_v63 = vld [vmem:[#allocation6 + $0x640] sm:$0xff] }
 0x10b   :  { %4969 = vmatpush1.bf16.msra.mxu0 %v7771_v6  ;;  %5010 = vmatpush1.bf16.msra.mxu1 %v7773_v7  ;;  %v735_v6 = vld [vmem:[#allocation6 + $0x1470] sm:$0xff]  ;;  %v712_v7 = vld [vmem:[#allocation6 + $0x13b8] sm:$0xff] }
 0x10c   :  { %4970 = vmatprep.subr.bf16.mxu0 %v7820_v8  ;;  %5011 = vmatprep.subr.bf16.mxu1 %v7822_v9  ;;  %v736_v8 = vld [vmem:[#allocation6 + $0x1478] sm:$0xff]  ;;  %v8155_v9 = vcombine.low %v663_v60, %v687_v61  ;;  %v8204_v11 = vcombine.high %v711_v5, %v735_v6 }
 0x10d   :  { %v8206_v12 = vcombine.high %v712_v7, %v736_v8  ;;  %v8205_v18 = vcombine.low %v712_v7, %v736_v8  ;;  %v8467_v7 = vmov 1983009808  }
 0x10e   :  { %v5749_v8 = vunpack.c.l.s4 %v8467_v7 }
 0x10f   :  { %4971 = vmatpush1.bf16.msra.mxu0 %v7819_v14  ;;  %5012 = vmatpush1.bf16.msra.mxu1 %v7821_v15  ;;  %v783_v14 = vld [vmem:[#allocation6 + $0x15f0] sm:$0xff]  ;;  %v760_v15 = vld [vmem:[#allocation6 + $0x1538] sm:$0xff] }
 0x110   :  { %4972 = vmatprep.subr.bf16.mxu0 %v7868_v16  ;;  %5013 = vmatprep.subr.bf16.mxu1 %v7870_v17  ;;  %v784_v16 = vld [vmem:[#allocation6 + $0x15f8] sm:$0xff]  ;;  %v8203_v17 = vcombine.low %v711_v5, %v735_v6  ;;  %v8252_v19 = vcombine.high %v759_v13, %v783_v14 }
 0x111   :  { %v8254_v20 = vcombine.high %v760_v15, %v784_v16  ;;  %v8253_v27 = vcombine.low %v760_v15, %v784_v16 }
 0x113   :  { %4973 = vmatpush1.bf16.msra.mxu0 %v7867_v23  ;;  %5014 = vmatpush1.bf16.msra.mxu1 %v7869_v24  ;;  %v831_v23 = vld [vmem:[#allocation6 + $0x1770] sm:$0xff]  ;;  %v808_v24 = vld [vmem:[#allocation6 + $0x16b8] sm:$0xff] }
 0x114   :  { %4974 = vmatprep.subr.bf16.mxu0 %v7916_v25  ;;  %5015 = vmatprep.subr.bf16.mxu1 %v7918_v26  ;;  %v832_v25 = vld [vmem:[#allocation6 + $0x1778] sm:$0xff]  ;;  %v8251_v26 = vcombine.low %v759_v13, %v783_v14  ;;  %v8300_v28 = vcombine.high %v807_v22, %v831_v23  ;;  %v354_v13 = vld [vmem:[#allocation6 + $0x888] sm:$0xff] }
 0x115   :  { %v8302_v29 = vcombine.high %v808_v24, %v832_v25  ;;  %v8301_v33 = vcombine.low %v808_v24, %v832_v25 }
 0x117   :  { %4975 = vmatpush1.bf16.msra.mxu0 %v7915_v31  ;;  %5016 = vmatpush1.bf16.msra.mxu1 %v7917_v56  ;;  %v113_v31 = vld [vmem:[#allocation6 + $0x100] sm:$0xff]  ;;  %v90_v56 = vld [vmem:[#allocation6 + $0x48] sm:$0xff] }
 0x118   :  { %4976 = vmatprep.subr.bf16.mxu0 %v7964_v59  ;;  %5017 = vmatprep.subr.bf16.mxu1 %v7966_v32  ;;  %v114_v59 = vld [vmem:[#allocation6 + $0x108] sm:$0xff]  ;;  %v8299_v32 = vcombine.low %v807_v22, %v831_v23  ;;  %v7584_v34 = vcombine.high %v89_v30, %v113_v31 }
 0x119   :  { %v7586_v35 = vcombine.high %v90_v56, %v114_v59  ;;  %v7585_v41 = vcombine.low %v90_v56, %v114_v59  ;;  %v378_v22 = vld [vmem:[#allocation6 + $0x948] sm:$0xff] }
 0x11a   :  { %v402_v23 = vld [vmem:[#allocation6 + $0xa08] sm:$0xff] }
 0x11b   :  { %4977 = vmatpush1.bf16.msra.mxu0 %v7963_v37  ;;  %5018 = vmatpush1.bf16.msra.mxu1 %v7965_v38  ;;  %v161_v37 = vld [vmem:[#allocation6 + $0x280] sm:$0xff]  ;;  %v138_v38 = vld [vmem:[#allocation6 + $0x1c8] sm:$0xff] }
 0x11c   :  { %4978 = vmatprep.subr.bf16.mxu0 %v8012_v39  ;;  %5019 = vmatprep.subr.bf16.mxu1 %v8014_v40  ;;  %v162_v39 = vld [vmem:[#allocation6 + $0x288] sm:$0xff]  ;;  %v7583_v40 = vcombine.low %v89_v30, %v113_v31  ;;  %v7632_v42 = vcombine.high %v137_v36, %v161_v37  ;;  %v425_v30 = vld [vmem:[#allocation6 + $0xac0] sm:$0xff] }
 0x11d   :  { %v7634_v43 = vcombine.high %v138_v38, %v162_v39  ;;  %v7633_v50 = vcombine.low %v138_v38, %v162_v39  ;;  %v449_v31 = vld [vmem:[#allocation6 + $0xb80] sm:$0xff] }
 0x11f   :  { %4979 = vmatpush1.bf16.msra.mxu0 %v8011_v45  ;;  %5020 = vmatpush1.bf16.msra.mxu1 %v8013_v46  ;;  %v209_v45 = vld [vmem:[#allocation6 + $0x400] sm:$0xff]  ;;  %v186_v46 = vld [vmem:[#allocation6 + $0x348] sm:$0xff] }
 0x120   :  { %4980 = vmatprep.subr.bf16.mxu0 %v8060_v48  ;;  %5021 = vmatprep.subr.bf16.mxu1 %v8062_v49  ;;  %v210_v48 = vld [vmem:[#allocation6 + $0x408] sm:$0xff]  ;;  %v7631_v49 = vcombine.low %v137_v36, %v161_v37  ;;  %v7680_v51 = vcombine.high %v185_v44, %v209_v45 }
 0x121   :  { %v7682_v52 = vcombine.high %v186_v46, %v210_v48  ;;  %v7681_v60 = vcombine.low %v186_v46, %v210_v48  ;;  %v497_v46 = vld [vmem:[#allocation6 + $0xd00] sm:$0xff] }
 0x123   :  { %4981 = vmatpush1.bf16.msra.mxu0 %v8059_v54  ;;  %5022 = vmatpush1.bf16.msra.mxu1 %v8061_v55  ;;  %v257_v54 = vld [vmem:[#allocation6 + $0x580] sm:$0xff]  ;;  %v234_v55 = vld [vmem:[#allocation6 + $0x4c8] sm:$0xff] }
 0x124   :  { %4982 = vmatprep.subr.bf16.mxu0 %v8108_v57  ;;  %5023 = vmatprep.subr.bf16.mxu1 %v8110_v58  ;;  %v258_v57 = vld [vmem:[#allocation6 + $0x588] sm:$0xff]  ;;  %v7679_v58 = vcombine.low %v185_v44, %v209_v45  ;;  %v7728_v61 = vcombine.high %v233_v53, %v257_v54  ;;  %v473_v45 = vld [vmem:[#allocation6 + $0xc40] sm:$0xff] }
 0x125   :  { %v7730_v62 = vcombine.high %v234_v55, %v258_v57  ;;  %v7729_v5 = vcombine.low %v234_v55, %v258_v57  ;;  %v521_v57 = vld [vmem:[#allocation6 + $0xdc0] sm:$0xff] }
 0x127   :  { %4983 = vmatpush1.bf16.msra.mxu0 %v8107_v0  ;;  %5024 = vmatpush1.bf16.msra.mxu1 %v8109_v1  ;;  %v305_v0 = vld [vmem:[#allocation6 + $0x700] sm:$0xff]  ;;  %v282_v1 = vld [vmem:[#allocation6 + $0x648] sm:$0xff] }
 0x128   :  { %4984 = vmatprep.subr.bf16.mxu0 %v8156_v2  ;;  %5025 = vmatprep.subr.bf16.mxu1 %v8158_v4  ;;  %v306_v2 = vld [vmem:[#allocation6 + $0x708] sm:$0xff]  ;;  %v7727_v4 = vcombine.low %v233_v53, %v257_v54  ;;  %v7776_v6 = vcombine.high %v281_v63, %v305_v0  ;;  %v7775_v14 = vcombine.low %v281_v63, %v305_v0 }
 0x129   :  { %v7777_v15 = vcombine.low %v282_v1, %v306_v2  ;;  %v7968_v54 = vcombine.high %v473_v45, %v497_v46 }
 0x12b   :  { %4985 = vmatpush1.bf16.msra.mxu0 %v8155_v9  ;;  %5026 = vmatpush1.bf16.msra.mxu1 %v8157_v10  ;;  %v7778_v9 = vcombine.high %v282_v1, %v306_v2  ;;  %v329_v10 = vld [vmem:[#allocation6 + $0x7c0] sm:$0xff] }
 0x12c   :  { %4986 = vmatprep.subr.bf16.mxu0 %v8204_v11  ;;  %5027 = vmatprep.subr.bf16.mxu1 %v8206_v12  ;;  %v353_v11 = vld [vmem:[#allocation6 + $0x880] sm:$0xff]  ;;  %v330_v12 = vld [vmem:[#allocation6 + $0x7c8] sm:$0xff] }
 0x12d   :  { %v7824_v16 = vcombine.high %v329_v10, %v353_v11  ;;  %v7823_v24 = vcombine.low %v329_v10, %v353_v11  ;;  %v7825_v25 = vcombine.low %v330_v12, %v354_v13  ;;  %v569_v2 = vld [vmem:[#allocation6 + $0xf40] sm:$0xff] }
 0x12e   :  { %v617_v11 = vld [vmem:[#allocation6 + $0x10c0] sm:$0xff] }
 0x12f   :  { %4987 = vmatpush1.bf16.msra.mxu0 %v8203_v17  ;;  %5028 = vmatpush1.bf16.msra.mxu1 %v8205_v18  ;;  %v5750_v17 = vunpack.c.0.s8 %v5749_v8  ;;  %v7826_v18 = vcombine.high %v330_v12, %v354_v13  ;;  %v641_v12 = vld [vmem:[#allocation6 + $0x1180] sm:$0xff]  ;;  %v618_v13 = vld [vmem:[#allocation6 + $0x10c8] sm:$0xff] }
 0x130   :  { %4988 = vmatprep.subr.bf16.mxu0 %v8252_v19  ;;  %5029 = vmatprep.subr.bf16.mxu1 %v8254_v20  ;;  %v377_v19 = vld [vmem:[#allocation6 + $0x940] sm:$0xff] }
 0x131   :  { %v401_v20 = vld [vmem:[#allocation6 + $0xa00] sm:$0xff] }
 0x132   :  { %v7871_v37 = vcombine.low %v377_v19, %v401_v20 }
 0x133   :  { %4989 = vmatpush1.bf16.msra.mxu0 %v8251_v26  ;;  %5030 = vmatpush1.bf16.msra.mxu1 %v8253_v27  ;;  %v7872_v26 = vcombine.high %v377_v19, %v401_v20  ;;  %v8560_v27 = vsub.s32 %v5750_v17, %v8525_v47  ;;  %v7873_v47 = vcombine.low %v378_v22, %v402_v23  ;;  %v665_v19 = vld [vmem:[#allocation6 + $0x1240] sm:$0xff] }
 0x134   :  { %4990 = vmatprep.subr.bf16.mxu0 %v8300_v28  ;;  %5031 = vmatprep.subr.bf16.mxu1 %v8302_v29  ;;  %v7874_v29 = vcombine.high %v378_v22, %v402_v23  ;;  %v8112_v17 = vcombine.high %v617_v11, %v641_v12  ;;  %v689_v20 = vld [vmem:[#allocation6 + $0x1300] sm:$0xff]  ;;  %v666_v22 = vld [vmem:[#allocation6 + $0x1248] sm:$0xff] }
 0x135   :  { %v690_v23 = vld [vmem:[#allocation6 + $0x1308] sm:$0xff] }
 0x137   :  { %4991 = vmatpush1.bf16.msra.mxu0 %v8299_v32  ;;  %5032 = vmatpush1.bf16.msra.mxu1 %v8301_v33  ;;  %v426_v32 = vld [vmem:[#allocation6 + $0xac8] sm:$0xff] }
 0x138   :  { %5042 = vmatprep.subr.bf16.mxu0 %v7584_v34  ;;  %5083 = vmatprep.subr.bf16.mxu1 %v7586_v35  ;;  %v450_v33 = vld [vmem:[#allocation6 + $0xb88] sm:$0xff] }
 0x139   :  { %v7922_v44 = vcombine.high %v426_v32, %v450_v33  ;;  %v7921_v53 = vcombine.low %v426_v32, %v450_v33  ;;  %v8161_v32 = vcombine.low %v666_v22, %v690_v23 }
 0x13a   :  { %4993 = vmatmul.mubr.bf16.vlgmr.msra.gmra.mrb[12].mxu0 %v8541_v21  ;;  %5034 = vmatmul.mubr.bf16.vlgmr.msra.gmra.mrb[12].mxu1 %v8541_v21 }
 0x13b   :  { %5043 = vmatpush1.bf16.msra.mxu0 %v7583_v40  ;;  %5084 = vmatpush1.bf16.msra.mxu1 %v7585_v41  ;;  %v7920_v41 = vcombine.high %v425_v30, %v449_v31 }
 0x13c   :  { %5044 = vmatprep.subr.bf16.mxu0 %v7632_v42  ;;  %5085 = vmatprep.subr.bf16.mxu1 %v7634_v43 }
 0x13d   :  { %5074 = vmatprep.mubr.bf16.mxu0 %v8535_v3  ;;  %5115 = vmatprep.mubr.bf16.mxu1 %v8535_v3 }
 0x13f   :  { %5045 = vmatpush1.bf16.msra.mxu0 %v7631_v49  ;;  %5086 = vmatpush1.bf16.msra.mxu1 %v7633_v50  ;;  %v474_v49 = vld [vmem:[#allocation6 + $0xc48] sm:$0xff] }
 0x140   :  { %5046 = vmatprep.subr.bf16.mxu0 %v7680_v51  ;;  %5087 = vmatprep.subr.bf16.mxu1 %v7682_v52  ;;  %v498_v50 = vld [vmem:[#allocation6 + $0xd08] sm:$0xff]  ;;  %v7919_v51 = vcombine.low %v425_v30, %v449_v31  ;;  %v737_v30 = vld [vmem:[#allocation6 + $0x1480] sm:$0xff] }
 0x141   :  { %v7970_v55 = vcombine.high %v474_v49, %v498_v50  ;;  %v7969_v63 = vcombine.low %v474_v49, %v498_v50  ;;  %v714_v31 = vld [vmem:[#allocation6 + $0x13c8] sm:$0xff] }
 0x143   :  { %5047 = vmatpush1.bf16.msra.mxu0 %v7679_v58  ;;  %5088 = vmatpush1.bf16.msra.mxu1 %v7681_v60  ;;  %v545_v58 = vld [vmem:[#allocation6 + $0xe80] sm:$0xff]  ;;  %v522_v60 = vld [vmem:[#allocation6 + $0xdc8] sm:$0xff] }
 0x144   :  { %5048 = vmatprep.subr.bf16.mxu0 %v7728_v61  ;;  %5089 = vmatprep.subr.bf16.mxu1 %v7730_v62  ;;  %v546_v61 = vld [vmem:[#allocation6 + $0xe88] sm:$0xff]  ;;  %v7967_v62 = vcombine.low %v473_v45, %v497_v46  ;;  %v8016_v0 = vcombine.high %v521_v57, %v545_v58  ;;  %v8015_v7 = vcombine.low %v521_v57, %v545_v58 }
 0x145   :  { %v8018_v1 = vcombine.high %v522_v60, %v546_v61  ;;  %v8017_v8 = vcombine.low %v522_v60, %v546_v61  ;;  %v834_v45 = vld [vmem:[#allocation6 + $0x1788] sm:$0xff] }
 0x147   :  { %5049 = vmatpush1.bf16.msra.mxu0 %v7727_v4  ;;  %5090 = vmatpush1.bf16.msra.mxu1 %v7729_v5  ;;  %v593_v4 = vld [vmem:[#allocation6 + $0x1000] sm:$0xff]  ;;  %v570_v5 = vld [vmem:[#allocation6 + $0xf48] sm:$0xff] }
 0x148   :  { %5050 = vmatprep.subr.bf16.mxu0 %v7776_v6  ;;  %5091 = vmatprep.subr.bf16.mxu1 %v7778_v9  ;;  %v594_v6 = vld [vmem:[#allocation6 + $0x1008] sm:$0xff]  ;;  %v8064_v9 = vcombine.high %v569_v2, %v593_v4 }
 0x149   :  { %v8066_v10 = vcombine.high %v570_v5, %v594_v6 }
 0x14b   :  { %5051 = vmatpush1.bf16.msra.mxu0 %v7775_v14  ;;  %5092 = vmatpush1.bf16.msra.mxu1 %v7777_v15  ;;  %v642_v14 = vld [vmem:[#allocation6 + $0x1188] sm:$0xff]  ;;  %v8063_v15 = vcombine.low %v569_v2, %v593_v4 }
 0x14c   :  { %5052 = vmatprep.subr.bf16.mxu0 %v7824_v16  ;;  %5093 = vmatprep.subr.bf16.mxu1 %v7826_v18  ;;  %v8065_v16 = vcombine.low %v570_v5, %v594_v6  ;;  %v8114_v18 = vcombine.high %v618_v13, %v642_v14  ;;  %v6001_v6 = vld [vmem:[#allocation8] sm:$0xff] }
 0x14d   :  { %v4748_v28 = vpop.f32.mrb[0].mxu0  ;;  %v4789_v56 = vpop.f32.mrb[0].mxu1 }
 0x14e   :  { %v4750_v59 = vpop.f32.mrb[1].mxu0  ;;  %v4791_v35 = vpop.f32.mrb[1].mxu1 }
 0x14f   :  { %v5746_v34 = vcombine.low %v4748_v28, %v4750_v59  ;;  %v4752_v36 = vpop.f32.mrb[2].mxu0  ;;  %5053 = vmatpush1.bf16.msra.mxu0 %v7823_v24  ;;  %v5747_v38 = vcombine.low %v4789_v56, %v4791_v35  ;;  %v4793_v39 = vpop.f32.mrb[2].mxu1  ;;  %5094 = vmatpush1.bf16.msra.mxu1 %v7825_v25  ;;  %v8111_v24 = vcombine.low %v617_v11, %v641_v12  ;;  %v738_v56 = vld [vmem:[#allocation6 + $0x1488] sm:$0xff]  ;;  %v761_v35 = vld [vmem:[#allocation6 + $0x1540] sm:$0xff]  ;;  %v188_v11 = vld [vmem:[#allocation6 + $0x358] sm:$0xff] }
 0x150   :  { %v4753_v40 = vpop.f32.mrb[3].mxu0  ;;  %5054 = vmatprep.subr.bf16.mxu0 %v7872_v26  ;;  %v4794_v43 = vpop.f32.mrb[3].mxu1  ;;  %5095 = vmatprep.subr.bf16.mxu1 %v7874_v29  ;;  %v8113_v25 = vcombine.low %v618_v13, %v642_v14  ;;  %v8160_v26 = vcombine.high %v665_v19, %v689_v20  ;;  %v8162_v28 = vcombine.high %v666_v22, %v690_v23  ;;  %v713_v29 = vld [vmem:[#allocation6 + $0x13c0] sm:$0xff]  ;;  %v212_v12 = vld [vmem:[#allocation6 + $0x418] sm:$0xff] }
 0x151   :  { %v5754_v42 = vrot.slane %v5746_v34, %v8560_v27  ;;  %v5761_v48 = vrot.slane %v5747_v38, %v8560_v27  ;;  %v8159_v59 = vcombine.low %v665_v19, %v689_v20  ;;  %v8208_v33 = vcombine.high %v713_v29, %v737_v30  ;;  %v785_v36 = vld [vmem:[#allocation6 + $0x1600] sm:$0xff]  ;;  %v786_v38 = vld [vmem:[#allocation6 + $0x1608] sm:$0xff]  ;;  %v235_v19 = vld [vmem:[#allocation6 + $0x4d0] sm:$0xff] }
 0x152   :  { %v8210_v34 = vcombine.high %v714_v31, %v738_v56  ;;  %v8207_v39 = vcombine.low %v713_v29, %v737_v30  ;;  %v8209_v40 = vcombine.low %v714_v31, %v738_v56  ;;  %v833_v43 = vld [vmem:[#allocation6 + $0x1780] sm:$0xff]  ;;  %v8255_v46 = vcombine.low %v761_v35, %v785_v36  ;;  %v259_v20 = vld [vmem:[#allocation6 + $0x590] sm:$0xff]  ;;  %v236_v22 = vld [vmem:[#allocation6 + $0x4d8] sm:$0xff] }
 0x153   :  { %5055 = vmatpush1.bf16.msra.mxu0 %v7871_v37  ;;  %v8564_v52 = vcombine.low %v5754_v42, %v5761_v48  ;;  %5096 = vmatpush1.bf16.msra.mxu1 %v7873_v47  ;;  %v762_v37 = vld [vmem:[#allocation6 + $0x1548] sm:$0xff]  ;;  %v8256_v47 = vcombine.high %v761_v35, %v785_v36  ;;  %v809_v42 = vld [vmem:[#allocation6 + $0x16c0] sm:$0xff]  ;;  %v260_v23 = vld [vmem:[#allocation6 + $0x598] sm:$0xff]  ;;  %v7732_v29 = vcombine.high %v235_v19, %v259_v20 }
 0x154   :  { %5056 = vmatprep.subr.bf16.mxu0 %v7920_v41  ;;  %5097 = vmatprep.subr.bf16.mxu1 %v7922_v44  ;;  %v8258_v41 = vcombine.high %v762_v37, %v786_v38  ;;  %v810_v44 = vld [vmem:[#allocation6 + $0x16c8] sm:$0xff]  ;;  %v8257_v48 = vcombine.low %v762_v37, %v786_v38  ;;  %v8304_v49 = vcombine.high %v809_v42, %v833_v43  ;;  %v8577_v31 = vld [vmem:[#allocation6 + $0x650] sm:$0xff]  ;;  %v8591_v37 = vld [vmem:[#allocation6 + $0x7d8] sm:$0xff] }
 0x155   :  { %v8306_v50 = vcombine.high %v810_v44, %v834_v45  ;;  %v8303_v57 = vcombine.low %v809_v42, %v833_v43  ;;  %v8305_v58 = vcombine.low %v810_v44, %v834_v45  ;;  %v6013_v14 = vsub.f32 %v8564_v52, %v6001_v6  ;;  %v8579_v56 = vld [vmem:[#allocation6 + $0x710] sm:$0xff]  ;;  %v8593_v38 = vld [vmem:[#allocation6 + $0x898] sm:$0xff] }
 0x156   :  { %v7734_v30 = vcombine.high %v236_v22, %v260_v23  ;;  %v7731_v35 = vcombine.low %v235_v19, %v259_v20  ;;  %v7733_v36 = vcombine.low %v236_v22, %v260_v23  ;;  %v8607_v42 = vld [vmem:[#allocation6 + $0xa10] sm:$0xff]  ;;  %v8609_v43 = vld [vmem:[#allocation6 + $0x958] sm:$0xff]  ;;  %v7779_v45 = vcombine.low %v8577_v31, %v8579_v56 }
 0x157   :  { %5057 = vmatpush1.bf16.msra.mxu0 %v7919_v51  ;;  %5098 = vmatpush1.bf16.msra.mxu1 %v7921_v53  ;;  %v91_v51 = vld [vmem:[#allocation6 + $0x50] sm:$0xff]  ;;  %v8611_v44 = vld [vmem:[#allocation6 + $0xa18] sm:$0xff] }
 0x158   :  { %5058 = vmatprep.subr.bf16.mxu0 %v7968_v54  ;;  %5099 = vmatprep.subr.bf16.mxu1 %v7970_v55  ;;  %v115_v53 = vld [vmem:[#allocation6 + $0x110] sm:$0xff]  ;;  %v92_v54 = vld [vmem:[#allocation6 + $0x58] sm:$0xff] }
 0x159   :  { %v116_v55 = vld [vmem:[#allocation6 + $0x118] sm:$0xff]  ;;  %v7588_v60 = vcombine.high %v91_v51, %v115_v53  ;;  %v7587_v2 = vcombine.low %v91_v51, %v115_v53  ;;  %v8623_v51 = vld [vmem:[#allocation6 + $0xb90] sm:$0xff] }
 0x15a   :  { %v7590_v61 = vcombine.high %v92_v54, %v116_v55  ;;  %v7589_v4 = vcombine.low %v92_v54, %v116_v55  ;;  %v7829_v55 = vcombine.low %v8591_v37, %v8593_v38  ;;  %v8685_v22 = vld [vmem:[#allocation6 + $0xf50] sm:$0xff] }
 0x15b   :  { %5059 = vmatpush1.bf16.msra.mxu0 %v7967_v62  ;;  %5100 = vmatpush1.bf16.msra.mxu1 %v7969_v63  ;;  %v139_v62 = vld [vmem:[#allocation6 + $0x1d0] sm:$0xff] }
 0x15c   :  { %5060 = vmatprep.subr.bf16.mxu0 %v8016_v0  ;;  %5101 = vmatprep.subr.bf16.mxu1 %v8018_v1  ;;  %v163_v63 = vld [vmem:[#allocation6 + $0x290] sm:$0xff]  ;;  %v140_v0 = vld [vmem:[#allocation6 + $0x1d8] sm:$0xff] }
 0x15d   :  { %v164_v1 = vld [vmem:[#allocation6 + $0x298] sm:$0xff]  ;;  %v7636_v5 = vcombine.high %v139_v62, %v163_v63  ;;  %v7635_v13 = vcombine.low %v139_v62, %v163_v63  ;;  %v7877_v63 = vcombine.low %v8609_v43, %v8611_v44  ;;  %v8687_v23 = vld [vmem:[#allocation6 + $0x1010] sm:$0xff] }
 0x15f   :  { %5061 = vmatpush1.bf16.msra.mxu0 %v8015_v7  ;;  %5102 = vmatpush1.bf16.msra.mxu1 %v8017_v8  ;;  %v6399_v7 = vsub.f32 0.0, %v8564_v52  ;;  %v7638_v8 = vcombine.high %v140_v0, %v164_v1 }
 0x160   :  { %5062 = vmatprep.subr.bf16.mxu0 %v8064_v9  ;;  %5103 = vmatprep.subr.bf16.mxu1 %v8066_v10  ;;  %v187_v9 = vld [vmem:[#allocation6 + $0x350] sm:$0xff] }
 0x161   :  { %v211_v10 = vld [vmem:[#allocation6 + $0x410] sm:$0xff] }
 0x163   :  { %5063 = vmatpush1.bf16.msra.mxu0 %v8063_v15  ;;  %5104 = vmatpush1.bf16.msra.mxu1 %v8065_v16  ;;  %v7637_v15 = vcombine.low %v140_v0, %v164_v1  ;;  %v7684_v16 = vcombine.high %v187_v9, %v211_v10  ;;  %v7878_v0 = vcombine.high %v8609_v43, %v8611_v44  ;;  %v8647_v1 = vld [vmem:[#allocation6 + $0xc50] sm:$0xff] }
 0x164   :  { %5064 = vmatprep.subr.bf16.mxu0 %v8112_v17  ;;  %5105 = vmatprep.subr.bf16.mxu1 %v8114_v18  ;;  %v6411_v17 = vmul.f32 1.442695, %v6399_v7  ;;  %v7686_v18 = vcombine.high %v188_v11, %v212_v12 }
 0x166   :  { %8343 = vpow2.f32 %v6411_v17 }
 0x167   :  { %5065 = vmatpush1.bf16.msra.mxu0 %v8111_v24  ;;  %5106 = vmatpush1.bf16.msra.mxu1 %v8113_v25  ;;  %v7683_v24 = vcombine.low %v187_v9, %v211_v10  ;;  %v7685_v25 = vcombine.low %v188_v11, %v212_v12  ;;  %v8661_v9 = vld [vmem:[#allocation6 + $0xdd0] sm:$0xff] }
 0x168   :  { %5066 = vmatprep.subr.bf16.mxu0 %v8160_v26  ;;  %5107 = vmatprep.subr.bf16.mxu1 %v8162_v28  ;;  %v8573_v26 = vmul.f32 %v6001_v6, %v8564_v52  ;;  %v8575_v28 = vmul.f32 %v6013_v14, %v6013_v14  ;;  %v8587_v52 = vld [vmem:[#allocation6 + $0x7d0] sm:$0xff] }
 0x169   :  { %v8663_v10 = vld [vmem:[#allocation6 + $0xe90] sm:$0xff] }
 0x16a   :  { %v6049_v11 = vcombine.high %v8573_v26, %v8573_v26  ;;  %v6820_v12 = vcombine.high %v8575_v28, %v8575_v28 }
 0x16b   :  { %5067 = vmatpush1.bf16.msra.mxu0 %v8159_v59  ;;  %5108 = vmatpush1.bf16.msra.mxu1 %v8161_v32  ;;  %v8581_v59 = vld [vmem:[#allocation6 + $0x658] sm:$0xff]  ;;  %v8583_v32 = vand.u32 2147483647, %v6013_v14 }
 0x16c   :  { %5068 = vmatprep.subr.bf16.mxu0 %v8208_v33  ;;  %5109 = vmatprep.subr.bf16.mxu1 %v8210_v34  ;;  %v8585_v33 = vld [vmem:[#allocation6 + $0x718] sm:$0xff]  ;;  %v8589_v34 = vld [vmem:[#allocation6 + $0x890] sm:$0xff] }
 0x16d   :  { %v8627_v53 = vrot.slane %v8583_v32, %v8560_v27  ;;  %v7827_v54 = vcombine.low %v8587_v52, %v8589_v34 }
 0x16f   :  { %5069 = vmatpush1.bf16.msra.mxu0 %v8207_v39  ;;  %5110 = vmatpush1.bf16.msra.mxu1 %v8209_v40  ;;  %v8595_v39 = vld [vmem:[#allocation6 + $0x950] sm:$0xff]  ;;  %v8599_v40 = vrot.slane %v8573_v26, %v8560_v27  ;;  %v7208_v17 = vcombine.high %v8627_v53, %v8627_v53 }
 0x170   :  { %5070 = vmatprep.subr.bf16.mxu0 %v8256_v47  ;;  %5111 = vmatprep.subr.bf16.mxu1 %v8258_v41  ;;  %v8603_v47 = vrot.slane %v8575_v28, %v8560_v27  ;;  %v7780_v41 = vcombine.high %v8577_v31, %v8579_v56  ;;  %v7876_v62 = vcombine.high %v8595_v39, %v8607_v42 }
 0x172   :  { %v6835_v6 = vcombine.high %v8603_v47, %v8603_v47 }
 0x173   :  { %5071 = vmatpush1.bf16.msra.mxu0 %v8255_v46  ;;  %5112 = vmatpush1.bf16.msra.mxu1 %v8257_v48  ;;  %v7781_v46 = vcombine.low %v8581_v59, %v8585_v33  ;;  %v7782_v48 = vcombine.high %v8581_v59, %v8585_v33  ;;  %v6834_v33 = vrot.slane %v6820_v12, %v8560_v27 }
 0x174   :  { %5072 = vmatprep.subr.bf16.mxu0 %v8304_v49  ;;  %5113 = vmatprep.subr.bf16.mxu1 %v8306_v50  ;;  %v7828_v49 = vcombine.high %v8587_v52, %v8589_v34  ;;  %v8621_v50 = vld [vmem:[#allocation6 + $0xad0] sm:$0xff]  ;;  %v7073_v31 = vsel %vm6301_vm0, %v6835_v6, 0.0 }
 0x175   :  { %v7924_v7 = vcombine.high %v8621_v50, %v8623_v51 }
 0x177   :  { %5073 = vmatpush1.bf16.msra.mxu0 %v8303_v57  ;;  %5114 = vmatpush1.bf16.msra.mxu1 %v8305_v58  ;;  %v7830_v57 = vcombine.high %v8591_v37, %v8593_v38  ;;  %v8635_v58 = vld [vmem:[#allocation6 + $0xad8] sm:$0xff]  ;;  %v8742_v37 = vld [vmem:[#allocation6 + $0x10d0] sm:$0xff] }
 0x178   :  { %5124 = vmatprep.subr.bf16.mxu0 %v7588_v60  ;;  %5165 = vmatprep.subr.bf16.mxu1 %v7590_v61  ;;  %v8637_v60 = vld [vmem:[#allocation6 + $0xb98] sm:$0xff]  ;;  %v7875_v61 = vcombine.low %v8595_v39, %v8607_v42  ;;  %v8744_v38 = vld [vmem:[#allocation6 + $0x1190] sm:$0xff] }
 0x179   :  { %v7925_v14 = vcombine.low %v8635_v58, %v8637_v60  ;;  %v8116_v39 = vcombine.high %v8742_v37, %v8744_v38 }
 0x17a   :  { %5075 = vmatmul.mubr.bf16.vlgmr.msra.gmra.mrb[16].mxu0 %v8541_v21  ;;  %5116 = vmatmul.mubr.bf16.vlgmr.msra.gmra.mrb[16].mxu1 %v8541_v21 }
 0x17b   :  { %5125 = vmatpush1.bf16.msra.mxu0 %v7587_v2  ;;  %5166 = vmatpush1.bf16.msra.mxu1 %v7589_v4  ;;  %v8649_v2 = vld [vmem:[#allocation6 + $0xd10] sm:$0xff]  ;;  %v8651_v4 = vld [vmem:[#allocation6 + $0xc58] sm:$0xff] }
 0x17c   :  { %5126 = vmatprep.subr.bf16.mxu0 %v7636_v5  ;;  %5167 = vmatprep.subr.bf16.mxu1 %v7638_v8  ;;  %v6064_v5 = vcombine.high %v8599_v40, %v8599_v40  ;;  %v8659_v8 = vld [vmem:[#allocation6 + $0xd18] sm:$0xff]  ;;  %v7971_v19 = vcombine.low %v8647_v1, %v8649_v2  ;;  %v7972_v20 = vcombine.high %v8647_v1, %v8649_v2 }
 0x17d   :  { %5156 = vmatprep.mubr.bf16.mxu0 %v8535_v3  ;;  %5197 = vmatprep.mubr.bf16.mxu1 %v8535_v3  ;;  %v7974_v28 = vcombine.high %v8651_v4, %v8659_v8 }
 0x17f   :  { %5127 = vmatpush1.bf16.msra.mxu0 %v7635_v13  ;;  %5168 = vmatpush1.bf16.msra.mxu1 %v7637_v15  ;;  %v7923_v13 = vcombine.low %v8621_v50, %v8623_v51  ;;  %v8673_v15 = vld [vmem:[#allocation6 + $0xdd8] sm:$0xff] }
 0x180   :  { %5128 = vmatprep.subr.bf16.mxu0 %v7684_v16  ;;  %5169 = vmatprep.subr.bf16.mxu1 %v7686_v18  ;;  %v8675_v16 = vld [vmem:[#allocation6 + $0xe98] sm:$0xff]  ;;  %v7926_v18 = vcombine.high %v8635_v58, %v8637_v60 }
 0x183   :  { %5129 = vmatpush1.bf16.msra.mxu0 %v7683_v24  ;;  %5170 = vmatpush1.bf16.msra.mxu1 %v7685_v25  ;;  %v8689_v24 = vpop.eup %8343  ;;  %v7193_v25 = vcombine.high %v8583_v32, %v8583_v32  ;;  %v6063_v32 = vrot.slane %v6049_v11, %v8560_v27 }
 0x184   :  { %5130 = vmatprep.subr.bf16.mxu0 %v7732_v29  ;;  %5171 = vmatprep.subr.bf16.mxu1 %v7734_v30  ;;  %v6303_v30 = vsel %vm6301_vm0, %v6064_v5, 0.0  ;;  %v7072_v5 = vsel %vm6301_vm0, %v8603_v47, 0.0  ;;  %v6447_v42 = vcombine.high %v8689_v24, %v8689_v24 }
 0x185   :  { %v7074_v59 = vadd.f32 %v7073_v31, %v7072_v5  ;;  %v6065_v34 = vcombine.high %v6063_v32, %v6063_v32  ;;  %v7075_v31 = vsel %vm6301_vm0, %v6834_v33, 0.0 }
 0x187   :  { %5131 = vmatpush1.bf16.msra.mxu0 %v7731_v35  ;;  %5172 = vmatpush1.bf16.msra.mxu1 %v7733_v36 }
 0x188   :  { %5132 = vmatprep.subr.bf16.mxu0 %v7780_v41  ;;  %5173 = vmatprep.subr.bf16.mxu1 %v7782_v48  ;;  %v6302_v48 = vsel %vm6301_vm0, %v8599_v40, 0.0  ;;  %v7207_v41 = vrot.slane %v7193_v25, %v8560_v27  ;;  %v7445_v40 = vsel %vm6301_vm0, %v8627_v53, 0.0  ;;  %v8067_v25 = vcombine.low %v8685_v22, %v8687_v23 }
 0x189   :  { %v6304_v12 = vadd.f32 %v6303_v30, %v6302_v48  ;;  %v7076_v48 = vadd.f32 %v7075_v31, %v7074_v59  ;;  %v6307_v59 = vsel %vm6301_vm0, %v6065_v34, 0.0  ;;  %v8806_v31 = vld [vmem:[#allocation6 + $0x10d8] sm:$0xff] }
 0x18a   :  { %v7209_v5 = vcombine.high %v7207_v41, %v7207_v41 }
 0x18b   :  { %5133 = vmatpush1.bf16.msra.mxu0 %v7779_v45  ;;  %5174 = vmatpush1.bf16.msra.mxu1 %v7781_v46  ;;  %v8711_v45 = vld [vmem:[#allocation6 + $0xf58] sm:$0xff] }
 0x18c   :  { %5134 = vmatprep.subr.bf16.mxu0 %v7828_v49  ;;  %5175 = vmatprep.subr.bf16.mxu1 %v7830_v57  ;;  %v8713_v46 = vld [vmem:[#allocation6 + $0x1018] sm:$0xff]  ;;  %v6454_v49 = vrot.slane %v8689_v24, %v8560_v27  ;;  %v7446_v57 = vsel %vm6301_vm0, %v7208_v17, 0.0  ;;  %v7450_v24 = vsel %vm6301_vm0, %v7209_v5, 0.0 }
 0x18d   :  { %v4830_v35 = vpop.f32.mrb[4].mxu0  ;;  %v4871_v6 = vpop.f32.mrb[4].mxu1  ;;  %v8069_v52 = vcombine.low %v8711_v45, %v8713_v46  ;;  %v7447_v53 = vadd.f32 %v7446_v57, %v7445_v40  ;;  %v7448_v57 = vsel %vm6301_vm0, %v7207_v41, 0.0 }
 0x18e   :  { %v4832_v11 = vpop.f32.mrb[5].mxu0  ;;  %v4873_v36 = vpop.f32.mrb[5].mxu1 }
 0x18f   :  { %v5763_v56 = vcombine.low %v4830_v35, %v4832_v11  ;;  %v4834_v29 = vpop.f32.mrb[6].mxu0  ;;  %5135 = vmatpush1.bf16.msra.mxu0 %v7827_v54  ;;  %v5764_v26 = vcombine.low %v4871_v6, %v4873_v36  ;;  %v4875_v47 = vpop.f32.mrb[6].mxu1  ;;  %5176 = vmatpush1.bf16.msra.mxu1 %v7829_v55  ;;  %v6836_v54 = vcombine.high %v6834_v33, %v6834_v33  ;;  %v6305_v55 = vsel %vm6301_vm0, %v6063_v32, 0.0 }
 0x190   :  { %v4835_v17 = vpop.f32.mrb[7].mxu0  ;;  %5136 = vmatprep.subr.bf16.mxu0 %v7876_v62  ;;  %v4876_v30 = vpop.f32.mrb[7].mxu1  ;;  %5177 = vmatprep.subr.bf16.mxu1 %v7878_v0  ;;  %v6462_v62 = vcombine.high %v6454_v49, %v6454_v49  ;;  %v6306_v36 = vadd.f32 %v6305_v55, %v6304_v12  ;;  %v8070_v0 = vcombine.high %v8711_v45, %v8713_v46  ;;  %v6699_v33 = vsel %vm6301_vm0, %v6454_v49, 0.0  ;;  %v716_v45 = vld [vmem:[#allocation6 + $0x13d8] sm:$0xff] }
 0x191   :  { %v5771_v29 = vrot.slane %v5763_v56, %v8560_v27  ;;  %v5778_v35 = vrot.slane %v5764_v26, %v8560_v27  ;;  %v6002_v56 = vld [vmem:[#allocation8 + $0x8] sm:$0xff]  ;;  %v8115_v26 = vcombine.low %v8742_v37, %v8744_v38  ;;  %v7077_v32 = vsel %vm6301_vm0, %v6836_v54, 0.0  ;;  %v740_v46 = vld [vmem:[#allocation6 + $0x1498] sm:$0xff] }
 0x192   :  { %v6700_v43 = vsel %vm6301_vm0, %v6462_v62, 0.0  ;;  %v6308_v41 = vadd.f32 %v6307_v59, %v6306_v36  ;;  %v7078_v11 = vadd.f32 %v7077_v32, %v7076_v48  ;;  %v8786_v49 = vrot.slane %v6447_v42, %v8560_v27 }
 0x193   :  { %5137 = vmatpush1.bf16.msra.mxu0 %v7875_v61  ;;  %v5779_v6 = vcombine.low %v5771_v29, %v5778_v35  ;;  %5178 = vmatpush1.bf16.msra.mxu1 %v7877_v63  ;;  %v7449_v61 = vadd.f32 %v7448_v57, %v7447_v53  ;;  %v6701_v17 = vadd.f32 %v6700_v43, %v6699_v33  ;;  %v644_v35 = vld [vmem:[#allocation6 + $0x1198] sm:$0xff] }
 0x194   :  { %5138 = vmatprep.subr.bf16.mxu0 %v7924_v7  ;;  %5179 = vmatprep.subr.bf16.mxu1 %v7926_v18  ;;  %v9422_v55 = vcombine.low %v8651_v4, %v8659_v8  ;;  %v9423_v62 = vcombine.high %v8661_v9, %v8663_v10  ;;  %v9424_v48 = vcombine.high %v8673_v15, %v8675_v16 }
 0x195   :  { %v6014_v44 = vsub.f32 %v5779_v6, %v6002_v56  ;;  %v6026_v63 = vmul.f32 %v6002_v56, %v5779_v6  ;;  %v6400_v7 = vsub.f32 0.0, %v5779_v6  ;;  %v7451_v50 = vadd.f32 %v7450_v24, %v7449_v61 }
 0x196   :  { %v9425_v61 = vcombine.low %v8661_v9, %v8663_v10  ;;  %v8118_v59 = vcombine.high %v8806_v31, %v644_v35  ;;  %v6463_v32 = vcombine.high %v8786_v49, %v8786_v49  ;;  %v9427_v33 = vcombine.high %v8685_v22, %v8687_v23  ;;  %v691_v9 = vld [vmem:[#allocation6 + $0x1310] sm:$0xff] }
 0x197   :  { %5139 = vmatpush1.bf16.msra.mxu0 %v7923_v13  ;;  %v6066_v12 = vcombine.high %v6026_v63, %v6026_v63  ;;  %v6073_v40 = vrot.slane %v6026_v63, %v8560_v27  ;;  %v6413_v47 = vmul.f32 1.442695, %v6400_v7  ;;  %v6797_v18 = vmul.f32 %v6014_v44, %v6014_v44  ;;  %5180 = vmatpush1.bf16.msra.mxu1 %v7925_v14 }
 0x198   :  { %5140 = vmatprep.subr.bf16.mxu0 %v7972_v20  ;;  %v7170_v34 = vand.u32 2147483647, %v6014_v44  ;;  %5181 = vmatprep.subr.bf16.mxu1 %v7974_v28  ;;  %v9426_v7 = vcombine.low %v8673_v15, %v8675_v16  ;;  %v6702_v10 = vsel %vm6301_vm0, %v8786_v49, 0.0  ;;  %v8117_v49 = vcombine.low %v8806_v31, %v644_v35 }
 0x199   :  { %v6080_v51 = vrot.slane %v6066_v12, %v8560_v27  ;;  %v6081_v13 = vcombine.high %v6073_v40, %v6073_v40  ;;  %v6309_v58 = vsel %vm6301_vm0, %v6073_v40, 0.0  ;;  %8345 = vpow2.f32 %v6413_v47  ;;  %v668_v12 = vld [vmem:[#allocation6 + $0x1258] sm:$0xff] }
 0x19a   :  { %v6310_v60 = vadd.f32 %v6309_v58, %v6308_v41  ;;  %v6837_v14 = vcombine.high %v6797_v18, %v6797_v18  ;;  %v6844_v20 = vrot.slane %v6797_v18, %v8560_v27  ;;  %v7210_v54 = vcombine.high %v7170_v34, %v7170_v34  ;;  %v667_v41 = vld [vmem:[#allocation6 + $0x1250] sm:$0xff]  ;;  %v692_v40 = vld [vmem:[#allocation6 + $0x1318] sm:$0xff] }
 0x19b   :  { %5141 = vmatpush1.bf16.msra.mxu0 %v7971_v19  ;;  %v6082_v53 = vcombine.high %v6080_v51, %v6080_v51  ;;  %v6311_v29 = vsel %vm6301_vm0, %v6081_v13, 0.0  ;;  %v6313_v28 = vsel %vm6301_vm0, %v6080_v51, 0.0  ;;  %v7217_v30 = vrot.slane %v7170_v34, %v8560_v27  ;;  %5182 = vmatpush1.bf16.msra.mxu1 %v9422_v55 }
 0x19c   :  { %5142 = vmatprep.subr.bf16.mxu0 %v9423_v62  ;;  %v6312_v1 = vadd.f32 %v6311_v29, %v6310_v60  ;;  %v6851_v2 = vrot.slane %v6837_v14, %v8560_v27  ;;  %v6852_v19 = vcombine.high %v6844_v20, %v6844_v20  ;;  %v7079_v36 = vsel %vm6301_vm0, %v6844_v20, 0.0  ;;  %5183 = vmatprep.subr.bf16.mxu1 %v9424_v48  ;;  %v715_v14 = vld [vmem:[#allocation6 + $0x13d0] sm:$0xff] }
 0x19d   :  { %v7080_v5 = vadd.f32 %v7079_v36, %v7078_v11  ;;  %v7224_v4 = vrot.slane %v7210_v54, %v8560_v27  ;;  %v7225_v8 = vcombine.high %v7217_v30, %v7217_v30  ;;  %v7452_v56 = vsel %vm6301_vm0, %v7217_v30, 0.0  ;;  %v739_v20 = vld [vmem:[#allocation6 + $0x1490] sm:$0xff] }
 0x19e   :  { %v6314_v57 = vadd.f32 %v6313_v28, %v6312_v1  ;;  %v6853_v6 = vcombine.high %v6851_v2, %v6851_v2  ;;  %v7081_v42 = vsel %vm6301_vm0, %v6852_v19, 0.0  ;;  %v7453_v44 = vadd.f32 %v7452_v56, %v7451_v50  ;;  %v763_v19 = vld [vmem:[#allocation6 + $0x1550] sm:$0xff] }
 0x19f   :  { %5143 = vmatpush1.bf16.msra.mxu0 %v9425_v61  ;;  %v7082_v43 = vadd.f32 %v7081_v42, %v7080_v5  ;;  %v7454_v63 = vsel %vm6301_vm0, %v7225_v8, 0.0  ;;  %5184 = vmatpush1.bf16.msra.mxu1 %v9426_v7  ;;  %v7083_v11 = vsel %vm6301_vm0, %v6851_v2, 0.0  ;;  %v7226_v24 = vcombine.high %v7224_v4, %v7224_v4  ;;  %v787_v36 = vld [vmem:[#allocation6 + $0x1610] sm:$0xff]  ;;  %v764_v5 = vld [vmem:[#allocation6 + $0x1558] sm:$0xff] }
 0x1a0   :  { %5144 = vmatprep.subr.bf16.mxu0 %v9427_v33  ;;  %5185 = vmatprep.subr.bf16.mxu1 %v8070_v0  ;;  %v6315_v15 = vsel %vm6301_vm0, %v6082_v53, 0.0  ;;  %v6703_v16 = vadd.f32 %v6702_v10, %v6701_v17  ;;  %v7455_v18 = vadd.f32 %v7454_v63, %v7453_v44  ;;  %v7456_v50 = vsel %vm6301_vm0, %v7224_v4, 0.0  ;;  %v788_v4 = vld [vmem:[#allocation6 + $0x1618] sm:$0xff]  ;;  %v835_v42 = vld [vmem:[#allocation6 + $0x1790] sm:$0xff]  ;;  %v94_v10 = vld [vmem:[#allocation6 + $0x68] sm:$0xff] }
 0x1a1   :  { %v7084_v47 = vadd.f32 %v7083_v11, %v7082_v43  ;;  %v8836_v34 = vadd.f32 %v6315_v15, %v6314_v57  ;;  %v8164_v51 = vcombine.high %v667_v41, %v691_v9  ;;  %v7085_v0 = vsel %vm6301_vm0, %v6853_v6, 0.0  ;;  %v811_v6 = vld [vmem:[#allocation6 + $0x16d0] sm:$0xff]  ;;  %v118_v11 = vld [vmem:[#allocation6 + $0x128] sm:$0xff] }
 0x1a2   :  { %v7457_v58 = vadd.f32 %v7456_v50, %v7455_v18  ;;  %v8166_v17 = vcombine.high %v668_v12, %v692_v40  ;;  %v7458_v54 = vsel %vm6301_vm0, %v7226_v24, 0.0  ;;  %v8163_v30 = vcombine.low %v667_v41, %v691_v9  ;;  %v93_v41 = vld [vmem:[#allocation6 + $0x60] sm:$0xff]  ;;  %v142_v18 = vld [vmem:[#allocation6 + $0x1e8] sm:$0xff] }
 0x1a3   :  { %5145 = vmatpush1.bf16.msra.mxu0 %v8067_v25  ;;  %v8346_v13 = vpop.eup %8345  ;;  %5186 = vmatpush1.bf16.msra.mxu1 %v8069_v52  ;;  %v8850_v60 = vadd.f32 %v7085_v0, %v7084_v47  ;;  %v6704_v25 = vsel %vm6301_vm0, %v6463_v32, 0.0  ;;  %v8165_v62 = vcombine.low %v668_v12, %v692_v40  ;;  %v8212_v31 = vcombine.high %v715_v14, %v739_v20  ;;  %v836_v32 = vld [vmem:[#allocation6 + $0x1798] sm:$0xff]  ;;  %v117_v9 = vld [vmem:[#allocation6 + $0x120] sm:$0xff]  ;;  %v166_v50 = vld [vmem:[#allocation6 + $0x2a8] sm:$0xff] }
 0x1a4   :  { %5146 = vmatprep.subr.bf16.mxu0 %v8116_v39  ;;  %v6464_v22 = vcombine.high %v8346_v13, %v8346_v13  ;;  %v6471_v23 = vrot.slane %v8346_v13, %v8560_v27  ;;  %5187 = vmatprep.subr.bf16.mxu1 %v8118_v59  ;;  %v6705_v53 = vadd.f32 %v6704_v25, %v6703_v16  ;;  %v812_v59 = vld [vmem:[#allocation6 + $0x16d8] sm:$0xff]  ;;  %v141_v16 = vld [vmem:[#allocation6 + $0x1e0] sm:$0xff] }
 0x1a5   :  { %v8855_v52 = vadd.f32 %v7458_v54, %v7457_v58  ;;  %v8214_v2 = vcombine.high %v716_v45, %v740_v46  ;;  %v8211_v37 = vcombine.low %v715_v14, %v739_v20  ;;  %v8260_v56 = vcombine.high %v763_v19, %v787_v36  ;;  %v165_v47 = vld [vmem:[#allocation6 + $0x2a0] sm:$0xff] }
 0x1a6   :  { %v6478_v39 = vrot.slane %v6464_v22, %v8560_v27  ;;  %v6479_v29 = vcombine.high %v6471_v23, %v6471_v23  ;;  %v6706_v28 = vsel %vm6301_vm0, %v6471_v23, 0.0  ;;  %v8262_v57 = vcombine.high %v764_v5, %v788_v4  ;;  %v189_v58 = vld [vmem:[#allocation6 + $0x360] sm:$0xff]  ;;  %v190_v22 = vld [vmem:[#allocation6 + $0x368] sm:$0xff] }
 0x1a7   :  { %5147 = vmatpush1.bf16.msra.mxu0 %v8115_v26  ;;  %v6707_v55 = vadd.f32 %v6706_v28, %v6705_v53  ;;  %5188 = vmatpush1.bf16.msra.mxu1 %v8117_v49  ;;  %v8213_v26 = vcombine.low %v716_v45, %v740_v46  ;;  %v8259_v44 = vcombine.low %v763_v19, %v787_v36  ;;  %v214_v23 = vld [vmem:[#allocation6 + $0x428] sm:$0xff]  ;;  %v237_v53 = vld [vmem:[#allocation6 + $0x4e0] sm:$0xff] }
 0x1a8   :  { %5148 = vmatprep.subr.bf16.mxu0 %v8164_v51  ;;  %v6480_v35 = vcombine.high %v6478_v39, %v6478_v39  ;;  %v6708_v1 = vsel %vm6301_vm0, %v6479_v29, 0.0  ;;  %5189 = vmatprep.subr.bf16.mxu1 %v8166_v17  ;;  %v6710_v8 = vsel %vm6301_vm0, %v6478_v39, 0.0  ;;  %v8261_v63 = vcombine.low %v764_v5, %v788_v4  ;;  %v213_v17 = vld [vmem:[#allocation6 + $0x420] sm:$0xff]  ;;  %v238_v46 = vld [vmem:[#allocation6 + $0x4e8] sm:$0xff] }
 0x1a9   :  { %v6709_v48 = vadd.f32 %v6708_v1, %v6707_v55  ;;  %v8308_v7 = vcombine.high %v811_v6, %v835_v42  ;;  %v8310_v33 = vcombine.high %v812_v59, %v836_v32  ;;  %v8307_v24 = vcombine.low %v811_v6, %v835_v42  ;;  %v261_v45 = vld [vmem:[#allocation6 + $0x5a0] sm:$0xff]  ;;  %v262_v39 = vld [vmem:[#allocation6 + $0x5a8] sm:$0xff] }
 0x1aa   :  { %v6712_v61 = vsel %vm6301_vm0, %v6480_v35, 0.0  ;;  %v8309_v12 = vcombine.low %v812_v59, %v836_v32  ;;  %v7592_v40 = vcombine.high %v93_v41, %v117_v9  ;;  %v7594_v15 = vcombine.high %v94_v10, %v118_v11  ;;  %v286_v35 = vld [vmem:[#allocation6 + $0x668] sm:$0xff]  ;;  %v333_v5 = vld [vmem:[#allocation6 + $0x7e0] sm:$0xff] }
 0x1ab   :  { %5149 = vmatpush1.bf16.msra.mxu0 %v8163_v30  ;;  %v6711_v38 = vadd.f32 %v6710_v8, %v6709_v48  ;;  %5190 = vmatpush1.bf16.msra.mxu1 %v8165_v62  ;;  %v7591_v49 = vcombine.low %v93_v41, %v117_v9  ;;  %v7593_v51 = vcombine.low %v94_v10, %v118_v11  ;;  %v285_v62 = vld [vmem:[#allocation6 + $0x660] sm:$0xff]  ;;  %v310_v1 = vld [vmem:[#allocation6 + $0x728] sm:$0xff] }
 0x1ac   :  { %5150 = vmatprep.subr.bf16.mxu0 %v8212_v31  ;;  %5191 = vmatprep.subr.bf16.mxu1 %v8214_v2  ;;  %v7640_v0 = vcombine.high %v141_v16, %v165_v47  ;;  %v7642_v13 = vcombine.high %v142_v18, %v166_v50  ;;  %v7639_v25 = vcombine.low %v141_v16, %v165_v47  ;;  %v309_v31 = vld [vmem:[#allocation6 + $0x720] sm:$0xff]  ;;  %v334_v8 = vld [vmem:[#allocation6 + $0x7e8] sm:$0xff] }
 0x1ad   :  { %v8865_v43 = vadd.f32 %v6712_v61, %v6711_v38  ;;  %v7641_v14 = vcombine.low %v142_v18, %v166_v50  ;;  %v7688_v20 = vcombine.high %v189_v58, %v213_v17  ;;  %v7690_v54 = vcombine.high %v190_v22, %v214_v23  ;;  %v357_v4 = vld [vmem:[#allocation6 + $0x8a0] sm:$0xff]  ;;  %v382_v61 = vld [vmem:[#allocation6 + $0x968] sm:$0xff] }
 0x1ae   :  { %v7687_v29 = vcombine.low %v189_v58, %v213_v17  ;;  %v7689_v28 = vcombine.low %v190_v22, %v214_v23  ;;  %v7736_v30 = vcombine.high %v237_v53, %v261_v45  ;;  %v7738_v55 = vcombine.high %v238_v46, %v262_v39  ;;  %v381_v6 = vld [vmem:[#allocation6 + $0x960] sm:$0xff]  ;;  %v406_v59 = vld [vmem:[#allocation6 + $0xa28] sm:$0xff] }
 0x1af   :  { %5151 = vmatpush1.bf16.msra.mxu0 %v8211_v37  ;;  %5192 = vmatpush1.bf16.msra.mxu1 %v8213_v26  ;;  %v7735_v2 = vcombine.low %v237_v53, %v261_v45  ;;  %v7737_v19 = vcombine.low %v238_v46, %v262_v39  ;;  %v7784_v36 = vcombine.high %v285_v62, %v309_v31  ;;  %v358_v37 = vld [vmem:[#allocation6 + $0x8a8] sm:$0xff]  ;;  %v405_v42 = vld [vmem:[#allocation6 + $0xa20] sm:$0xff] }
 0x1b0   :  { %5152 = vmatprep.subr.bf16.mxu0 %v8260_v56  ;;  %5193 = vmatprep.subr.bf16.mxu1 %v8262_v57  ;;  %v7786_v48 = vcombine.high %v286_v35, %v310_v1  ;;  %v7783_v38 = vcombine.low %v285_v62, %v309_v31  ;;  %v7785_v26 = vcombine.low %v286_v35, %v310_v1  ;;  %v429_v41 = vld [vmem:[#allocation6 + $0xae0] sm:$0xff] }
 0x1b1   :  { %v7832_v56 = vcombine.high %v333_v5, %v357_v4  ;;  %v7834_v57 = vcombine.high %v334_v8, %v358_v37  ;;  %v7831_v32 = vcombine.low %v333_v5, %v357_v4  ;;  %v453_v9 = vld [vmem:[#allocation6 + $0xba0] sm:$0xff]  ;;  %v7879_v47 = vcombine.low %v381_v6, %v405_v42  ;;  %v8883_v5 = vld [vmem:[#allocation6 + $0xf68] sm:$0xff] }
 0x1b2   :  { %v477_v22 = vld [vmem:[#allocation6 + $0xc60] sm:$0xff]  ;;  %v7927_v53 = vcombine.low %v429_v41, %v453_v9  ;;  %v8885_v4 = vld [vmem:[#allocation6 + $0x1028] sm:$0xff] }
 0x1b3   :  { %5153 = vmatpush1.bf16.msra.mxu0 %v8259_v44  ;;  %5194 = vmatpush1.bf16.msra.mxu1 %v8261_v63  ;;  %v7833_v44 = vcombine.low %v334_v8, %v358_v37  ;;  %v7880_v63 = vcombine.high %v381_v6, %v405_v42  ;;  %v501_v23 = vld [vmem:[#allocation6 + $0xd20] sm:$0xff] }
 0x1b4   :  { %5154 = vmatprep.subr.bf16.mxu0 %v8308_v7  ;;  %5195 = vmatprep.subr.bf16.mxu1 %v8310_v33  ;;  %v7882_v33 = vcombine.high %v382_v61, %v406_v59  ;;  %v8873_v45 = vld [vmem:[#allocation6 + $0xde0] sm:$0xff]  ;;  %v7975_v62 = vcombine.low %v477_v22, %v501_v23 }
 0x1b5   :  { %v8879_v35 = vld [vmem:[#allocation6 + $0xf60] sm:$0xff] }
 0x1b7   :  { %5155 = vmatpush1.bf16.msra.mxu0 %v8307_v24  ;;  %5196 = vmatpush1.bf16.msra.mxu1 %v8309_v12  ;;  %v430_v24 = vld [vmem:[#allocation6 + $0xae8] sm:$0xff] }
 0x1b8   :  { %5206 = vmatprep.subr.bf16.mxu0 %v7592_v40  ;;  %5247 = vmatprep.subr.bf16.mxu1 %v7594_v15  ;;  %v454_v12 = vld [vmem:[#allocation6 + $0xba8] sm:$0xff] }
 0x1b9   :  { %v7930_v17 = vcombine.high %v430_v24, %v454_v12  ;;  %v7929_v39 = vcombine.low %v430_v24, %v454_v12 }
 0x1ba   :  { %5157 = vmatmul.mubr.bf16.vlgmr.msra.gmra.mrb[20].mxu0 %v8541_v21  ;;  %5198 = vmatmul.mubr.bf16.vlgmr.msra.gmra.mrb[20].mxu1 %v8541_v21 }
 0x1bb   :  { %5207 = vmatpush1.bf16.msra.mxu0 %v7591_v49  ;;  %5248 = vmatpush1.bf16.msra.mxu1 %v7593_v51  ;;  %v7881_v51 = vcombine.low %v382_v61, %v406_v59 }
 0x1bc   :  { %5208 = vmatprep.subr.bf16.mxu0 %v7640_v0  ;;  %5249 = vmatprep.subr.bf16.mxu1 %v7642_v13  ;;  %v7928_v0 = vcombine.high %v429_v41, %v453_v9 }
 0x1bd   :  { %5238 = vmatprep.mubr.bf16.mxu0 %v8535_v3  ;;  %5279 = vmatprep.mubr.bf16.mxu1 %v8535_v3 }
 0x1bf   :  { %5209 = vmatpush1.bf16.msra.mxu0 %v7639_v25  ;;  %5250 = vmatpush1.bf16.msra.mxu1 %v7641_v14  ;;  %v478_v14 = vld [vmem:[#allocation6 + $0xc68] sm:$0xff] }
 0x1c0   :  { %5210 = vmatprep.subr.bf16.mxu0 %v7688_v20  ;;  %5251 = vmatprep.subr.bf16.mxu1 %v7690_v54  ;;  %v502_v20 = vld [vmem:[#allocation6 + $0xd28] sm:$0xff]  ;;  %v6003_v54 = vld [vmem:[#allocation8 + $0x10] sm:$0xff] }
 0x1c1   :  { %v7978_v31 = vcombine.high %v478_v14, %v502_v20 }
 0x1c3   :  { %5211 = vmatpush1.bf16.msra.mxu0 %v7687_v29  ;;  %5252 = vmatpush1.bf16.msra.mxu1 %v7689_v28  ;;  %v7976_v29 = vcombine.high %v477_v22, %v501_v23  ;;  %v549_v28 = vld [vmem:[#allocation6 + $0xea0] sm:$0xff]  ;;  %v646_v22 = vld [vmem:[#allocation6 + $0x11a8] sm:$0xff] }
 0x1c4   :  { %5212 = vmatprep.subr.bf16.mxu0 %v7736_v30  ;;  %5253 = vmatprep.subr.bf16.mxu1 %v7738_v55  ;;  %v8875_v30 = vld [vmem:[#allocation6 + $0xde8] sm:$0xff]  ;;  %v8023_v8 = vcombine.low %v8873_v45, %v549_v28  ;;  %v8024_v37 = vcombine.high %v8873_v45, %v549_v28  ;;  %v669_v28 = vld [vmem:[#allocation6 + $0x1260] sm:$0xff] }
 0x1c5   :  { %v8877_v55 = vld [vmem:[#allocation6 + $0xea8] sm:$0xff] }
 0x1c7   :  { %5213 = vmatpush1.bf16.msra.mxu0 %v7735_v2  ;;  %5254 = vmatpush1.bf16.msra.mxu1 %v7737_v19 }
 0x1c8   :  { %5214 = vmatprep.subr.bf16.mxu0 %v7784_v36  ;;  %5255 = vmatprep.subr.bf16.mxu1 %v7786_v48  ;;  %v7977_v36 = vcombine.low %v478_v14, %v502_v20  ;;  %v8881_v48 = vld [vmem:[#allocation6 + $0x1020] sm:$0xff]  ;;  %v8073_v20 = vcombine.low %v8883_v5, %v8885_v4 }
 0x1c9   :  { %v8071_v59 = vcombine.low %v8879_v35, %v8881_v48 }
 0x1cb   :  { %5215 = vmatpush1.bf16.msra.mxu0 %v7783_v38  ;;  %5256 = vmatpush1.bf16.msra.mxu1 %v7785_v26  ;;  %v8025_v38 = vcombine.low %v8875_v30, %v8877_v55  ;;  %v8026_v26 = vcombine.high %v8875_v30, %v8877_v55  ;;  %v693_v30 = vld [vmem:[#allocation6 + $0x1320] sm:$0xff] }
 0x1cc   :  { %5216 = vmatprep.subr.bf16.mxu0 %v7832_v56  ;;  %5257 = vmatprep.subr.bf16.mxu1 %v7834_v57 }
 0x1cd   :  { %v4912_v7 = vpop.f32.mrb[8].mxu0  ;;  %v4953_v10 = vpop.f32.mrb[8].mxu1 }
 0x1ce   :  { %v4914_v11 = vpop.f32.mrb[9].mxu0  ;;  %v4955_v15 = vpop.f32.mrb[9].mxu1 }
 0x1cf   :  { %v5780_v40 = vcombine.low %v4912_v7, %v4914_v11  ;;  %v4916_v16 = vpop.f32.mrb[10].mxu0  ;;  %5217 = vmatpush1.bf16.msra.mxu0 %v7831_v32  ;;  %v5781_v18 = vcombine.low %v4953_v10, %v4955_v15  ;;  %v4957_v50 = vpop.f32.mrb[10].mxu1  ;;  %5258 = vmatpush1.bf16.msra.mxu1 %v7833_v44  ;;  %v8072_v32 = vcombine.high %v8879_v35, %v8881_v48  ;;  %v670_v35 = vld [vmem:[#allocation6 + $0x1268] sm:$0xff] }
 0x1d0   :  { %v4917_v49 = vpop.f32.mrb[11].mxu0  ;;  %5218 = vmatprep.subr.bf16.mxu0 %v7880_v63  ;;  %v4958_v58 = vpop.f32.mrb[11].mxu1  ;;  %5259 = vmatprep.subr.bf16.mxu1 %v7882_v33  ;;  %v8074_v44 = vcombine.high %v8883_v5, %v8885_v4  ;;  %v621_v50 = vld [vmem:[#allocation6 + $0x10e0] sm:$0xff] }
 0x1d1   :  { %v5788_v13 = vrot.slane %v5780_v40, %v8560_v27  ;;  %v5795_v25 = vrot.slane %v5781_v18, %v8560_v27  ;;  %v645_v49 = vld [vmem:[#allocation6 + $0x11a0] sm:$0xff] }
 0x1d2   :  { %v8120_v45 = vcombine.high %v621_v50, %v645_v49 }
 0x1d3   :  { %5219 = vmatpush1.bf16.msra.mxu0 %v7879_v47  ;;  %v5796_v46 = vcombine.low %v5788_v13, %v5795_v25  ;;  %5260 = vmatpush1.bf16.msra.mxu1 %v7881_v51 }
 0x1d4   :  { %5220 = vmatprep.subr.bf16.mxu0 %v7928_v0  ;;  %5261 = vmatprep.subr.bf16.mxu1 %v7930_v17  ;;  %v622_v17 = vld [vmem:[#allocation6 + $0x10e8] sm:$0xff] }
 0x1d5   :  { %v6015_v1 = vsub.f32 %v5796_v46, %v6003_v54  ;;  %v6027_v2 = vmul.f32 %v6003_v54, %v5796_v46  ;;  %v6401_v19 = vsub.f32 0.0, %v5796_v46 }
 0x1d7   :  { %5221 = vmatpush1.bf16.msra.mxu0 %v7927_v53  ;;  %v6083_v56 = vcombine.high %v6027_v2, %v6027_v2  ;;  %v6090_v57 = vrot.slane %v6027_v2, %v8560_v27  ;;  %v6415_v6 = vmul.f32 1.442695, %v6401_v19  ;;  %v6798_v42 = vmul.f32 %v6015_v1, %v6015_v1  ;;  %5262 = vmatpush1.bf16.msra.mxu1 %v7929_v39 }
 0x1d8   :  { %5222 = vmatprep.subr.bf16.mxu0 %v7976_v29  ;;  %v7171_v61 = vand.u32 2147483647, %v6015_v1  ;;  %5263 = vmatprep.subr.bf16.mxu1 %v7978_v31  ;;  %v8122_v29 = vcombine.high %v622_v17, %v646_v22  ;;  %v694_v1 = vld [vmem:[#allocation6 + $0x1328] sm:$0xff]  ;;  %v8119_v19 = vcombine.low %v621_v50, %v645_v49 }
 0x1d9   :  { %v6097_v63 = vrot.slane %v6083_v56, %v8560_v27  ;;  %v6098_v7 = vcombine.high %v6090_v57, %v6090_v57  ;;  %v6317_v33 = vsel %vm6301_vm0, %v6090_v57, 0.0  ;;  %8347 = vpow2.f32 %v6415_v6  ;;  %v717_v57 = vld [vmem:[#allocation6 + $0x13e0] sm:$0xff] }
 0x1da   :  { %v6318_v41 = vadd.f32 %v6317_v33, %v8836_v34  ;;  %v6854_v9 = vcombine.high %v6798_v42, %v6798_v42  ;;  %v6861_v10 = vrot.slane %v6798_v42, %v8560_v27  ;;  %v7227_v11 = vcombine.high %v7171_v61, %v7171_v61  ;;  %v741_v6 = vld [vmem:[#allocation6 + $0x14a0] sm:$0xff] }
 0x1db   :  { %5223 = vmatpush1.bf16.msra.mxu0 %v7975_v62  ;;  %v6099_v24 = vcombine.high %v6097_v63, %v6097_v63  ;;  %v6319_v12 = vsel %vm6301_vm0, %v6098_v7, 0.0  ;;  %v6321_v40 = vsel %vm6301_vm0, %v6097_v63, 0.0  ;;  %v7234_v15 = vrot.slane %v7171_v61, %v8560_v27  ;;  %5264 = vmatpush1.bf16.msra.mxu1 %v7977_v36  ;;  %v718_v61 = vld [vmem:[#allocation6 + $0x13e8] sm:$0xff] }
 0x1dc   :  { %5224 = vmatprep.subr.bf16.mxu0 %v8024_v37  ;;  %v6320_v16 = vadd.f32 %v6319_v12, %v6318_v41  ;;  %v6868_v47 = vrot.slane %v6854_v9, %v8560_v27  ;;  %v6869_v18 = vcombine.high %v6861_v10, %v6861_v10  ;;  %v7087_v34 = vsel %vm6301_vm0, %v6861_v10, 0.0  ;;  %5265 = vmatprep.subr.bf16.mxu1 %v8026_v26 }
 0x1dd   :  { %v7088_v51 = vadd.f32 %v7087_v34, %v8850_v60  ;;  %v7241_v0 = vrot.slane %v7227_v11, %v8560_v27  ;;  %v7242_v13 = vcombine.high %v7234_v15, %v7234_v15  ;;  %v7460_v58 = vsel %vm6301_vm0, %v7234_v15, 0.0  ;;  %v789_v15 = vld [vmem:[#allocation6 + $0x1620] sm:$0xff] }
 0x1de   :  { %v6322_v23 = vadd.f32 %v6321_v40, %v6320_v16  ;;  %v6870_v25 = vcombine.high %v6868_v47, %v6868_v47  ;;  %v7089_v14 = vsel %vm6301_vm0, %v6869_v18, 0.0  ;;  %v7461_v53 = vadd.f32 %v7460_v58, %v8855_v52  ;;  %v765_v40 = vld [vmem:[#allocation6 + $0x1560] sm:$0xff]  ;;  %v790_v18 = vld [vmem:[#allocation6 + $0x1628] sm:$0xff] }
 0x1df   :  { %5225 = vmatpush1.bf16.msra.mxu0 %v8023_v8  ;;  %v7090_v54 = vadd.f32 %v7089_v14, %v7088_v51  ;;  %v7462_v60 = vsel %vm6301_vm0, %v7242_v13, 0.0  ;;  %5266 = vmatpush1.bf16.msra.mxu1 %v8025_v38  ;;  %v7091_v46 = vsel %vm6301_vm0, %v6868_v47, 0.0  ;;  %v7243_v39 = vcombine.high %v7241_v0, %v7241_v0  ;;  %v766_v47 = vld [vmem:[#allocation6 + $0x1568] sm:$0xff]  ;;  %v813_v13 = vld [vmem:[#allocation6 + $0x16e0] sm:$0xff] }
 0x1e0   :  { %5226 = vmatprep.subr.bf16.mxu0 %v8072_v32  ;;  %5267 = vmatprep.subr.bf16.mxu1 %v8074_v44  ;;  %v6323_v55 = vsel %vm6301_vm0, %v6099_v24, 0.0  ;;  %v7463_v31 = vadd.f32 %v7462_v60, %v7461_v53  ;;  %v7464_v52 = vsel %vm6301_vm0, %v7241_v0, 0.0  ;;  %v8121_v36 = vcombine.low %v622_v17, %v646_v22  ;;  %v837_v58 = vld [vmem:[#allocation6 + $0x17a0] sm:$0xff]  ;;  %v814_v22 = vld [vmem:[#allocation6 + $0x16e8] sm:$0xff]  ;;  %v95_v60 = vld [vmem:[#allocation6 + $0x70] sm:$0xff] }
 0x1e1   :  { %v7092_v62 = vadd.f32 %v7091_v46, %v7090_v54  ;;  %v8919_v2 = vadd.f32 %v6323_v55, %v6322_v23  ;;  %v7093_v48 = vsel %vm6301_vm0, %v6870_v25, 0.0  ;;  %v8168_v8 = vcombine.high %v669_v28, %v693_v30  ;;  %v838_v23 = vld [vmem:[#allocation6 + $0x17a8] sm:$0xff]  ;;  %v96_v46 = vld [vmem:[#allocation6 + $0x78] sm:$0xff] }
 0x1e2   :  { %v7465_v4 = vadd.f32 %v7464_v52, %v7463_v31  ;;  %v8170_v56 = vcombine.high %v670_v35, %v694_v1  ;;  %v7466_v42 = vsel %vm6301_vm0, %v7243_v39, 0.0  ;;  %v8167_v33 = vcombine.low %v669_v28, %v693_v30  ;;  %v120_v39 = vld [vmem:[#allocation6 + $0x138] sm:$0xff]  ;;  %v167_v31 = vld [vmem:[#allocation6 + $0x2b0] sm:$0xff] }
 0x1e3   :  { %5227 = vmatpush1.bf16.msra.mxu0 %v8071_v59  ;;  %v8348_v5 = vpop.eup %8347  ;;  %5268 = vmatpush1.bf16.msra.mxu1 %v8073_v20  ;;  %v8923_v37 = vadd.f32 %v7093_v48, %v7092_v62  ;;  %v742_v59 = vld [vmem:[#allocation6 + $0x14a8] sm:$0xff]  ;;  %v8169_v9 = vcombine.low %v670_v35, %v694_v1  ;;  %v8216_v10 = vcombine.high %v717_v57, %v741_v6  ;;  %v143_v62 = vld [vmem:[#allocation6 + $0x1f0] sm:$0xff]  ;;  %v144_v35 = vld [vmem:[#allocation6 + $0x1f8] sm:$0xff] }
 0x1e4   :  { %5228 = vmatprep.subr.bf16.mxu0 %v8120_v45  ;;  %v6481_v38 = vcombine.high %v8348_v5, %v8348_v5  ;;  %v6488_v26 = vrot.slane %v8348_v5, %v8560_v27  ;;  %5269 = vmatprep.subr.bf16.mxu1 %v8122_v29  ;;  %v8927_v32 = vadd.f32 %v7466_v42, %v7465_v4  ;;  %v119_v45 = vld [vmem:[#allocation6 + $0x130] sm:$0xff]  ;;  %v168_v1 = vld [vmem:[#allocation6 + $0x2b8] sm:$0xff] }
 0x1e5   :  { %v8218_v12 = vcombine.high %v718_v61, %v742_v59  ;;  %v8215_v50 = vcombine.low %v717_v57, %v741_v6  ;;  %v8264_v51 = vcombine.high %v765_v40, %v789_v15  ;;  %v8266_v0 = vcombine.high %v766_v47, %v790_v18  ;;  %v191_v5 = vld [vmem:[#allocation6 + $0x370] sm:$0xff] }
 0x1e6   :  { %v6495_v44 = vrot.slane %v6481_v38, %v8560_v27  ;;  %v6496_v63 = vcombine.high %v6488_v26, %v6488_v26  ;;  %v6714_v7 = vsel %vm6301_vm0, %v6488_v26, 0.0  ;;  %v8263_v14 = vcombine.low %v765_v40, %v789_v15  ;;  %v215_v4 = vld [vmem:[#allocation6 + $0x430] sm:$0xff]  ;;  %v216_v38 = vld [vmem:[#allocation6 + $0x438] sm:$0xff] }
 0x1e7   :  { %5229 = vmatpush1.bf16.msra.mxu0 %v8119_v19  ;;  %v6715_v41 = vadd.f32 %v6714_v7, %v8865_v43  ;;  %5270 = vmatpush1.bf16.msra.mxu1 %v8121_v36  ;;  %v8217_v43 = vcombine.low %v718_v61, %v742_v59  ;;  %v8265_v20 = vcombine.low %v766_v47, %v790_v18  ;;  %v239_v42 = vld [vmem:[#allocation6 + $0x4f0] sm:$0xff]  ;;  %v240_v59 = vld [vmem:[#allocation6 + $0x4f8] sm:$0xff] }
 0x1e8   :  { %5230 = vmatprep.subr.bf16.mxu0 %v8168_v8  ;;  %v6497_v11 = vcombine.high %v6495_v44, %v6495_v44  ;;  %v6716_v24 = vsel %vm6301_vm0, %v6496_v63, 0.0  ;;  %5271 = vmatprep.subr.bf16.mxu1 %v8170_v56  ;;  %v6718_v34 = vsel %vm6301_vm0, %v6495_v44, 0.0  ;;  %v8312_v54 = vcombine.high %v813_v13, %v837_v58  ;;  %v192_v8 = vld [vmem:[#allocation6 + $0x378] sm:$0xff]  ;;  %v263_v61 = vld [vmem:[#allocation6 + $0x5b0] sm:$0xff] }
 0x1e9   :  { %v6717_v16 = vadd.f32 %v6716_v24, %v6715_v41  ;;  %v8314_v53 = vcombine.high %v814_v22, %v838_v23  ;;  %v8311_v29 = vcombine.low %v813_v13, %v837_v58  ;;  %v8313_v28 = vcombine.low %v814_v22, %v838_v23  ;;  %v264_v44 = vld [vmem:[#allocation6 + $0x5b8] sm:$0xff]  ;;  %v335_v47 = vld [vmem:[#allocation6 + $0x7f0] sm:$0xff] }
 0x1ea   :  { %v6720_v17 = vsel %vm6301_vm0, %v6497_v11, 0.0  ;;  %v7596_v30 = vcombine.high %v95_v60, %v119_v45  ;;  %v7598_v55 = vcombine.high %v96_v46, %v120_v39  ;;  %v7595_v52 = vcombine.low %v95_v60, %v119_v45  ;;  %v288_v11 = vld [vmem:[#allocation6 + $0x678] sm:$0xff]  ;;  %v359_v18 = vld [vmem:[#allocation6 + $0x8b0] sm:$0xff] }
 0x1eb   :  { %5231 = vmatpush1.bf16.msra.mxu0 %v8167_v33  ;;  %v6719_v49 = vadd.f32 %v6718_v34, %v6717_v16  ;;  %5272 = vmatpush1.bf16.msra.mxu1 %v8169_v9  ;;  %v7597_v19 = vcombine.low %v96_v46, %v120_v39  ;;  %v7644_v36 = vcombine.high %v143_v62, %v167_v31  ;;  %v287_v9 = vld [vmem:[#allocation6 + $0x670] sm:$0xff]  ;;  %v312_v24 = vld [vmem:[#allocation6 + $0x738] sm:$0xff] }
 0x1ec   :  { %5232 = vmatprep.subr.bf16.mxu0 %v8216_v10  ;;  %5273 = vmatprep.subr.bf16.mxu1 %v8218_v12  ;;  %v7646_v48 = vcombine.high %v144_v35, %v168_v1  ;;  %v7643_v26 = vcombine.low %v143_v62, %v167_v31  ;;  %v7645_v56 = vcombine.low %v144_v35, %v168_v1  ;;  %v311_v10 = vld [vmem:[#allocation6 + $0x730] sm:$0xff]  ;;  %v336_v34 = vld [vmem:[#allocation6 + $0x7f8] sm:$0xff] }
 0x1ed   :  { %v8935_v25 = vadd.f32 %v6720_v17, %v6719_v49  ;;  %v7692_v57 = vcombine.high %v191_v5, %v215_v4  ;;  %v7694_v6 = vcombine.high %v192_v8, %v216_v38  ;;  %v7691_v63 = vcombine.low %v191_v5, %v215_v4  ;;  %v383_v13 = vld [vmem:[#allocation6 + $0x970] sm:$0xff]  ;;  %v384_v17 = vld [vmem:[#allocation6 + $0x978] sm:$0xff] }
 0x1ee   :  { %v7693_v7 = vcombine.low %v192_v8, %v216_v38  ;;  %v7740_v33 = vcombine.high %v239_v42, %v263_v61  ;;  %v7742_v41 = vcombine.high %v240_v59, %v264_v44  ;;  %v7739_v12 = vcombine.low %v239_v42, %v263_v61  ;;  %v407_v58 = vld [vmem:[#allocation6 + $0xa30] sm:$0xff]  ;;  %v408_v22 = vld [vmem:[#allocation6 + $0xa38] sm:$0xff] }
 0x1ef   :  { %5233 = vmatpush1.bf16.msra.mxu0 %v8215_v50  ;;  %5274 = vmatpush1.bf16.msra.mxu1 %v8217_v43  ;;  %v7741_v40 = vcombine.low %v240_v59, %v264_v44  ;;  %v7788_v15 = vcombine.high %v287_v9, %v311_v10  ;;  %v7790_v16 = vcombine.high %v288_v11, %v312_v24  ;;  %v360_v50 = vld [vmem:[#allocation6 + $0x8b8] sm:$0xff]  ;;  %v431_v60 = vld [vmem:[#allocation6 + $0xaf0] sm:$0xff] }
 0x1f0   :  { %5234 = vmatprep.subr.bf16.mxu0 %v8264_v51  ;;  %5275 = vmatprep.subr.bf16.mxu1 %v8266_v0  ;;  %v7787_v49 = vcombine.low %v287_v9, %v311_v10  ;;  %v7789_v43 = vcombine.low %v288_v11, %v312_v24  ;;  %v7836_v51 = vcombine.high %v335_v47, %v359_v18  ;;  %v455_v45 = vld [vmem:[#allocation6 + $0xbb0] sm:$0xff] }
 0x1f1   :  { %v7838_v0 = vcombine.high %v336_v34, %v360_v50  ;;  %v7835_v23 = vcombine.low %v335_v47, %v359_v18  ;;  %v7883_v31 = vcombine.low %v383_v13, %v407_v58  ;;  %v479_v8 = vld [vmem:[#allocation6 + $0xc70] sm:$0xff]  ;;  %v7931_v42 = vcombine.low %v431_v60, %v455_v45  ;;  %v8953_v47 = vld [vmem:[#allocation6 + $0xf78] sm:$0xff] }
 0x1f2   :  { %v503_v38 = vld [vmem:[#allocation6 + $0xd30] sm:$0xff]  ;;  %v8955_v18 = vld [vmem:[#allocation6 + $0x1038] sm:$0xff] }
 0x1f3   :  { %5235 = vmatpush1.bf16.msra.mxu0 %v8263_v14  ;;  %5276 = vmatpush1.bf16.msra.mxu1 %v8265_v20  ;;  %v7837_v14 = vcombine.low %v336_v34, %v360_v50  ;;  %v7884_v20 = vcombine.high %v383_v13, %v407_v58  ;;  %v8943_v61 = vld [vmem:[#allocation6 + $0xdf0] sm:$0xff]  ;;  %v7979_v9 = vcombine.low %v479_v8, %v503_v38 }
 0x1f4   :  { %5236 = vmatprep.subr.bf16.mxu0 %v8312_v54  ;;  %5277 = vmatprep.subr.bf16.mxu1 %v8314_v53  ;;  %v7886_v53 = vcombine.high %v384_v17, %v408_v22  ;;  %v8949_v11 = vld [vmem:[#allocation6 + $0xf70] sm:$0xff] }
 0x1f7   :  { %5237 = vmatpush1.bf16.msra.mxu0 %v8311_v29  ;;  %5278 = vmatpush1.bf16.msra.mxu1 %v8313_v28  ;;  %v432_v29 = vld [vmem:[#allocation6 + $0xaf8] sm:$0xff] }
 0x1f8   :  { %5288 = vmatprep.subr.bf16.mxu0 %v7596_v30  ;;  %5329 = vmatprep.subr.bf16.mxu1 %v7598_v55  ;;  %v456_v28 = vld [vmem:[#allocation6 + $0xbb8] sm:$0xff] }
 0x1f9   :  { %v7934_v4 = vcombine.high %v432_v29, %v456_v28  ;;  %v7933_v44 = vcombine.low %v432_v29, %v456_v28 }
 0x1fa   :  { %5239 = vmatmul.mubr.bf16.vlgmr.msra.gmra.mrb[24].mxu0 %v8541_v21  ;;  %5280 = vmatmul.mubr.bf16.vlgmr.msra.gmra.mrb[24].mxu1 %v8541_v21 }
 0x1fb   :  { %5289 = vmatpush1.bf16.msra.mxu0 %v7595_v52  ;;  %5330 = vmatpush1.bf16.msra.mxu1 %v7597_v19  ;;  %v7885_v19 = vcombine.low %v384_v17, %v408_v22 }
 0x1fc   :  { %5290 = vmatprep.subr.bf16.mxu0 %v7644_v36  ;;  %5331 = vmatprep.subr.bf16.mxu1 %v7646_v48  ;;  %v7932_v36 = vcombine.high %v431_v60, %v455_v45 }
 0x1fd   :  { %5320 = vmatprep.mubr.bf16.mxu0 %v8535_v3  ;;  %5361 = vmatprep.mubr.bf16.mxu1 %v8535_v3 }
 0x1ff   :  { %5291 = vmatpush1.bf16.msra.mxu0 %v7643_v26  ;;  %5332 = vmatpush1.bf16.msra.mxu1 %v7645_v56  ;;  %v480_v56 = vld [vmem:[#allocation6 + $0xc78] sm:$0xff] }
 0x200   :  { %5292 = vmatprep.subr.bf16.mxu0 %v7692_v57  ;;  %5333 = vmatprep.subr.bf16.mxu1 %v7694_v6  ;;  %v504_v57 = vld [vmem:[#allocation6 + $0xd38] sm:$0xff] }
 0x201   :  { %v6004_v6 = vld [vmem:[#allocation8 + $0x18] sm:$0xff]  ;;  %v7982_v10 = vcombine.high %v480_v56, %v504_v57 }
 0x203   :  { %5293 = vmatpush1.bf16.msra.mxu0 %v7691_v63  ;;  %5334 = vmatpush1.bf16.msra.mxu1 %v7693_v7  ;;  %v7980_v63 = vcombine.high %v479_v8, %v503_v38  ;;  %v551_v7 = vld [vmem:[#allocation6 + $0xeb0] sm:$0xff]  ;;  %v648_v8 = vld [vmem:[#allocation6 + $0x11b8] sm:$0xff] }
 0x204   :  { %5294 = vmatprep.subr.bf16.mxu0 %v7740_v33  ;;  %5335 = vmatprep.subr.bf16.mxu1 %v7742_v41  ;;  %v8945_v33 = vld [vmem:[#allocation6 + $0xdf8] sm:$0xff]  ;;  %v8027_v34 = vcombine.low %v8943_v61, %v551_v7  ;;  %v8028_v50 = vcombine.high %v8943_v61, %v551_v7  ;;  %v671_v7 = vld [vmem:[#allocation6 + $0x1270] sm:$0xff] }
 0x205   :  { %v8947_v41 = vld [vmem:[#allocation6 + $0xeb8] sm:$0xff] }
 0x207   :  { %5295 = vmatpush1.bf16.msra.mxu0 %v7739_v12  ;;  %5336 = vmatpush1.bf16.msra.mxu1 %v7741_v40 }
 0x208   :  { %5296 = vmatprep.subr.bf16.mxu0 %v7788_v15  ;;  %5337 = vmatprep.subr.bf16.mxu1 %v7790_v16  ;;  %v7981_v15 = vcombine.low %v480_v56, %v504_v57  ;;  %v8951_v16 = vld [vmem:[#allocation6 + $0x1030] sm:$0xff]  ;;  %v8077_v57 = vcombine.low %v8953_v47, %v8955_v18 }
 0x209   :  { %v8075_v22 = vcombine.low %v8949_v11, %v8951_v16 }
 0x20b   :  { %5297 = vmatpush1.bf16.msra.mxu0 %v7787_v49  ;;  %5338 = vmatpush1.bf16.msra.mxu1 %v7789_v43  ;;  %v8029_v49 = vcombine.low %v8945_v33, %v8947_v41  ;;  %v8030_v43 = vcombine.high %v8945_v33, %v8947_v41  ;;  %v695_v33 = vld [vmem:[#allocation6 + $0x1330] sm:$0xff] }
 0x20c   :  { %5298 = vmatprep.subr.bf16.mxu0 %v7836_v51  ;;  %5339 = vmatprep.subr.bf16.mxu1 %v7838_v0 }
 0x20d   :  { %v4994_v54 = vpop.f32.mrb[12].mxu0  ;;  %v5035_v46 = vpop.f32.mrb[12].mxu1 }
 0x20e   :  { %v4996_v39 = vpop.f32.mrb[13].mxu0  ;;  %v5037_v55 = vpop.f32.mrb[13].mxu1 }
 0x20f   :  { %v5797_v30 = vcombine.low %v4994_v54, %v4996_v39  ;;  %v4998_v62 = vpop.f32.mrb[14].mxu0  ;;  %5299 = vmatpush1.bf16.msra.mxu0 %v7835_v23  ;;  %v5798_v35 = vcombine.low %v5035_v46, %v5037_v55  ;;  %v5039_v1 = vpop.f32.mrb[14].mxu1  ;;  %5340 = vmatpush1.bf16.msra.mxu1 %v7837_v14  ;;  %v8076_v23 = vcombine.high %v8949_v11, %v8951_v16  ;;  %v672_v11 = vld [vmem:[#allocation6 + $0x1278] sm:$0xff] }
 0x210   :  { %v4999_v52 = vpop.f32.mrb[15].mxu0  ;;  %5300 = vmatprep.subr.bf16.mxu0 %v7884_v20  ;;  %v5040_v5 = vpop.f32.mrb[15].mxu1  ;;  %5341 = vmatprep.subr.bf16.mxu1 %v7886_v53  ;;  %v8078_v14 = vcombine.high %v8953_v47, %v8955_v18  ;;  %v623_v1 = vld [vmem:[#allocation6 + $0x10f0] sm:$0xff] }
 0x211   :  { %v5805_v48 = vrot.slane %v5797_v30, %v8560_v27  ;;  %v5812_v26 = vrot.slane %v5798_v35, %v8560_v27  ;;  %v647_v52 = vld [vmem:[#allocation6 + $0x11b0] sm:$0xff] }
 0x212   :  { %v8124_v61 = vcombine.high %v623_v1, %v647_v52 }
 0x213   :  { %5301 = vmatpush1.bf16.msra.mxu0 %v7883_v31  ;;  %v5813_v59 = vcombine.low %v5805_v48, %v5812_v26  ;;  %5342 = vmatpush1.bf16.msra.mxu1 %v7885_v19 }
 0x214   :  { %5302 = vmatprep.subr.bf16.mxu0 %v7932_v36  ;;  %5343 = vmatprep.subr.bf16.mxu1 %v7934_v4  ;;  %v624_v4 = vld [vmem:[#allocation6 + $0x10f8] sm:$0xff] }
 0x215   :  { %v6016_v24 = vsub.f32 %v5813_v59, %v6004_v6  ;;  %v6028_v12 = vmul.f32 %v6004_v6, %v5813_v59  ;;  %v6402_v40 = vsub.f32 0.0, %v5813_v59 }
 0x217   :  { %5303 = vmatpush1.bf16.msra.mxu0 %v7931_v42  ;;  %v6100_v51 = vcombine.high %v6028_v12, %v6028_v12  ;;  %v6107_v0 = vrot.slane %v6028_v12, %v8560_v27  ;;  %v6417_v13 = vmul.f32 1.442695, %v6402_v40  ;;  %v6799_v58 = vmul.f32 %v6016_v24, %v6016_v24  ;;  %5344 = vmatpush1.bf16.msra.mxu1 %v7933_v44 }
 0x218   :  { %5304 = vmatprep.subr.bf16.mxu0 %v7980_v63  ;;  %v7172_v17 = vand.u32 2147483647, %v6016_v24  ;;  %5345 = vmatprep.subr.bf16.mxu1 %v7982_v10  ;;  %v8126_v63 = vcombine.high %v624_v4, %v648_v8  ;;  %v696_v24 = vld [vmem:[#allocation6 + $0x1338] sm:$0xff]  ;;  %v8123_v40 = vcombine.low %v623_v1, %v647_v52 }
 0x219   :  { %v6114_v20 = vrot.slane %v6100_v51, %v8560_v27  ;;  %v6115_v54 = vcombine.high %v6107_v0, %v6107_v0  ;;  %v6325_v53 = vsel %vm6301_vm0, %v6107_v0, 0.0  ;;  %8349 = vpow2.f32 %v6417_v13  ;;  %v719_v0 = vld [vmem:[#allocation6 + $0x13f0] sm:$0xff] }
 0x21a   :  { %v6326_v60 = vadd.f32 %v6325_v53, %v8919_v2  ;;  %v6871_v45 = vcombine.high %v6799_v58, %v6799_v58  ;;  %v6878_v46 = vrot.slane %v6799_v58, %v8560_v27  ;;  %v7244_v39 = vcombine.high %v7172_v17, %v7172_v17  ;;  %v743_v13 = vld [vmem:[#allocation6 + $0x14b0] sm:$0xff] }
 0x21b   :  { %5305 = vmatpush1.bf16.msra.mxu0 %v7979_v9  ;;  %v6116_v29 = vcombine.high %v6114_v20, %v6114_v20  ;;  %v6327_v28 = vsel %vm6301_vm0, %v6115_v54, 0.0  ;;  %v6329_v30 = vsel %vm6301_vm0, %v6114_v20, 0.0  ;;  %v7251_v55 = vrot.slane %v7172_v17, %v8560_v27  ;;  %5346 = vmatpush1.bf16.msra.mxu1 %v7981_v15  ;;  %v720_v17 = vld [vmem:[#allocation6 + $0x13f8] sm:$0xff] }
 0x21c   :  { %5306 = vmatprep.subr.bf16.mxu0 %v8028_v50  ;;  %v6328_v62 = vadd.f32 %v6327_v28, %v6326_v60  ;;  %v6885_v31 = vrot.slane %v6871_v45, %v8560_v27  ;;  %v6886_v35 = vcombine.high %v6878_v46, %v6878_v46  ;;  %v7095_v2 = vsel %vm6301_vm0, %v6878_v46, 0.0  ;;  %5347 = vmatprep.subr.bf16.mxu1 %v8030_v43 }
 0x21d   :  { %v7096_v19 = vadd.f32 %v7095_v2, %v8923_v37  ;;  %v7258_v36 = vrot.slane %v7244_v39, %v8560_v27  ;;  %v7259_v48 = vcombine.high %v7251_v55, %v7251_v55  ;;  %v7468_v5 = vsel %vm6301_vm0, %v7251_v55, 0.0  ;;  %v791_v55 = vld [vmem:[#allocation6 + $0x1630] sm:$0xff] }
 0x21e   :  { %v6330_v38 = vadd.f32 %v6329_v30, %v6328_v62  ;;  %v6887_v26 = vcombine.high %v6885_v31, %v6885_v31  ;;  %v7097_v56 = vsel %vm6301_vm0, %v6886_v35, 0.0  ;;  %v7469_v42 = vadd.f32 %v7468_v5, %v8927_v32  ;;  %v767_v30 = vld [vmem:[#allocation6 + $0x1570] sm:$0xff]  ;;  %v792_v35 = vld [vmem:[#allocation6 + $0x1638] sm:$0xff] }
 0x21f   :  { %5307 = vmatpush1.bf16.msra.mxu0 %v8027_v34  ;;  %v7098_v6 = vadd.f32 %v7097_v56, %v7096_v19  ;;  %v7470_v37 = vsel %vm6301_vm0, %v7259_v48, 0.0  ;;  %5348 = vmatpush1.bf16.msra.mxu1 %v8029_v49  ;;  %v7099_v59 = vsel %vm6301_vm0, %v6885_v31, 0.0  ;;  %v7260_v44 = vcombine.high %v7258_v36, %v7258_v36  ;;  %v768_v31 = vld [vmem:[#allocation6 + $0x1578] sm:$0xff]  ;;  %v815_v48 = vld [vmem:[#allocation6 + $0x16f0] sm:$0xff] }
 0x220   :  { %5308 = vmatprep.subr.bf16.mxu0 %v8076_v23  ;;  %5349 = vmatprep.subr.bf16.mxu1 %v8078_v14  ;;  %v6331_v41 = vsel %vm6301_vm0, %v6116_v29, 0.0  ;;  %v7471_v10 = vadd.f32 %v7470_v37, %v7469_v42  ;;  %v7472_v32 = vsel %vm6301_vm0, %v7258_v36, 0.0  ;;  %v8125_v15 = vcombine.low %v624_v4, %v648_v8  ;;  %v839_v5 = vld [vmem:[#allocation6 + $0x17b0] sm:$0xff]  ;;  %v816_v8 = vld [vmem:[#allocation6 + $0x16f8] sm:$0xff]  ;;  %v97_v37 = vld [vmem:[#allocation6 + $0x80] sm:$0xff] }
 0x221   :  { %v7100_v9 = vadd.f32 %v7099_v59, %v7098_v6  ;;  %v8989_v12 = vadd.f32 %v6331_v41, %v6330_v38  ;;  %v7101_v16 = vsel %vm6301_vm0, %v6887_v26, 0.0  ;;  %v8172_v34 = vcombine.high %v671_v7, %v695_v33  ;;  %v840_v38 = vld [vmem:[#allocation6 + $0x17b8] sm:$0xff]  ;;  %v98_v59 = vld [vmem:[#allocation6 + $0x88] sm:$0xff] }
 0x222   :  { %v7473_v18 = vadd.f32 %v7472_v32, %v7471_v10  ;;  %v8174_v51 = vcombine.high %v672_v11, %v696_v24  ;;  %v7474_v58 = vsel %vm6301_vm0, %v7260_v44, 0.0  ;;  %v8171_v53 = vcombine.low %v671_v7, %v695_v33  ;;  %v122_v44 = vld [vmem:[#allocation6 + $0x148] sm:$0xff]  ;;  %v169_v10 = vld [vmem:[#allocation6 + $0x2c0] sm:$0xff] }
 0x223   :  { %5309 = vmatpush1.bf16.msra.mxu0 %v8075_v22  ;;  %v8350_v47 = vpop.eup %8349  ;;  %5350 = vmatpush1.bf16.msra.mxu1 %v8077_v57  ;;  %v8993_v50 = vadd.f32 %v7101_v16, %v7100_v9  ;;  %v744_v22 = vld [vmem:[#allocation6 + $0x14b8] sm:$0xff]  ;;  %v8173_v45 = vcombine.low %v672_v11, %v696_v24  ;;  %v8220_v46 = vcombine.high %v719_v0, %v743_v13  ;;  %v145_v9 = vld [vmem:[#allocation6 + $0x200] sm:$0xff]  ;;  %v146_v11 = vld [vmem:[#allocation6 + $0x208] sm:$0xff] }
 0x224   :  { %5310 = vmatprep.subr.bf16.mxu0 %v8124_v61  ;;  %v6498_v49 = vcombine.high %v8350_v47, %v8350_v47  ;;  %v6505_v43 = vrot.slane %v8350_v47, %v8560_v27  ;;  %5351 = vmatprep.subr.bf16.mxu1 %v8126_v63  ;;  %v8997_v23 = vadd.f32 %v7474_v58, %v7473_v18  ;;  %v121_v61 = vld [vmem:[#allocation6 + $0x140] sm:$0xff]  ;;  %v170_v24 = vld [vmem:[#allocation6 + $0x2c8] sm:$0xff] }
 0x225   :  { %v8222_v28 = vcombine.high %v720_v17, %v744_v22  ;;  %v8219_v1 = vcombine.low %v719_v0, %v743_v13  ;;  %v8268_v19 = vcombine.high %v767_v30, %v791_v55  ;;  %v8270_v36 = vcombine.high %v768_v31, %v792_v35  ;;  %v193_v47 = vld [vmem:[#allocation6 + $0x380] sm:$0xff] }
 0x226   :  { %v6512_v14 = vrot.slane %v6498_v49, %v8560_v27  ;;  %v6513_v20 = vcombine.high %v6505_v43, %v6505_v43  ;;  %v6722_v54 = vsel %vm6301_vm0, %v6505_v43, 0.0  ;;  %v8267_v56 = vcombine.low %v767_v30, %v791_v55  ;;  %v217_v18 = vld [vmem:[#allocation6 + $0x440] sm:$0xff]  ;;  %v218_v49 = vld [vmem:[#allocation6 + $0x448] sm:$0xff] }
 0x227   :  { %5311 = vmatpush1.bf16.msra.mxu0 %v8123_v40  ;;  %v6723_v60 = vadd.f32 %v6722_v54, %v8935_v25  ;;  %5352 = vmatpush1.bf16.msra.mxu1 %v8125_v15  ;;  %v8221_v25 = vcombine.low %v720_v17, %v744_v22  ;;  %v8269_v57 = vcombine.low %v768_v31, %v792_v35  ;;  %v241_v58 = vld [vmem:[#allocation6 + $0x500] sm:$0xff]  ;;  %v242_v22 = vld [vmem:[#allocation6 + $0x508] sm:$0xff] }
 0x228   :  { %5312 = vmatprep.subr.bf16.mxu0 %v8172_v34  ;;  %v6514_v39 = vcombine.high %v6512_v14, %v6512_v14  ;;  %v6724_v29 = vsel %vm6301_vm0, %v6513_v20, 0.0  ;;  %5353 = vmatprep.subr.bf16.mxu1 %v8174_v51  ;;  %v6726_v2 = vsel %vm6301_vm0, %v6512_v14, 0.0  ;;  %v8316_v6 = vcombine.high %v815_v48, %v839_v5  ;;  %v194_v34 = vld [vmem:[#allocation6 + $0x388] sm:$0xff]  ;;  %v265_v17 = vld [vmem:[#allocation6 + $0x5c0] sm:$0xff] }
 0x229   :  { %v6725_v62 = vadd.f32 %v6724_v29, %v6723_v60  ;;  %v8318_v42 = vcombine.high %v816_v8, %v840_v38  ;;  %v8315_v63 = vcombine.low %v815_v48, %v839_v5  ;;  %v8317_v7 = vcombine.low %v816_v8, %v840_v38  ;;  %v266_v14 = vld [vmem:[#allocation6 + $0x5c8] sm:$0xff]  ;;  %v337_v31 = vld [vmem:[#allocation6 + $0x800] sm:$0xff] }
 0x22a   :  { %v6728_v4 = vsel %vm6301_vm0, %v6514_v39, 0.0  ;;  %v7600_v33 = vcombine.high %v97_v37, %v121_v61  ;;  %v7602_v41 = vcombine.high %v98_v59, %v122_v44  ;;  %v7599_v32 = vcombine.low %v97_v37, %v121_v61  ;;  %v290_v39 = vld [vmem:[#allocation6 + $0x688] sm:$0xff]  ;;  %v361_v35 = vld [vmem:[#allocation6 + $0x8c0] sm:$0xff] }
 0x22b   :  { %5313 = vmatpush1.bf16.msra.mxu0 %v8171_v53  ;;  %v6727_v52 = vadd.f32 %v6726_v2, %v6725_v62  ;;  %5354 = vmatpush1.bf16.msra.mxu1 %v8173_v45  ;;  %v7601_v40 = vcombine.low %v98_v59, %v122_v44  ;;  %v7648_v15 = vcombine.high %v145_v9, %v169_v10  ;;  %v289_v45 = vld [vmem:[#allocation6 + $0x680] sm:$0xff]  ;;  %v314_v29 = vld [vmem:[#allocation6 + $0x748] sm:$0xff] }
 0x22c   :  { %5314 = vmatprep.subr.bf16.mxu0 %v8220_v46  ;;  %5355 = vmatprep.subr.bf16.mxu1 %v8222_v28  ;;  %v7650_v16 = vcombine.high %v146_v11, %v170_v24  ;;  %v7647_v43 = vcombine.low %v145_v9, %v169_v10  ;;  %v7649_v51 = vcombine.low %v146_v11, %v170_v24  ;;  %v313_v46 = vld [vmem:[#allocation6 + $0x740] sm:$0xff]  ;;  %v338_v2 = vld [vmem:[#allocation6 + $0x808] sm:$0xff] }
 0x22d   :  { %v9005_v26 = vadd.f32 %v6728_v4, %v6727_v52  ;;  %v7696_v0 = vcombine.high %v193_v47, %v217_v18  ;;  %v7698_v13 = vcombine.high %v194_v34, %v218_v49  ;;  %v7695_v20 = vcombine.low %v193_v47, %v217_v18  ;;  %v385_v48 = vld [vmem:[#allocation6 + $0x980] sm:$0xff]  ;;  %v386_v4 = vld [vmem:[#allocation6 + $0x988] sm:$0xff] }
 0x22e   :  { %v7697_v54 = vcombine.low %v194_v34, %v218_v49  ;;  %v7744_v53 = vcombine.high %v241_v58, %v265_v17  ;;  %v7746_v60 = vcombine.high %v242_v22, %v266_v14  ;;  %v7743_v28 = vcombine.low %v241_v58, %v265_v17  ;;  %v409_v5 = vld [vmem:[#allocation6 + $0xa40] sm:$0xff]  ;;  %v410_v8 = vld [vmem:[#allocation6 + $0xa48] sm:$0xff] }
 0x22f   :  { %5315 = vmatpush1.bf16.msra.mxu0 %v8219_v1  ;;  %5356 = vmatpush1.bf16.msra.mxu1 %v8221_v25  ;;  %v7745_v30 = vcombine.low %v242_v22, %v266_v14  ;;  %v7792_v55 = vcombine.high %v289_v45, %v313_v46  ;;  %v7794_v62 = vcombine.high %v290_v39, %v314_v29  ;;  %v362_v1 = vld [vmem:[#allocation6 + $0x8c8] sm:$0xff]  ;;  %v433_v37 = vld [vmem:[#allocation6 + $0xb00] sm:$0xff] }
 0x230   :  { %5316 = vmatprep.subr.bf16.mxu0 %v8268_v19  ;;  %5357 = vmatprep.subr.bf16.mxu1 %v8270_v36  ;;  %v7791_v52 = vcombine.low %v289_v45, %v313_v46  ;;  %v7793_v25 = vcombine.low %v290_v39, %v314_v29  ;;  %v7840_v19 = vcombine.high %v337_v31, %v361_v35  ;;  %v457_v61 = vld [vmem:[#allocation6 + $0xbc0] sm:$0xff] }
 0x231   :  { %v7842_v36 = vcombine.high %v338_v2, %v362_v1  ;;  %v7839_v38 = vcombine.low %v337_v31, %v361_v35  ;;  %v7887_v10 = vcombine.low %v385_v48, %v409_v5  ;;  %v481_v34 = vld [vmem:[#allocation6 + $0xc80] sm:$0xff]  ;;  %v7935_v58 = vcombine.low %v433_v37, %v457_v61  ;;  %v9023_v31 = vld [vmem:[#allocation6 + $0xf88] sm:$0xff] }
 0x232   :  { %v505_v49 = vld [vmem:[#allocation6 + $0xd40] sm:$0xff]  ;;  %v9025_v35 = vld [vmem:[#allocation6 + $0x1048] sm:$0xff] }
 0x233   :  { %5317 = vmatpush1.bf16.msra.mxu0 %v8267_v56  ;;  %5358 = vmatpush1.bf16.msra.mxu1 %v8269_v57  ;;  %v7841_v56 = vcombine.low %v338_v2, %v362_v1  ;;  %v7888_v57 = vcombine.high %v385_v48, %v409_v5  ;;  %v9013_v17 = vld [vmem:[#allocation6 + $0xe00] sm:$0xff]  ;;  %v7983_v45 = vcombine.low %v481_v34, %v505_v49 }
 0x234   :  { %5318 = vmatprep.subr.bf16.mxu0 %v8316_v6  ;;  %5359 = vmatprep.subr.bf16.mxu1 %v8318_v42  ;;  %v7890_v42 = vcombine.high %v386_v4, %v410_v8  ;;  %v9019_v39 = vld [vmem:[#allocation6 + $0xf80] sm:$0xff] }
 0x237   :  { %5319 = vmatpush1.bf16.msra.mxu0 %v8315_v63  ;;  %5360 = vmatpush1.bf16.msra.mxu1 %v8317_v7  ;;  %v434_v63 = vld [vmem:[#allocation6 + $0xb08] sm:$0xff] }
 0x238   :  { %5370 = vmatprep.subr.bf16.mxu0 %v7600_v33  ;;  %5411 = vmatprep.subr.bf16.mxu1 %v7602_v41  ;;  %v458_v7 = vld [vmem:[#allocation6 + $0xbc8] sm:$0xff] }
 0x239   :  { %v7938_v18 = vcombine.high %v434_v63, %v458_v7  ;;  %v7937_v14 = vcombine.low %v434_v63, %v458_v7 }
 0x23a   :  { %5321 = vmatmul.mubr.bf16.vlgmr.msra.gmra.mrb[28].mxu0 %v8541_v21  ;;  %5362 = vmatmul.mubr.bf16.vlgmr.msra.gmra.mrb[28].mxu1 %v8541_v21 }
 0x23b   :  { %5371 = vmatpush1.bf16.msra.mxu0 %v7599_v32  ;;  %5412 = vmatpush1.bf16.msra.mxu1 %v7601_v40  ;;  %v7889_v40 = vcombine.low %v386_v4, %v410_v8 }
 0x23c   :  { %5372 = vmatprep.subr.bf16.mxu0 %v7648_v15  ;;  %5413 = vmatprep.subr.bf16.mxu1 %v7650_v16  ;;  %v7936_v15 = vcombine.high %v433_v37, %v457_v61 }
 0x23d   :  { %5402 = vmatprep.mubr.bf16.mxu0 %v8535_v3  ;;  %5443 = vmatprep.mubr.bf16.mxu1 %v8535_v3 }
 0x23f   :  { %5373 = vmatpush1.bf16.msra.mxu0 %v7647_v43  ;;  %5414 = vmatpush1.bf16.msra.mxu1 %v7649_v51  ;;  %v482_v51 = vld [vmem:[#allocation6 + $0xc88] sm:$0xff] }
 0x240   :  { %5374 = vmatprep.subr.bf16.mxu0 %v7696_v0  ;;  %5415 = vmatprep.subr.bf16.mxu1 %v7698_v13  ;;  %v506_v0 = vld [vmem:[#allocation6 + $0xd48] sm:$0xff]  ;;  %v6005_v13 = vld [vmem:[#allocation8 + $0x20] sm:$0xff] }
 0x241   :  { %v7986_v46 = vcombine.high %v482_v51, %v506_v0 }
 0x243   :  { %5375 = vmatpush1.bf16.msra.mxu0 %v7695_v20  ;;  %5416 = vmatpush1.bf16.msra.mxu1 %v7697_v54  ;;  %v7984_v20 = vcombine.high %v481_v34, %v505_v49  ;;  %v553_v54 = vld [vmem:[#allocation6 + $0xec0] sm:$0xff]  ;;  %v650_v34 = vld [vmem:[#allocation6 + $0x11c8] sm:$0xff] }
 0x244   :  { %5376 = vmatprep.subr.bf16.mxu0 %v7744_v53  ;;  %5417 = vmatprep.subr.bf16.mxu1 %v7746_v60  ;;  %v9015_v53 = vld [vmem:[#allocation6 + $0xe08] sm:$0xff]  ;;  %v8031_v2 = vcombine.low %v9013_v17, %v553_v54  ;;  %v8032_v1 = vcombine.high %v9013_v17, %v553_v54  ;;  %v673_v54 = vld [vmem:[#allocation6 + $0x1280] sm:$0xff] }
 0x245   :  { %v9017_v60 = vld [vmem:[#allocation6 + $0xec8] sm:$0xff] }
 0x247   :  { %5377 = vmatpush1.bf16.msra.mxu0 %v7743_v28  ;;  %5418 = vmatpush1.bf16.msra.mxu1 %v7745_v30 }
 0x248   :  { %5378 = vmatprep.subr.bf16.mxu0 %v7792_v55  ;;  %5419 = vmatprep.subr.bf16.mxu1 %v7794_v62  ;;  %v7985_v55 = vcombine.low %v482_v51, %v506_v0  ;;  %v9021_v62 = vld [vmem:[#allocation6 + $0x1040] sm:$0xff]  ;;  %v8081_v0 = vcombine.low %v9023_v31, %v9025_v35 }
 0x249   :  { %v8079_v8 = vcombine.low %v9019_v39, %v9021_v62 }
 0x24b   :  { %5379 = vmatpush1.bf16.msra.mxu0 %v7791_v52  ;;  %5420 = vmatpush1.bf16.msra.mxu1 %v7793_v25  ;;  %v8033_v52 = vcombine.low %v9015_v53, %v9017_v60  ;;  %v8034_v25 = vcombine.high %v9015_v53, %v9017_v60  ;;  %v697_v53 = vld [vmem:[#allocation6 + $0x1340] sm:$0xff] }
 0x24c   :  { %5380 = vmatprep.subr.bf16.mxu0 %v7840_v19  ;;  %5421 = vmatprep.subr.bf16.mxu1 %v7842_v36 }
 0x24d   :  { %v5076_v6 = vpop.f32.mrb[16].mxu0  ;;  %v5117_v59 = vpop.f32.mrb[16].mxu1 }
 0x24e   :  { %v5078_v44 = vpop.f32.mrb[17].mxu0  ;;  %v5119_v41 = vpop.f32.mrb[17].mxu1 }
 0x24f   :  { %v5814_v33 = vcombine.low %v5076_v6, %v5078_v44  ;;  %v5080_v9 = vpop.f32.mrb[18].mxu0  ;;  %5381 = vmatpush1.bf16.msra.mxu0 %v7839_v38  ;;  %v5815_v11 = vcombine.low %v5117_v59, %v5119_v41  ;;  %v5121_v24 = vpop.f32.mrb[18].mxu1  ;;  %5422 = vmatpush1.bf16.msra.mxu1 %v7841_v56  ;;  %v8080_v38 = vcombine.high %v9019_v39, %v9021_v62  ;;  %v674_v39 = vld [vmem:[#allocation6 + $0x1288] sm:$0xff] }
 0x250   :  { %v5081_v32 = vpop.f32.mrb[19].mxu0  ;;  %5382 = vmatprep.subr.bf16.mxu0 %v7888_v57  ;;  %v5122_v47 = vpop.f32.mrb[19].mxu1  ;;  %5423 = vmatprep.subr.bf16.mxu1 %v7890_v42  ;;  %v8082_v56 = vcombine.high %v9023_v31, %v9025_v35  ;;  %v625_v24 = vld [vmem:[#allocation6 + $0x1100] sm:$0xff] }
 0x251   :  { %v5822_v16 = vrot.slane %v5814_v33, %v8560_v27  ;;  %v5829_v43 = vrot.slane %v5815_v11, %v8560_v27  ;;  %v649_v32 = vld [vmem:[#allocation6 + $0x11c0] sm:$0xff] }
 0x252   :  { %v8128_v17 = vcombine.high %v625_v24, %v649_v32 }
 0x253   :  { %5383 = vmatpush1.bf16.msra.mxu0 %v7887_v10  ;;  %v5830_v22 = vcombine.low %v5822_v16, %v5829_v43  ;;  %5424 = vmatpush1.bf16.msra.mxu1 %v7889_v40 }
 0x254   :  { %5384 = vmatprep.subr.bf16.mxu0 %v7936_v15  ;;  %5425 = vmatprep.subr.bf16.mxu1 %v7938_v18  ;;  %v626_v18 = vld [vmem:[#allocation6 + $0x1108] sm:$0xff] }
 0x255   :  { %v6017_v29 = vsub.f32 %v5830_v22, %v6005_v13  ;;  %v6029_v28 = vmul.f32 %v6005_v13, %v5830_v22  ;;  %v6403_v30 = vsub.f32 0.0, %v5830_v22 }
 0x257   :  { %5385 = vmatpush1.bf16.msra.mxu0 %v7935_v58  ;;  %v6117_v19 = vcombine.high %v6029_v28, %v6029_v28  ;;  %v6124_v36 = vrot.slane %v6029_v28, %v8560_v27  ;;  %v6419_v48 = vmul.f32 1.442695, %v6403_v30  ;;  %v6800_v5 = vmul.f32 %v6017_v29, %v6017_v29  ;;  %5426 = vmatpush1.bf16.msra.mxu1 %v7937_v14 }
 0x258   :  { %5386 = vmatprep.subr.bf16.mxu0 %v7984_v20  ;;  %v7173_v4 = vand.u32 2147483647, %v6017_v29  ;;  %5427 = vmatprep.subr.bf16.mxu1 %v7986_v46  ;;  %v8130_v20 = vcombine.high %v626_v18, %v650_v34  ;;  %v698_v29 = vld [vmem:[#allocation6 + $0x1348] sm:$0xff]  ;;  %v8127_v30 = vcombine.low %v625_v24, %v649_v32 }
 0x259   :  { %v6131_v57 = vrot.slane %v6117_v19, %v8560_v27  ;;  %v6132_v6 = vcombine.high %v6124_v36, %v6124_v36  ;;  %v6333_v42 = vsel %vm6301_vm0, %v6124_v36, 0.0  ;;  %8351 = vpow2.f32 %v6419_v48  ;;  %v721_v36 = vld [vmem:[#allocation6 + $0x1400] sm:$0xff] }
 0x25a   :  { %v6334_v37 = vadd.f32 %v6333_v42, %v8989_v12  ;;  %v6888_v61 = vcombine.high %v6800_v5, %v6800_v5  ;;  %v6895_v59 = vrot.slane %v6800_v5, %v8560_v27  ;;  %v7261_v44 = vcombine.high %v7173_v4, %v7173_v4  ;;  %v745_v48 = vld [vmem:[#allocation6 + $0x14c0] sm:$0xff] }
 0x25b   :  { %5387 = vmatpush1.bf16.msra.mxu0 %v7983_v45  ;;  %v6133_v63 = vcombine.high %v6131_v57, %v6131_v57  ;;  %v6335_v7 = vsel %vm6301_vm0, %v6132_v6, 0.0  ;;  %v6337_v33 = vsel %vm6301_vm0, %v6131_v57, 0.0  ;;  %v7268_v41 = vrot.slane %v7173_v4, %v8560_v27  ;;  %5428 = vmatpush1.bf16.msra.mxu1 %v7985_v55  ;;  %v722_v4 = vld [vmem:[#allocation6 + $0x1408] sm:$0xff] }
 0x25c   :  { %5388 = vmatprep.subr.bf16.mxu0 %v8032_v1  ;;  %v6336_v9 = vadd.f32 %v6335_v7, %v6334_v37  ;;  %v6902_v10 = vrot.slane %v6888_v61, %v8560_v27  ;;  %v6903_v11 = vcombine.high %v6895_v59, %v6895_v59  ;;  %v7103_v12 = vsel %vm6301_vm0, %v6895_v59, 0.0  ;;  %5429 = vmatprep.subr.bf16.mxu1 %v8034_v25 }
 0x25d   :  { %v7104_v40 = vadd.f32 %v7103_v12, %v8993_v50  ;;  %v7275_v15 = vrot.slane %v7261_v44, %v8560_v27  ;;  %v7276_v16 = vcombine.high %v7268_v41, %v7268_v41  ;;  %v7476_v47 = vsel %vm6301_vm0, %v7268_v41, 0.0  ;;  %v793_v41 = vld [vmem:[#allocation6 + $0x1640] sm:$0xff] }
 0x25e   :  { %v6338_v49 = vadd.f32 %v6337_v33, %v6336_v9  ;;  %v6904_v43 = vcombine.high %v6902_v10, %v6902_v10  ;;  %v7105_v51 = vsel %vm6301_vm0, %v6903_v11, 0.0  ;;  %v7477_v58 = vadd.f32 %v7476_v47, %v8997_v23  ;;  %v769_v33 = vld [vmem:[#allocation6 + $0x1580] sm:$0xff]  ;;  %v794_v11 = vld [vmem:[#allocation6 + $0x1648] sm:$0xff] }
 0x25f   :  { %5389 = vmatpush1.bf16.msra.mxu0 %v8031_v2  ;;  %v7106_v13 = vadd.f32 %v7105_v51, %v7104_v40  ;;  %v7478_v50 = vsel %vm6301_vm0, %v7276_v16, 0.0  ;;  %5430 = vmatpush1.bf16.msra.mxu1 %v8033_v52  ;;  %v7107_v22 = vsel %vm6301_vm0, %v6902_v10, 0.0  ;;  %v7277_v14 = vcombine.high %v7275_v15, %v7275_v15  ;;  %v770_v10 = vld [vmem:[#allocation6 + $0x1588] sm:$0xff]  ;;  %v817_v16 = vld [vmem:[#allocation6 + $0x1700] sm:$0xff] }
 0x260   :  { %5390 = vmatprep.subr.bf16.mxu0 %v8080_v38  ;;  %5431 = vmatprep.subr.bf16.mxu1 %v8082_v56  ;;  %v6339_v60 = vsel %vm6301_vm0, %v6133_v63, 0.0  ;;  %v7479_v46 = vadd.f32 %v7478_v50, %v7477_v58  ;;  %v7480_v23 = vsel %vm6301_vm0, %v7275_v15, 0.0  ;;  %v8129_v55 = vcombine.low %v626_v18, %v650_v34  ;;  %v841_v47 = vld [vmem:[#allocation6 + $0x17c0] sm:$0xff]  ;;  %v818_v34 = vld [vmem:[#allocation6 + $0x1708] sm:$0xff]  ;;  %v99_v50 = vld [vmem:[#allocation6 + $0x90] sm:$0xff] }
 0x261   :  { %v7108_v45 = vadd.f32 %v7107_v22, %v7106_v13  ;;  %v9059_v28 = vadd.f32 %v6339_v60, %v6338_v49  ;;  %v7109_v62 = vsel %vm6301_vm0, %v6904_v43, 0.0  ;;  %v8176_v2 = vcombine.high %v673_v54, %v697_v53  ;;  %v842_v49 = vld [vmem:[#allocation6 + $0x17c8] sm:$0xff]  ;;  %v100_v22 = vld [vmem:[#allocation6 + $0x98] sm:$0xff] }
 0x262   :  { %v7481_v35 = vadd.f32 %v7480_v23, %v7479_v46  ;;  %v8178_v19 = vcombine.high %v674_v39, %v698_v29  ;;  %v7482_v5 = vsel %vm6301_vm0, %v7277_v14, 0.0  ;;  %v8175_v42 = vcombine.low %v673_v54, %v697_v53  ;;  %v124_v14 = vld [vmem:[#allocation6 + $0x158] sm:$0xff]  ;;  %v171_v46 = vld [vmem:[#allocation6 + $0x2d0] sm:$0xff] }
 0x263   :  { %5391 = vmatpush1.bf16.msra.mxu0 %v8079_v8  ;;  %v8352_v31 = vpop.eup %8351  ;;  %5432 = vmatpush1.bf16.msra.mxu1 %v8081_v0  ;;  %v9063_v1 = vadd.f32 %v7109_v62, %v7108_v45  ;;  %v746_v8 = vld [vmem:[#allocation6 + $0x14c8] sm:$0xff]  ;;  %v8177_v61 = vcombine.low %v674_v39, %v698_v29  ;;  %v8224_v59 = vcombine.high %v721_v36, %v745_v48  ;;  %v147_v45 = vld [vmem:[#allocation6 + $0x210] sm:$0xff]  ;;  %v148_v39 = vld [vmem:[#allocation6 + $0x218] sm:$0xff] }
 0x264   :  { %5392 = vmatprep.subr.bf16.mxu0 %v8128_v17  ;;  %v6515_v52 = vcombine.high %v8352_v31, %v8352_v31  ;;  %v6522_v25 = vrot.slane %v8352_v31, %v8560_v27  ;;  %5433 = vmatprep.subr.bf16.mxu1 %v8130_v20  ;;  %v9067_v38 = vadd.f32 %v7482_v5, %v7481_v35  ;;  %v123_v17 = vld [vmem:[#allocation6 + $0x150] sm:$0xff]  ;;  %v172_v29 = vld [vmem:[#allocation6 + $0x2d8] sm:$0xff] }
 0x265   :  { %v8226_v7 = vcombine.high %v722_v4, %v746_v8  ;;  %v8223_v24 = vcombine.low %v721_v36, %v745_v48  ;;  %v8272_v40 = vcombine.high %v769_v33, %v793_v41  ;;  %v8274_v15 = vcombine.high %v770_v10, %v794_v11  ;;  %v195_v31 = vld [vmem:[#allocation6 + $0x390] sm:$0xff] }
 0x266   :  { %v6529_v56 = vrot.slane %v6515_v52, %v8560_v27  ;;  %v6530_v57 = vcombine.high %v6522_v25, %v6522_v25  ;;  %v6730_v6 = vsel %vm6301_vm0, %v6522_v25, 0.0  ;;  %v8271_v51 = vcombine.low %v769_v33, %v793_v41  ;;  %v219_v35 = vld [vmem:[#allocation6 + $0x450] sm:$0xff]  ;;  %v220_v52 = vld [vmem:[#allocation6 + $0x458] sm:$0xff] }
 0x267   :  { %5393 = vmatpush1.bf16.msra.mxu0 %v8127_v30  ;;  %v6731_v37 = vadd.f32 %v6730_v6, %v9005_v26  ;;  %5434 = vmatpush1.bf16.msra.mxu1 %v8129_v55  ;;  %v8225_v26 = vcombine.low %v722_v4, %v746_v8  ;;  %v8273_v0 = vcombine.low %v770_v10, %v794_v11  ;;  %v243_v5 = vld [vmem:[#allocation6 + $0x510] sm:$0xff]  ;;  %v244_v8 = vld [vmem:[#allocation6 + $0x518] sm:$0xff] }
 0x268   :  { %5394 = vmatprep.subr.bf16.mxu0 %v8176_v2  ;;  %v6531_v44 = vcombine.high %v6529_v56, %v6529_v56  ;;  %v6732_v63 = vsel %vm6301_vm0, %v6530_v57, 0.0  ;;  %5435 = vmatprep.subr.bf16.mxu1 %v8178_v19  ;;  %v6734_v12 = vsel %vm6301_vm0, %v6529_v56, 0.0  ;;  %v8320_v13 = vcombine.high %v817_v16, %v841_v47  ;;  %v196_v2 = vld [vmem:[#allocation6 + $0x398] sm:$0xff]  ;;  %v267_v4 = vld [vmem:[#allocation6 + $0x5d0] sm:$0xff] }
 0x269   :  { %v6733_v9 = vadd.f32 %v6732_v63, %v6731_v37  ;;  %v8322_v58 = vcombine.high %v818_v34, %v842_v49  ;;  %v8319_v20 = vcombine.low %v817_v16, %v841_v47  ;;  %v8321_v54 = vcombine.low %v818_v34, %v842_v49  ;;  %v268_v56 = vld [vmem:[#allocation6 + $0x5d8] sm:$0xff]  ;;  %v339_v10 = vld [vmem:[#allocation6 + $0x810] sm:$0xff] }
 0x26a   :  { %v6736_v18 = vsel %vm6301_vm0, %v6531_v44, 0.0  ;;  %v7604_v53 = vcombine.high %v99_v50, %v123_v17  ;;  %v7606_v60 = vcombine.high %v100_v22, %v124_v14  ;;  %v7603_v23 = vcombine.low %v99_v50, %v123_v17  ;;  %v292_v44 = vld [vmem:[#allocation6 + $0x698] sm:$0xff]  ;;  %v363_v11 = vld [vmem:[#allocation6 + $0x8d0] sm:$0xff] }
 0x26b   :  { %5395 = vmatpush1.bf16.msra.mxu0 %v8175_v42  ;;  %v6735_v32 = vadd.f32 %v6734_v12, %v6733_v9  ;;  %5436 = vmatpush1.bf16.msra.mxu1 %v8177_v61  ;;  %v7605_v30 = vcombine.low %v100_v22, %v124_v14  ;;  %v7652_v55 = vcombine.high %v147_v45, %v171_v46  ;;  %v291_v61 = vld [vmem:[#allocation6 + $0x690] sm:$0xff]  ;;  %v316_v63 = vld [vmem:[#allocation6 + $0x758] sm:$0xff] }
 0x26c   :  { %5396 = vmatprep.subr.bf16.mxu0 %v8224_v59  ;;  %5437 = vmatprep.subr.bf16.mxu1 %v8226_v7  ;;  %v7654_v62 = vcombine.high %v148_v39, %v172_v29  ;;  %v7651_v25 = vcombine.low %v147_v45, %v171_v46  ;;  %v7653_v19 = vcombine.low %v148_v39, %v172_v29  ;;  %v315_v59 = vld [vmem:[#allocation6 + $0x750] sm:$0xff]  ;;  %v340_v12 = vld [vmem:[#allocation6 + $0x818] sm:$0xff] }
 0x26d   :  { %v9075_v43 = vadd.f32 %v6736_v18, %v6735_v32  ;;  %v7700_v36 = vcombine.high %v195_v31, %v219_v35  ;;  %v7702_v48 = vcombine.high %v196_v2, %v220_v52  ;;  %v7699_v57 = vcombine.low %v195_v31, %v219_v35  ;;  %v387_v16 = vld [vmem:[#allocation6 + $0x990] sm:$0xff]  ;;  %v388_v18 = vld [vmem:[#allocation6 + $0x998] sm:$0xff] }
 0x26e   :  { %v7701_v6 = vcombine.low %v196_v2, %v220_v52  ;;  %v7748_v42 = vcombine.high %v243_v5, %v267_v4  ;;  %v7750_v37 = vcombine.high %v244_v8, %v268_v56  ;;  %v7747_v7 = vcombine.low %v243_v5, %v267_v4  ;;  %v411_v47 = vld [vmem:[#allocation6 + $0xa50] sm:$0xff]  ;;  %v412_v34 = vld [vmem:[#allocation6 + $0xa58] sm:$0xff] }
 0x26f   :  { %5397 = vmatpush1.bf16.msra.mxu0 %v8223_v24  ;;  %5438 = vmatpush1.bf16.msra.mxu1 %v8225_v26  ;;  %v7749_v33 = vcombine.low %v244_v8, %v268_v56  ;;  %v7796_v41 = vcombine.high %v291_v61, %v315_v59  ;;  %v7798_v9 = vcombine.high %v292_v44, %v316_v63  ;;  %v364_v24 = vld [vmem:[#allocation6 + $0x8d8] sm:$0xff]  ;;  %v435_v50 = vld [vmem:[#allocation6 + $0xb10] sm:$0xff] }
 0x270   :  { %5398 = vmatprep.subr.bf16.mxu0 %v8272_v40  ;;  %5439 = vmatprep.subr.bf16.mxu1 %v8274_v15  ;;  %v7795_v32 = vcombine.low %v291_v61, %v315_v59  ;;  %v7797_v26 = vcombine.low %v292_v44, %v316_v63  ;;  %v7844_v40 = vcombine.high %v339_v10, %v363_v11  ;;  %v459_v17 = vld [vmem:[#allocation6 + $0xbd0] sm:$0xff] }
 0x271   :  { %v7846_v15 = vcombine.high %v340_v12, %v364_v24  ;;  %v7843_v49 = vcombine.low %v339_v10, %v363_v11  ;;  %v7891_v46 = vcombine.low %v387_v16, %v411_v47  ;;  %v483_v2 = vld [vmem:[#allocation6 + $0xc90] sm:$0xff]  ;;  %v7939_v5 = vcombine.low %v435_v50, %v459_v17  ;;  %v9093_v10 = vld [vmem:[#allocation6 + $0xf98] sm:$0xff] }
 0x272   :  { %v507_v52 = vld [vmem:[#allocation6 + $0xd50] sm:$0xff]  ;;  %v9095_v11 = vld [vmem:[#allocation6 + $0x1058] sm:$0xff] }
 0x273   :  { %5399 = vmatpush1.bf16.msra.mxu0 %v8271_v51  ;;  %5440 = vmatpush1.bf16.msra.mxu1 %v8273_v0  ;;  %v7845_v51 = vcombine.low %v340_v12, %v364_v24  ;;  %v7892_v0 = vcombine.high %v387_v16, %v411_v47  ;;  %v9083_v4 = vld [vmem:[#allocation6 + $0xe10] sm:$0xff]  ;;  %v7987_v61 = vcombine.low %v483_v2, %v507_v52 }
 0x274   :  { %5400 = vmatprep.subr.bf16.mxu0 %v8320_v13  ;;  %5441 = vmatprep.subr.bf16.mxu1 %v8322_v58  ;;  %v7894_v58 = vcombine.high %v388_v18, %v412_v34  ;;  %v9089_v44 = vld [vmem:[#allocation6 + $0xf90] sm:$0xff] }
 0x277   :  { %5401 = vmatpush1.bf16.msra.mxu0 %v8319_v20  ;;  %5442 = vmatpush1.bf16.msra.mxu1 %v8321_v54  ;;  %v436_v20 = vld [vmem:[#allocation6 + $0xb18] sm:$0xff] }
 0x278   :  { %5452 = vmatprep.subr.bf16.mxu0 %v7604_v53  ;;  %5493 = vmatprep.subr.bf16.mxu1 %v7606_v60  ;;  %v460_v54 = vld [vmem:[#allocation6 + $0xbd8] sm:$0xff] }
 0x279   :  { %v7942_v35 = vcombine.high %v436_v20, %v460_v54  ;;  %v7941_v56 = vcombine.low %v436_v20, %v460_v54 }
 0x27a   :  { %5403 = vmatmul.mubr.bf16.vlgmr.msra.gmra.mrb[32].mxu0 %v8541_v21  ;;  %5444 = vmatmul.mubr.bf16.vlgmr.msra.gmra.mrb[32].mxu1 %v8541_v21 }
 0x27b   :  { %5453 = vmatpush1.bf16.msra.mxu0 %v7603_v23  ;;  %5494 = vmatpush1.bf16.msra.mxu1 %v7605_v30  ;;  %v7893_v30 = vcombine.low %v388_v18, %v412_v34 }
 0x27c   :  { %5454 = vmatprep.subr.bf16.mxu0 %v7652_v55  ;;  %5495 = vmatprep.subr.bf16.mxu1 %v7654_v62  ;;  %v7940_v55 = vcombine.high %v435_v50, %v459_v17 }
 0x27d   :  { %5484 = vmatprep.mubr.bf16.mxu0 %v8535_v3  ;;  %5525 = vmatprep.mubr.bf16.mxu1 %v8535_v3 }
 0x27f   :  { %5455 = vmatpush1.bf16.msra.mxu0 %v7651_v25  ;;  %5496 = vmatpush1.bf16.msra.mxu1 %v7653_v19  ;;  %v484_v19 = vld [vmem:[#allocation6 + $0xc98] sm:$0xff] }
 0x280   :  { %5456 = vmatprep.subr.bf16.mxu0 %v7700_v36  ;;  %5497 = vmatprep.subr.bf16.mxu1 %v7702_v48  ;;  %v508_v36 = vld [vmem:[#allocation6 + $0xd58] sm:$0xff]  ;;  %v6006_v48 = vld [vmem:[#allocation8 + $0x28] sm:$0xff] }
 0x281   :  { %v7990_v59 = vcombine.high %v484_v19, %v508_v36 }
 0x283   :  { %5457 = vmatpush1.bf16.msra.mxu0 %v7699_v57  ;;  %5498 = vmatpush1.bf16.msra.mxu1 %v7701_v6  ;;  %v7988_v57 = vcombine.high %v483_v2, %v507_v52  ;;  %v555_v6 = vld [vmem:[#allocation6 + $0xed0] sm:$0xff]  ;;  %v652_v2 = vld [vmem:[#allocation6 + $0x11d8] sm:$0xff] }
 0x284   :  { %5458 = vmatprep.subr.bf16.mxu0 %v7748_v42  ;;  %5499 = vmatprep.subr.bf16.mxu1 %v7750_v37  ;;  %v9085_v42 = vld [vmem:[#allocation6 + $0xe18] sm:$0xff]  ;;  %v8035_v12 = vcombine.low %v9083_v4, %v555_v6  ;;  %v8036_v24 = vcombine.high %v9083_v4, %v555_v6  ;;  %v675_v6 = vld [vmem:[#allocation6 + $0x1290] sm:$0xff] }
 0x285   :  { %v9087_v37 = vld [vmem:[#allocation6 + $0xed8] sm:$0xff] }
 0x287   :  { %5459 = vmatpush1.bf16.msra.mxu0 %v7747_v7  ;;  %5500 = vmatpush1.bf16.msra.mxu1 %v7749_v33 }
 0x288   :  { %5460 = vmatprep.subr.bf16.mxu0 %v7796_v41  ;;  %5501 = vmatprep.subr.bf16.mxu1 %v7798_v9  ;;  %v7989_v41 = vcombine.low %v484_v19, %v508_v36  ;;  %v9091_v9 = vld [vmem:[#allocation6 + $0x1050] sm:$0xff]  ;;  %v8085_v36 = vcombine.low %v9093_v10, %v9095_v11 }
 0x289   :  { %v8083_v34 = vcombine.low %v9089_v44, %v9091_v9 }
 0x28b   :  { %5461 = vmatpush1.bf16.msra.mxu0 %v7795_v32  ;;  %5502 = vmatpush1.bf16.msra.mxu1 %v7797_v26  ;;  %v8037_v32 = vcombine.low %v9085_v42, %v9087_v37  ;;  %v8038_v26 = vcombine.high %v9085_v42, %v9087_v37  ;;  %v699_v42 = vld [vmem:[#allocation6 + $0x1350] sm:$0xff] }
 0x28c   :  { %5462 = vmatprep.subr.bf16.mxu0 %v7844_v40  ;;  %5503 = vmatprep.subr.bf16.mxu1 %v7846_v15 }
 0x28d   :  { %v5158_v13 = vpop.f32.mrb[20].mxu0  ;;  %v5199_v22 = vpop.f32.mrb[20].mxu1 }
 0x28e   :  { %v5160_v14 = vpop.f32.mrb[21].mxu0  ;;  %v5201_v60 = vpop.f32.mrb[21].mxu1 }
 0x28f   :  { %v5831_v53 = vcombine.low %v5158_v13, %v5160_v14  ;;  %v5162_v45 = vpop.f32.mrb[22].mxu0  ;;  %5463 = vmatpush1.bf16.msra.mxu0 %v7843_v49  ;;  %v5832_v39 = vcombine.low %v5199_v22, %v5201_v60  ;;  %v5203_v29 = vpop.f32.mrb[22].mxu1  ;;  %5504 = vmatpush1.bf16.msra.mxu1 %v7845_v51  ;;  %v8084_v49 = vcombine.high %v9089_v44, %v9091_v9  ;;  %v676_v44 = vld [vmem:[#allocation6 + $0x1298] sm:$0xff] }
 0x290   :  { %v5163_v23 = vpop.f32.mrb[23].mxu0  ;;  %5464 = vmatprep.subr.bf16.mxu0 %v7892_v0  ;;  %v5204_v31 = vpop.f32.mrb[23].mxu1  ;;  %5505 = vmatprep.subr.bf16.mxu1 %v7894_v58  ;;  %v8086_v51 = vcombine.high %v9093_v10, %v9095_v11  ;;  %v627_v29 = vld [vmem:[#allocation6 + $0x1110] sm:$0xff] }
 0x291   :  { %v5839_v62 = vrot.slane %v5831_v53, %v8560_v27  ;;  %v5846_v25 = vrot.slane %v5832_v39, %v8560_v27  ;;  %v651_v23 = vld [vmem:[#allocation6 + $0x11d0] sm:$0xff] }
 0x292   :  { %v8132_v4 = vcombine.high %v627_v29, %v651_v23 }
 0x293   :  { %5465 = vmatpush1.bf16.msra.mxu0 %v7891_v46  ;;  %v5847_v8 = vcombine.low %v5839_v62, %v5846_v25  ;;  %5506 = vmatpush1.bf16.msra.mxu1 %v7893_v30 }
 0x294   :  { %5466 = vmatprep.subr.bf16.mxu0 %v7940_v55  ;;  %5507 = vmatprep.subr.bf16.mxu1 %v7942_v35  ;;  %v628_v35 = vld [vmem:[#allocation6 + $0x1118] sm:$0xff] }
 0x295   :  { %v6018_v63 = vsub.f32 %v5847_v8, %v6006_v48  ;;  %v6030_v7 = vmul.f32 %v6006_v48, %v5847_v8  ;;  %v6404_v33 = vsub.f32 0.0, %v5847_v8 }
 0x297   :  { %5467 = vmatpush1.bf16.msra.mxu0 %v7939_v5  ;;  %v6134_v40 = vcombine.high %v6030_v7, %v6030_v7  ;;  %v6141_v15 = vrot.slane %v6030_v7, %v8560_v27  ;;  %v6421_v16 = vmul.f32 1.442695, %v6404_v33  ;;  %v6801_v47 = vmul.f32 %v6018_v63, %v6018_v63  ;;  %5508 = vmatpush1.bf16.msra.mxu1 %v7941_v56 }
 0x298   :  { %5468 = vmatprep.subr.bf16.mxu0 %v7988_v57  ;;  %v7174_v18 = vand.u32 2147483647, %v6018_v63  ;;  %5509 = vmatprep.subr.bf16.mxu1 %v7990_v59  ;;  %v8134_v57 = vcombine.high %v628_v35, %v652_v2  ;;  %v700_v63 = vld [vmem:[#allocation6 + $0x1358] sm:$0xff]  ;;  %v8131_v33 = vcombine.low %v627_v29, %v651_v23 }
 0x299   :  { %v6148_v0 = vrot.slane %v6134_v40, %v8560_v27  ;;  %v6149_v13 = vcombine.high %v6141_v15, %v6141_v15  ;;  %v6341_v58 = vsel %vm6301_vm0, %v6141_v15, 0.0  ;;  %8353 = vpow2.f32 %v6421_v16  ;;  %v723_v15 = vld [vmem:[#allocation6 + $0x1410] sm:$0xff] }
 0x29a   :  { %v6342_v50 = vadd.f32 %v6341_v58, %v9059_v28  ;;  %v6905_v17 = vcombine.high %v6801_v47, %v6801_v47  ;;  %v6912_v22 = vrot.slane %v6801_v47, %v8560_v27  ;;  %v7278_v14 = vcombine.high %v7174_v18, %v7174_v18  ;;  %v747_v16 = vld [vmem:[#allocation6 + $0x14d0] sm:$0xff] }
 0x29b   :  { %5469 = vmatpush1.bf16.msra.mxu0 %v7987_v61  ;;  %v6150_v20 = vcombine.high %v6148_v0, %v6148_v0  ;;  %v6343_v54 = vsel %vm6301_vm0, %v6149_v13, 0.0  ;;  %v6345_v53 = vsel %vm6301_vm0, %v6148_v0, 0.0  ;;  %v7285_v60 = vrot.slane %v7174_v18, %v8560_v27  ;;  %5510 = vmatpush1.bf16.msra.mxu1 %v7989_v41  ;;  %v724_v18 = vld [vmem:[#allocation6 + $0x1418] sm:$0xff] }
 0x29c   :  { %5470 = vmatprep.subr.bf16.mxu0 %v8036_v24  ;;  %v6344_v45 = vadd.f32 %v6343_v54, %v6342_v50  ;;  %v6919_v46 = vrot.slane %v6905_v17, %v8560_v27  ;;  %v6920_v39 = vcombine.high %v6912_v22, %v6912_v22  ;;  %v7111_v28 = vsel %vm6301_vm0, %v6912_v22, 0.0  ;;  %5511 = vmatprep.subr.bf16.mxu1 %v8038_v26 }
 0x29d   :  { %v7112_v30 = vadd.f32 %v7111_v28, %v9063_v1  ;;  %v7292_v55 = vrot.slane %v7278_v14, %v8560_v27  ;;  %v7293_v62 = vcombine.high %v7285_v60, %v7285_v60  ;;  %v7484_v31 = vsel %vm6301_vm0, %v7285_v60, 0.0  ;;  %v795_v60 = vld [vmem:[#allocation6 + $0x1650] sm:$0xff] }
 0x29e   :  { %v6346_v52 = vadd.f32 %v6345_v53, %v6344_v45  ;;  %v6921_v25 = vcombine.high %v6919_v46, %v6919_v46  ;;  %v7113_v19 = vsel %vm6301_vm0, %v6920_v39, 0.0  ;;  %v7485_v5 = vadd.f32 %v7484_v31, %v9067_v38  ;;  %v771_v53 = vld [vmem:[#allocation6 + $0x1590] sm:$0xff]  ;;  %v796_v39 = vld [vmem:[#allocation6 + $0x1658] sm:$0xff] }
 0x29f   :  { %5471 = vmatpush1.bf16.msra.mxu0 %v8035_v12  ;;  %v7114_v48 = vadd.f32 %v7113_v19, %v7112_v30  ;;  %v7486_v1 = vsel %vm6301_vm0, %v7293_v62, 0.0  ;;  %5512 = vmatpush1.bf16.msra.mxu1 %v8037_v32  ;;  %v7115_v8 = vsel %vm6301_vm0, %v6919_v46, 0.0  ;;  %v7294_v56 = vcombine.high %v7292_v55, %v7292_v55  ;;  %v772_v46 = vld [vmem:[#allocation6 + $0x1598] sm:$0xff]  ;;  %v819_v62 = vld [vmem:[#allocation6 + $0x1710] sm:$0xff] }
 0x2a0   :  { %5472 = vmatprep.subr.bf16.mxu0 %v8084_v49  ;;  %5513 = vmatprep.subr.bf16.mxu1 %v8086_v51  ;;  %v6347_v37 = vsel %vm6301_vm0, %v6150_v20, 0.0  ;;  %v7487_v59 = vadd.f32 %v7486_v1, %v7485_v5  ;;  %v7488_v38 = vsel %vm6301_vm0, %v7292_v55, 0.0  ;;  %v8133_v41 = vcombine.low %v628_v35, %v652_v2  ;;  %v843_v31 = vld [vmem:[#allocation6 + $0x17d0] sm:$0xff]  ;;  %v820_v2 = vld [vmem:[#allocation6 + $0x1718] sm:$0xff]  ;;  %v101_v1 = vld [vmem:[#allocation6 + $0xa0] sm:$0xff] }
 0x2a1   :  { %v7116_v61 = vadd.f32 %v7115_v8, %v7114_v48  ;;  %v9129_v7 = vadd.f32 %v6347_v37, %v6346_v52  ;;  %v7117_v9 = vsel %vm6301_vm0, %v6921_v25, 0.0  ;;  %v8180_v12 = vcombine.high %v675_v6, %v699_v42  ;;  %v844_v52 = vld [vmem:[#allocation6 + $0x17d8] sm:$0xff]  ;;  %v102_v8 = vld [vmem:[#allocation6 + $0xa8] sm:$0xff] }
 0x2a2   :  { %v7489_v11 = vadd.f32 %v7488_v38, %v7487_v59  ;;  %v8182_v40 = vcombine.high %v676_v44, %v700_v63  ;;  %v7490_v47 = vsel %vm6301_vm0, %v7294_v56, 0.0  ;;  %v8179_v58 = vcombine.low %v675_v6, %v699_v42  ;;  %v126_v56 = vld [vmem:[#allocation6 + $0x168] sm:$0xff]  ;;  %v173_v59 = vld [vmem:[#allocation6 + $0x2e0] sm:$0xff] }
 0x2a3   :  { %5473 = vmatpush1.bf16.msra.mxu0 %v8083_v34  ;;  %v8354_v10 = vpop.eup %8353  ;;  %5514 = vmatpush1.bf16.msra.mxu1 %v8085_v36  ;;  %v9133_v24 = vadd.f32 %v7117_v9, %v7116_v61  ;;  %v748_v34 = vld [vmem:[#allocation6 + $0x14d8] sm:$0xff]  ;;  %v8181_v17 = vcombine.low %v676_v44, %v700_v63  ;;  %v8228_v22 = vcombine.high %v723_v15, %v747_v16  ;;  %v149_v61 = vld [vmem:[#allocation6 + $0x220] sm:$0xff]  ;;  %v150_v44 = vld [vmem:[#allocation6 + $0x228] sm:$0xff] }
 0x2a4   :  { %5474 = vmatprep.subr.bf16.mxu0 %v8132_v4  ;;  %v6532_v32 = vcombine.high %v8354_v10, %v8354_v10  ;;  %v6539_v26 = vrot.slane %v8354_v10, %v8560_v27  ;;  %5515 = vmatprep.subr.bf16.mxu1 %v8134_v57  ;;  %v9137_v49 = vadd.f32 %v7490_v47, %v7489_v11  ;;  %v125_v4 = vld [vmem:[#allocation6 + $0x160] sm:$0xff]  ;;  %v174_v63 = vld [vmem:[#allocation6 + $0x2e8] sm:$0xff] }
 0x2a5   :  { %v8230_v54 = vcombine.high %v724_v18, %v748_v34  ;;  %v8227_v29 = vcombine.low %v723_v15, %v747_v16  ;;  %v8276_v30 = vcombine.high %v771_v53, %v795_v60  ;;  %v8278_v55 = vcombine.high %v772_v46, %v796_v39  ;;  %v197_v10 = vld [vmem:[#allocation6 + $0x3a0] sm:$0xff] }
 0x2a6   :  { %v6546_v51 = vrot.slane %v6532_v32, %v8560_v27  ;;  %v6547_v0 = vcombine.high %v6539_v26, %v6539_v26  ;;  %v6738_v13 = vsel %vm6301_vm0, %v6539_v26, 0.0  ;;  %v8275_v19 = vcombine.low %v771_v53, %v795_v60  ;;  %v221_v11 = vld [vmem:[#allocation6 + $0x460] sm:$0xff]  ;;  %v222_v32 = vld [vmem:[#allocation6 + $0x468] sm:$0xff] }
 0x2a7   :  { %5475 = vmatpush1.bf16.msra.mxu0 %v8131_v33  ;;  %v6739_v50 = vadd.f32 %v6738_v13, %v9075_v43  ;;  %5516 = vmatpush1.bf16.msra.mxu1 %v8133_v41  ;;  %v8229_v43 = vcombine.low %v724_v18, %v748_v34  ;;  %v8277_v36 = vcombine.low %v772_v46, %v796_v39  ;;  %v245_v47 = vld [vmem:[#allocation6 + $0x520] sm:$0xff]  ;;  %v246_v34 = vld [vmem:[#allocation6 + $0x528] sm:$0xff] }
 0x2a8   :  { %5476 = vmatprep.subr.bf16.mxu0 %v8180_v12  ;;  %v6548_v14 = vcombine.high %v6546_v51, %v6546_v51  ;;  %v6740_v20 = vsel %vm6301_vm0, %v6547_v0, 0.0  ;;  %5517 = vmatprep.subr.bf16.mxu1 %v8182_v40  ;;  %v6742_v28 = vsel %vm6301_vm0, %v6546_v51, 0.0  ;;  %v8324_v48 = vcombine.high %v819_v62, %v843_v31  ;;  %v198_v12 = vld [vmem:[#allocation6 + $0x3a8] sm:$0xff]  ;;  %v269_v18 = vld [vmem:[#allocation6 + $0x5e0] sm:$0xff] }
 0x2a9   :  { %v6741_v45 = vadd.f32 %v6740_v20, %v6739_v50  ;;  %v8326_v5 = vcombine.high %v820_v2, %v844_v52  ;;  %v8323_v57 = vcombine.low %v819_v62, %v843_v31  ;;  %v8325_v6 = vcombine.low %v820_v2, %v844_v52  ;;  %v270_v51 = vld [vmem:[#allocation6 + $0x5e8] sm:$0xff]  ;;  %v341_v46 = vld [vmem:[#allocation6 + $0x820] sm:$0xff] }
 0x2aa   :  { %v6744_v35 = vsel %vm6301_vm0, %v6548_v14, 0.0  ;;  %v7608_v42 = vcombine.high %v101_v1, %v125_v4  ;;  %v7610_v37 = vcombine.high %v102_v8, %v126_v56  ;;  %v7607_v38 = vcombine.low %v101_v1, %v125_v4  ;;  %v294_v14 = vld [vmem:[#allocation6 + $0x6a8] sm:$0xff]  ;;  %v365_v39 = vld [vmem:[#allocation6 + $0x8e0] sm:$0xff] }
 0x2ab   :  { %5477 = vmatpush1.bf16.msra.mxu0 %v8179_v58  ;;  %v6743_v23 = vadd.f32 %v6742_v28, %v6741_v45  ;;  %5518 = vmatpush1.bf16.msra.mxu1 %v8181_v17  ;;  %v7609_v33 = vcombine.low %v102_v8, %v126_v56  ;;  %v7656_v41 = vcombine.high %v149_v61, %v173_v59  ;;  %v293_v17 = vld [vmem:[#allocation6 + $0x6a0] sm:$0xff]  ;;  %v318_v20 = vld [vmem:[#allocation6 + $0x768] sm:$0xff] }
 0x2ac   :  { %5478 = vmatprep.subr.bf16.mxu0 %v8228_v22  ;;  %5519 = vmatprep.subr.bf16.mxu1 %v8230_v54  ;;  %v7658_v9 = vcombine.high %v150_v44, %v174_v63  ;;  %v7655_v26 = vcombine.low %v149_v61, %v173_v59  ;;  %v7657_v40 = vcombine.low %v150_v44, %v174_v63  ;;  %v317_v22 = vld [vmem:[#allocation6 + $0x760] sm:$0xff]  ;;  %v342_v28 = vld [vmem:[#allocation6 + $0x828] sm:$0xff] }
 0x2ad   :  { %v9145_v25 = vadd.f32 %v6744_v35, %v6743_v23  ;;  %v7704_v15 = vcombine.high %v197_v10, %v221_v11  ;;  %v7706_v16 = vcombine.high %v198_v12, %v222_v32  ;;  %v7703_v0 = vcombine.low %v197_v10, %v221_v11  ;;  %v389_v62 = vld [vmem:[#allocation6 + $0x9a0] sm:$0xff]  ;;  %v390_v35 = vld [vmem:[#allocation6 + $0x9a8] sm:$0xff] }
 0x2ae   :  { %v7705_v13 = vcombine.low %v198_v12, %v222_v32  ;;  %v7752_v58 = vcombine.high %v245_v47, %v269_v18  ;;  %v7754_v50 = vcombine.high %v246_v34, %v270_v51  ;;  %v7751_v54 = vcombine.low %v245_v47, %v269_v18  ;;  %v413_v31 = vld [vmem:[#allocation6 + $0xa60] sm:$0xff]  ;;  %v414_v2 = vld [vmem:[#allocation6 + $0xa68] sm:$0xff] }
 0x2af   :  { %5479 = vmatpush1.bf16.msra.mxu0 %v8227_v29  ;;  %5520 = vmatpush1.bf16.msra.mxu1 %v8229_v43  ;;  %v7753_v53 = vcombine.low %v246_v34, %v270_v51  ;;  %v7800_v60 = vcombine.high %v293_v17, %v317_v22  ;;  %v7802_v45 = vcombine.high %v294_v14, %v318_v20  ;;  %v366_v29 = vld [vmem:[#allocation6 + $0x8e8] sm:$0xff]  ;;  %v437_v1 = vld [vmem:[#allocation6 + $0xb20] sm:$0xff] }
 0x2b0   :  { %5480 = vmatprep.subr.bf16.mxu0 %v8276_v30  ;;  %5521 = vmatprep.subr.bf16.mxu1 %v8278_v55  ;;  %v7799_v23 = vcombine.low %v293_v17, %v317_v22  ;;  %v7801_v43 = vcombine.low %v294_v14, %v318_v20  ;;  %v7848_v30 = vcombine.high %v341_v46, %v365_v39  ;;  %v461_v4 = vld [vmem:[#allocation6 + $0xbe0] sm:$0xff] }
 0x2b1   :  { %v7850_v55 = vcombine.high %v342_v28, %v366_v29  ;;  %v7847_v52 = vcombine.low %v341_v46, %v365_v39  ;;  %v7895_v59 = vcombine.low %v389_v62, %v413_v31  ;;  %v485_v12 = vld [vmem:[#allocation6 + $0xca0] sm:$0xff]  ;;  %v7943_v47 = vcombine.low %v437_v1, %v461_v4  ;;  %v9163_v46 = vld [vmem:[#allocation6 + $0xfa8] sm:$0xff] }
 0x2b2   :  { %v509_v32 = vld [vmem:[#allocation6 + $0xd60] sm:$0xff]  ;;  %v9165_v39 = vld [vmem:[#allocation6 + $0x1068] sm:$0xff] }
 0x2b3   :  { %5481 = vmatpush1.bf16.msra.mxu0 %v8275_v19  ;;  %5522 = vmatpush1.bf16.msra.mxu1 %v8277_v36  ;;  %v7849_v19 = vcombine.low %v342_v28, %v366_v29  ;;  %v7896_v36 = vcombine.high %v389_v62, %v413_v31  ;;  %v9153_v18 = vld [vmem:[#allocation6 + $0xe20] sm:$0xff]  ;;  %v7991_v17 = vcombine.low %v485_v12, %v509_v32 }
 0x2b4   :  { %5482 = vmatprep.subr.bf16.mxu0 %v8324_v48  ;;  %5523 = vmatprep.subr.bf16.mxu1 %v8326_v5  ;;  %v7898_v5 = vcombine.high %v390_v35, %v414_v2  ;;  %v9159_v14 = vld [vmem:[#allocation6 + $0xfa0] sm:$0xff] }
 0x2b7   :  { %5483 = vmatpush1.bf16.msra.mxu0 %v8323_v57  ;;  %5524 = vmatpush1.bf16.msra.mxu1 %v8325_v6  ;;  %v438_v57 = vld [vmem:[#allocation6 + $0xb28] sm:$0xff] }
 0x2b8   :  { %5534 = vmatprep.subr.bf16.mxu0 %v7608_v42  ;;  %5575 = vmatprep.subr.bf16.mxu1 %v7610_v37  ;;  %v462_v6 = vld [vmem:[#allocation6 + $0xbe8] sm:$0xff] }
 0x2b9   :  { %v7946_v11 = vcombine.high %v438_v57, %v462_v6  ;;  %v7945_v51 = vcombine.low %v438_v57, %v462_v6 }
 0x2ba   :  { %5485 = vmatmul.mubr.bf16.vlgmr.msra.gmra.mrb[36].mxu0 %v8541_v21  ;;  %5526 = vmatmul.mubr.bf16.vlgmr.msra.gmra.mrb[36].mxu1 %v8541_v21 }
 0x2bb   :  { %5535 = vmatpush1.bf16.msra.mxu0 %v7607_v38  ;;  %5576 = vmatpush1.bf16.msra.mxu1 %v7609_v33  ;;  %v7897_v33 = vcombine.low %v390_v35, %v414_v2 }
 0x2bc   :  { %5536 = vmatprep.subr.bf16.mxu0 %v7656_v41  ;;  %5577 = vmatprep.subr.bf16.mxu1 %v7658_v9  ;;  %v7944_v41 = vcombine.high %v437_v1, %v461_v4 }
 0x2bd   :  { %5566 = vmatprep.mubr.bf16.mxu0 %v8535_v3  ;;  %5607 = vmatprep.mubr.bf16.mxu1 %v8535_v3 }
 0x2bf   :  { %5537 = vmatpush1.bf16.msra.mxu0 %v7655_v26  ;;  %5578 = vmatpush1.bf16.msra.mxu1 %v7657_v40  ;;  %v486_v40 = vld [vmem:[#allocation6 + $0xca8] sm:$0xff] }
 0x2c0   :  { %5538 = vmatprep.subr.bf16.mxu0 %v7704_v15  ;;  %5579 = vmatprep.subr.bf16.mxu1 %v7706_v16  ;;  %v510_v15 = vld [vmem:[#allocation6 + $0xd68] sm:$0xff]  ;;  %v6007_v16 = vld [vmem:[#allocation8 + $0x30] sm:$0xff] }
 0x2c1   :  { %v7994_v22 = vcombine.high %v486_v40, %v510_v15 }
 0x2c3   :  { %5539 = vmatpush1.bf16.msra.mxu0 %v7703_v0  ;;  %5580 = vmatpush1.bf16.msra.mxu1 %v7705_v13  ;;  %v7992_v0 = vcombine.high %v485_v12, %v509_v32  ;;  %v557_v13 = vld [vmem:[#allocation6 + $0xee0] sm:$0xff]  ;;  %v654_v12 = vld [vmem:[#allocation6 + $0x11e8] sm:$0xff] }
 0x2c4   :  { %5540 = vmatprep.subr.bf16.mxu0 %v7752_v58  ;;  %5581 = vmatprep.subr.bf16.mxu1 %v7754_v50  ;;  %v9155_v58 = vld [vmem:[#allocation6 + $0xe28] sm:$0xff]  ;;  %v8039_v28 = vcombine.low %v9153_v18, %v557_v13  ;;  %v8040_v29 = vcombine.high %v9153_v18, %v557_v13  ;;  %v677_v13 = vld [vmem:[#allocation6 + $0x12a0] sm:$0xff] }
 0x2c5   :  { %v9157_v50 = vld [vmem:[#allocation6 + $0xee8] sm:$0xff] }
 0x2c7   :  { %5541 = vmatpush1.bf16.msra.mxu0 %v7751_v54  ;;  %5582 = vmatpush1.bf16.msra.mxu1 %v7753_v53 }
 0x2c8   :  { %5542 = vmatprep.subr.bf16.mxu0 %v7800_v60  ;;  %5583 = vmatprep.subr.bf16.mxu1 %v7802_v45  ;;  %v7993_v60 = vcombine.low %v486_v40, %v510_v15  ;;  %v9161_v45 = vld [vmem:[#allocation6 + $0x1060] sm:$0xff]  ;;  %v8089_v15 = vcombine.low %v9163_v46, %v9165_v39 }
 0x2c9   :  { %v8087_v2 = vcombine.low %v9159_v14, %v9161_v45 }
 0x2cb   :  { %5543 = vmatpush1.bf16.msra.mxu0 %v7799_v23  ;;  %5584 = vmatpush1.bf16.msra.mxu1 %v7801_v43  ;;  %v8041_v23 = vcombine.low %v9155_v58, %v9157_v50  ;;  %v8042_v43 = vcombine.high %v9155_v58, %v9157_v50  ;;  %v701_v58 = vld [vmem:[#allocation6 + $0x1360] sm:$0xff] }
 0x2cc   :  { %5544 = vmatprep.subr.bf16.mxu0 %v7848_v30  ;;  %5585 = vmatprep.subr.bf16.mxu1 %v7850_v55 }
 0x2cd   :  { %v5240_v48 = vpop.f32.mrb[24].mxu0  ;;  %v5281_v8 = vpop.f32.mrb[24].mxu1 }
 0x2ce   :  { %v5242_v56 = vpop.f32.mrb[25].mxu0  ;;  %v5283_v37 = vpop.f32.mrb[25].mxu1 }
 0x2cf   :  { %v5848_v42 = vcombine.low %v5240_v48, %v5242_v56  ;;  %v5244_v61 = vpop.f32.mrb[26].mxu0  ;;  %5545 = vmatpush1.bf16.msra.mxu0 %v7847_v52  ;;  %v5849_v44 = vcombine.low %v5281_v8, %v5283_v37  ;;  %v5285_v63 = vpop.f32.mrb[26].mxu1  ;;  %5586 = vmatpush1.bf16.msra.mxu1 %v7849_v19  ;;  %v8088_v52 = vcombine.high %v9159_v14, %v9161_v45  ;;  %v678_v14 = vld [vmem:[#allocation6 + $0x12a8] sm:$0xff] }
 0x2d0   :  { %v5245_v38 = vpop.f32.mrb[27].mxu0  ;;  %5546 = vmatprep.subr.bf16.mxu0 %v7896_v36  ;;  %v5286_v10 = vpop.f32.mrb[27].mxu1  ;;  %5587 = vmatprep.subr.bf16.mxu1 %v7898_v5  ;;  %v8090_v19 = vcombine.high %v9163_v46, %v9165_v39  ;;  %v629_v63 = vld [vmem:[#allocation6 + $0x1120] sm:$0xff] }
 0x2d1   :  { %v5856_v9 = vrot.slane %v5848_v42, %v8560_v27  ;;  %v5863_v26 = vrot.slane %v5849_v44, %v8560_v27  ;;  %v653_v38 = vld [vmem:[#allocation6 + $0x11e0] sm:$0xff] }
 0x2d2   :  { %v8136_v18 = vcombine.high %v629_v63, %v653_v38 }
 0x2d3   :  { %5547 = vmatpush1.bf16.msra.mxu0 %v7895_v59  ;;  %v5864_v34 = vcombine.low %v5856_v9, %v5863_v26  ;;  %5588 = vmatpush1.bf16.msra.mxu1 %v7897_v33 }
 0x2d4   :  { %5548 = vmatprep.subr.bf16.mxu0 %v7944_v41  ;;  %5589 = vmatprep.subr.bf16.mxu1 %v7946_v11  ;;  %v630_v11 = vld [vmem:[#allocation6 + $0x1128] sm:$0xff] }
 0x2d5   :  { %v6019_v20 = vsub.f32 %v5864_v34, %v6007_v16  ;;  %v6031_v54 = vmul.f32 %v6007_v16, %v5864_v34  ;;  %v6405_v53 = vsub.f32 0.0, %v5864_v34 }
 0x2d7   :  { %5549 = vmatpush1.bf16.msra.mxu0 %v7943_v47  ;;  %v6151_v30 = vcombine.high %v6031_v54, %v6031_v54  ;;  %v6158_v55 = vrot.slane %v6031_v54, %v8560_v27  ;;  %v6423_v62 = vmul.f32 1.442695, %v6405_v53  ;;  %v6802_v31 = vmul.f32 %v6019_v20, %v6019_v20  ;;  %5590 = vmatpush1.bf16.msra.mxu1 %v7945_v51 }
 0x2d8   :  { %5550 = vmatprep.subr.bf16.mxu0 %v7992_v0  ;;  %v7175_v35 = vand.u32 2147483647, %v6019_v20  ;;  %5591 = vmatprep.subr.bf16.mxu1 %v7994_v22  ;;  %v8138_v0 = vcombine.high %v630_v11, %v654_v12  ;;  %v702_v20 = vld [vmem:[#allocation6 + $0x1368] sm:$0xff]  ;;  %v8135_v53 = vcombine.low %v629_v63, %v653_v38 }
 0x2d9   :  { %v6165_v36 = vrot.slane %v6151_v30, %v8560_v27  ;;  %v6166_v48 = vcombine.high %v6158_v55, %v6158_v55  ;;  %v6349_v5 = vsel %vm6301_vm0, %v6158_v55, 0.0  ;;  %8355 = vpow2.f32 %v6423_v62  ;;  %v725_v55 = vld [vmem:[#allocation6 + $0x1420] sm:$0xff] }
 0x2da   :  { %v6350_v1 = vadd.f32 %v6349_v5, %v9129_v7  ;;  %v6922_v4 = vcombine.high %v6802_v31, %v6802_v31  ;;  %v6929_v8 = vrot.slane %v6802_v31, %v8560_v27  ;;  %v7295_v56 = vcombine.high %v7175_v35, %v7175_v35  ;;  %v749_v62 = vld [vmem:[#allocation6 + $0x14e0] sm:$0xff] }
 0x2db   :  { %5551 = vmatpush1.bf16.msra.mxu0 %v7991_v17  ;;  %v6167_v57 = vcombine.high %v6165_v36, %v6165_v36  ;;  %v6351_v6 = vsel %vm6301_vm0, %v6166_v48, 0.0  ;;  %v6353_v42 = vsel %vm6301_vm0, %v6165_v36, 0.0  ;;  %v7302_v37 = vrot.slane %v7175_v35, %v8560_v27  ;;  %5592 = vmatpush1.bf16.msra.mxu1 %v7993_v60  ;;  %v726_v35 = vld [vmem:[#allocation6 + $0x1428] sm:$0xff] }
 0x2dc   :  { %5552 = vmatprep.subr.bf16.mxu0 %v8040_v29  ;;  %v6352_v61 = vadd.f32 %v6351_v6, %v6350_v1  ;;  %v6936_v59 = vrot.slane %v6922_v4, %v8560_v27  ;;  %v6937_v44 = vcombine.high %v6929_v8, %v6929_v8  ;;  %v7119_v7 = vsel %vm6301_vm0, %v6929_v8, 0.0  ;;  %5593 = vmatprep.subr.bf16.mxu1 %v8042_v43 }
 0x2dd   :  { %v7120_v33 = vadd.f32 %v7119_v7, %v9133_v24  ;;  %v7309_v41 = vrot.slane %v7295_v56, %v8560_v27  ;;  %v7310_v9 = vcombine.high %v7302_v37, %v7302_v37  ;;  %v7492_v10 = vsel %vm6301_vm0, %v7302_v37, 0.0  ;;  %v797_v37 = vld [vmem:[#allocation6 + $0x1660] sm:$0xff] }
 0x2de   :  { %v6354_v32 = vadd.f32 %v6353_v42, %v6352_v61  ;;  %v6938_v26 = vcombine.high %v6936_v59, %v6936_v59  ;;  %v7121_v40 = vsel %vm6301_vm0, %v6937_v44, 0.0  ;;  %v7493_v47 = vadd.f32 %v7492_v10, %v9137_v49  ;;  %v773_v42 = vld [vmem:[#allocation6 + $0x15a0] sm:$0xff]  ;;  %v798_v44 = vld [vmem:[#allocation6 + $0x1668] sm:$0xff] }
 0x2df   :  { %5553 = vmatpush1.bf16.msra.mxu0 %v8039_v28  ;;  %v7122_v16 = vadd.f32 %v7121_v40, %v7120_v33  ;;  %v7494_v24 = vsel %vm6301_vm0, %v7310_v9, 0.0  ;;  %5594 = vmatpush1.bf16.msra.mxu1 %v8041_v23  ;;  %v7123_v34 = vsel %vm6301_vm0, %v6936_v59, 0.0  ;;  %v7311_v51 = vcombine.high %v7309_v41, %v7309_v41  ;;  %v774_v59 = vld [vmem:[#allocation6 + $0x15a8] sm:$0xff]  ;;  %v821_v9 = vld [vmem:[#allocation6 + $0x1720] sm:$0xff] }
 0x2e0   :  { %5554 = vmatprep.subr.bf16.mxu0 %v8088_v52  ;;  %5595 = vmatprep.subr.bf16.mxu1 %v8090_v19  ;;  %v6355_v50 = vsel %vm6301_vm0, %v6167_v57, 0.0  ;;  %v7495_v22 = vadd.f32 %v7494_v24, %v7493_v47  ;;  %v7496_v49 = vsel %vm6301_vm0, %v7309_v41, 0.0  ;;  %v8137_v60 = vcombine.low %v630_v11, %v654_v12  ;;  %v845_v10 = vld [vmem:[#allocation6 + $0x17e0] sm:$0xff]  ;;  %v822_v12 = vld [vmem:[#allocation6 + $0x1728] sm:$0xff]  ;;  %v103_v24 = vld [vmem:[#allocation6 + $0xb0] sm:$0xff] }
 0x2e1   :  { %v7124_v17 = vadd.f32 %v7123_v34, %v7122_v16  ;;  %v9199_v54 = vadd.f32 %v6355_v50, %v6354_v32  ;;  %v7125_v45 = vsel %vm6301_vm0, %v6938_v26, 0.0  ;;  %v8184_v28 = vcombine.high %v677_v13, %v701_v58  ;;  %v846_v32 = vld [vmem:[#allocation6 + $0x17e8] sm:$0xff]  ;;  %v104_v34 = vld [vmem:[#allocation6 + $0xb8] sm:$0xff] }
 0x2e2   :  { %v7497_v39 = vadd.f32 %v7496_v49, %v7495_v22  ;;  %v8186_v30 = vcombine.high %v678_v14, %v702_v20  ;;  %v7498_v31 = vsel %vm6301_vm0, %v7311_v51, 0.0  ;;  %v8183_v5 = vcombine.low %v677_v13, %v701_v58  ;;  %v128_v51 = vld [vmem:[#allocation6 + $0x178] sm:$0xff]  ;;  %v175_v22 = vld [vmem:[#allocation6 + $0x2f0] sm:$0xff] }
 0x2e3   :  { %5555 = vmatpush1.bf16.msra.mxu0 %v8087_v2  ;;  %v8356_v46 = vpop.eup %8355  ;;  %5596 = vmatpush1.bf16.msra.mxu1 %v8089_v15  ;;  %v9203_v29 = vadd.f32 %v7125_v45, %v7124_v17  ;;  %v750_v2 = vld [vmem:[#allocation6 + $0x14e8] sm:$0xff]  ;;  %v8185_v4 = vcombine.low %v678_v14, %v702_v20  ;;  %v8232_v8 = vcombine.high %v725_v55, %v749_v62  ;;  %v151_v17 = vld [vmem:[#allocation6 + $0x230] sm:$0xff]  ;;  %v152_v14 = vld [vmem:[#allocation6 + $0x238] sm:$0xff] }
 0x2e4   :  { %5556 = vmatprep.subr.bf16.mxu0 %v8136_v18  ;;  %v6549_v23 = vcombine.high %v8356_v46, %v8356_v46  ;;  %v6556_v43 = vrot.slane %v8356_v46, %v8560_v27  ;;  %5597 = vmatprep.subr.bf16.mxu1 %v8138_v0  ;;  %v9207_v52 = vadd.f32 %v7498_v31, %v7497_v39  ;;  %v127_v18 = vld [vmem:[#allocation6 + $0x170] sm:$0xff]  ;;  %v176_v20 = vld [vmem:[#allocation6 + $0x2f8] sm:$0xff] }
 0x2e5   :  { %v8234_v6 = vcombine.high %v726_v35, %v750_v2  ;;  %v8231_v63 = vcombine.low %v725_v55, %v749_v62  ;;  %v8280_v33 = vcombine.high %v773_v42, %v797_v37  ;;  %v8282_v41 = vcombine.high %v774_v59, %v798_v44  ;;  %v199_v46 = vld [vmem:[#allocation6 + $0x3b0] sm:$0xff] }
 0x2e6   :  { %v6563_v19 = vrot.slane %v6549_v23, %v8560_v27  ;;  %v6564_v36 = vcombine.high %v6556_v43, %v6556_v43  ;;  %v6746_v48 = vsel %vm6301_vm0, %v6556_v43, 0.0  ;;  %v8279_v40 = vcombine.low %v773_v42, %v797_v37  ;;  %v223_v39 = vld [vmem:[#allocation6 + $0x470] sm:$0xff]  ;;  %v224_v23 = vld [vmem:[#allocation6 + $0x478] sm:$0xff] }
 0x2e7   :  { %5557 = vmatpush1.bf16.msra.mxu0 %v8135_v53  ;;  %v6747_v1 = vadd.f32 %v6746_v48, %v9145_v25  ;;  %5598 = vmatpush1.bf16.msra.mxu1 %v8137_v60  ;;  %v8233_v25 = vcombine.low %v726_v35, %v750_v2  ;;  %v8281_v15 = vcombine.low %v774_v59, %v798_v44  ;;  %v247_v31 = vld [vmem:[#allocation6 + $0x530] sm:$0xff]  ;;  %v248_v2 = vld [vmem:[#allocation6 + $0x538] sm:$0xff] }
 0x2e8   :  { %5558 = vmatprep.subr.bf16.mxu0 %v8184_v28  ;;  %v6565_v56 = vcombine.high %v6563_v19, %v6563_v19  ;;  %v6748_v57 = vsel %vm6301_vm0, %v6564_v36, 0.0  ;;  %5599 = vmatprep.subr.bf16.mxu1 %v8186_v30  ;;  %v6750_v7 = vsel %vm6301_vm0, %v6563_v19, 0.0  ;;  %v8328_v16 = vcombine.high %v821_v9, %v845_v10  ;;  %v200_v28 = vld [vmem:[#allocation6 + $0x3b8] sm:$0xff]  ;;  %v271_v35 = vld [vmem:[#allocation6 + $0x5f0] sm:$0xff] }
 0x2e9   :  { %v6749_v61 = vadd.f32 %v6748_v57, %v6747_v1  ;;  %v8330_v47 = vcombine.high %v822_v12, %v846_v32  ;;  %v8327_v0 = vcombine.low %v821_v9, %v845_v10  ;;  %v8329_v13 = vcombine.low %v822_v12, %v846_v32  ;;  %v272_v19 = vld [vmem:[#allocation6 + $0x5f8] sm:$0xff]  ;;  %v367_v59 = vld [vmem:[#allocation6 + $0x8f0] sm:$0xff] }
 0x2ea   :  { %v6752_v11 = vsel %vm6301_vm0, %v6565_v56, 0.0  ;;  %v7612_v58 = vcombine.high %v103_v24, %v127_v18  ;;  %v7614_v50 = vcombine.high %v104_v34, %v128_v51  ;;  %v7611_v49 = vcombine.low %v103_v24, %v127_v18  ;;  %v296_v56 = vld [vmem:[#allocation6 + $0x6b8] sm:$0xff]  ;;  %v415_v9 = vld [vmem:[#allocation6 + $0xa70] sm:$0xff] }
 0x2eb   :  { %5559 = vmatpush1.bf16.msra.mxu0 %v8183_v5  ;;  %v6751_v38 = vadd.f32 %v6750_v7, %v6749_v61  ;;  %5600 = vmatpush1.bf16.msra.mxu1 %v8185_v4  ;;  %v7613_v53 = vcombine.low %v104_v34, %v128_v51  ;;  %v7660_v60 = vcombine.high %v151_v17, %v175_v22  ;;  %v295_v4 = vld [vmem:[#allocation6 + $0x6b0] sm:$0xff]  ;;  %v320_v57 = vld [vmem:[#allocation6 + $0x778] sm:$0xff] }
 0x2ec   :  { %5560 = vmatprep.subr.bf16.mxu0 %v8232_v8  ;;  %5601 = vmatprep.subr.bf16.mxu1 %v8234_v6  ;;  %v7662_v45 = vcombine.high %v152_v14, %v176_v20  ;;  %v7659_v43 = vcombine.low %v151_v17, %v175_v22  ;;  %v7661_v30 = vcombine.low %v152_v14, %v176_v20  ;;  %v319_v8 = vld [vmem:[#allocation6 + $0x770] sm:$0xff]  ;;  %v344_v44 = vld [vmem:[#allocation6 + $0x838] sm:$0xff] }
 0x2ed   :  { %v9215_v26 = vadd.f32 %v6752_v11, %v6751_v38  ;;  %v7708_v55 = vcombine.high %v199_v46, %v223_v39  ;;  %v7710_v62 = vcombine.high %v200_v28, %v224_v23  ;;  %v7707_v36 = vcombine.low %v199_v46, %v223_v39  ;;  %v343_v61 = vld [vmem:[#allocation6 + $0x830] sm:$0xff]  ;;  %v368_v7 = vld [vmem:[#allocation6 + $0x8f8] sm:$0xff] }
 0x2ee   :  { %v7709_v48 = vcombine.low %v200_v28, %v224_v23  ;;  %v7756_v5 = vcombine.high %v247_v31, %v271_v35  ;;  %v7758_v1 = vcombine.high %v248_v2, %v272_v19  ;;  %v7755_v6 = vcombine.low %v247_v31, %v271_v35  ;;  %v392_v10 = vld [vmem:[#allocation6 + $0x9b8] sm:$0xff]  ;;  %v463_v24 = vld [vmem:[#allocation6 + $0xbf0] sm:$0xff] }
 0x2ef   :  { %5561 = vmatpush1.bf16.msra.mxu0 %v8231_v63  ;;  %5602 = vmatpush1.bf16.msra.mxu1 %v8233_v25  ;;  %v7757_v42 = vcombine.low %v248_v2, %v272_v19  ;;  %v7804_v37 = vcombine.high %v295_v4, %v319_v8  ;;  %v7803_v63 = vcombine.low %v295_v4, %v319_v8  ;;  %v416_v11 = vld [vmem:[#allocation6 + $0xa78] sm:$0xff]  ;;  %v487_v39 = vld [vmem:[#allocation6 + $0xcb0] sm:$0xff] }
 0x2f0   :  { %5562 = vmatprep.subr.bf16.mxu0 %v8280_v33  ;;  %5603 = vmatprep.subr.bf16.mxu1 %v8282_v41  ;;  %v7805_v38 = vcombine.low %v296_v56, %v320_v57  ;;  %v7852_v25 = vcombine.high %v343_v61, %v367_v59  ;;  %v7854_v33 = vcombine.high %v344_v44, %v368_v7  ;;  %v391_v41 = vld [vmem:[#allocation6 + $0x9b0] sm:$0xff]  ;;  %v440_v51 = vld [vmem:[#allocation6 + $0xb38] sm:$0xff] }
 0x2f1   :  { %v7851_v12 = vcombine.low %v343_v61, %v367_v59  ;;  %v7853_v32 = vcombine.low %v344_v44, %v368_v7  ;;  %v7899_v17 = vcombine.low %v391_v41, %v415_v9  ;;  %v511_v28 = vld [vmem:[#allocation6 + $0xd70] sm:$0xff]  ;;  %v9235_v61 = vld [vmem:[#allocation6 + $0x1078] sm:$0xff] }
 0x2f2   :  { %v9223_v31 = vld [vmem:[#allocation6 + $0xe30] sm:$0xff]  ;;  %v7996_v19 = vcombine.high %v487_v39, %v511_v28 }
 0x2f3   :  { %5563 = vmatpush1.bf16.msra.mxu0 %v8279_v40  ;;  %5604 = vmatpush1.bf16.msra.mxu1 %v8281_v15  ;;  %v7900_v40 = vcombine.high %v391_v41, %v415_v9  ;;  %v9229_v8 = vld [vmem:[#allocation6 + $0xfb0] sm:$0xff] }
 0x2f4   :  { %5564 = vmatprep.subr.bf16.mxu0 %v8328_v16  ;;  %5605 = vmatprep.subr.bf16.mxu1 %v8330_v47  ;;  %v7902_v16 = vcombine.high %v392_v10, %v416_v11  ;;  %v439_v47 = vld [vmem:[#allocation6 + $0xb30] sm:$0xff] }
 0x2f7   :  { %5565 = vmatpush1.bf16.msra.mxu0 %v8327_v0  ;;  %5606 = vmatpush1.bf16.msra.mxu1 %v8329_v13  ;;  %v464_v0 = vld [vmem:[#allocation6 + $0xbf8] sm:$0xff] }
 0x2f8   :  { %5616 = vmatprep.subr.bf16.mxu0 %v7612_v58  ;;  %5657 = vmatprep.subr.bf16.mxu1 %v7614_v50  ;;  %v7950_v46 = vcombine.high %v440_v51, %v464_v0  ;;  %v7949_v2 = vcombine.low %v440_v51, %v464_v0 }
 0x2fa   :  { %5567 = vmatmul.mubr.bf16.vlgmr.msra.gmra.mrb[40].mxu0 %v8541_v21  ;;  %5608 = vmatmul.mubr.bf16.vlgmr.msra.gmra.mrb[40].mxu1 %v8541_v21 }
 0x2fb   :  { %5617 = vmatpush1.bf16.msra.mxu0 %v7611_v49  ;;  %5658 = vmatpush1.bf16.msra.mxu1 %v7613_v53  ;;  %v7901_v49 = vcombine.low %v392_v10, %v416_v11  ;;  %v7948_v53 = vcombine.high %v439_v47, %v463_v24 }
 0x2fc   :  { %5618 = vmatprep.subr.bf16.mxu0 %v7660_v60  ;;  %5659 = vmatprep.subr.bf16.mxu1 %v7662_v45 }
 0x2fd   :  { %5648 = vmatprep.mubr.bf16.mxu0 %v8535_v3  ;;  %5689 = vmatprep.mubr.bf16.mxu1 %v8535_v3  ;;  %v7806_v3 = vcombine.high %v296_v56, %v320_v57 }
 0x2ff   :  { %5619 = vmatpush1.bf16.msra.mxu0 %v7659_v43  ;;  %5660 = vmatpush1.bf16.msra.mxu1 %v7661_v30  ;;  %v488_v43 = vld [vmem:[#allocation6 + $0xcb8] sm:$0xff] }
 0x300   :  { %5620 = vmatprep.subr.bf16.mxu0 %v7708_v55  ;;  %5661 = vmatprep.subr.bf16.mxu1 %v7710_v62  ;;  %v512_v30 = vld [vmem:[#allocation6 + $0xd78] sm:$0xff]  ;;  %v7947_v62 = vcombine.low %v439_v47, %v463_v24 }
 0x301   :  { %v6008_v55 = vld [vmem:[#allocation8 + $0x38] sm:$0xff]  ;;  %v7998_v4 = vcombine.high %v488_v43, %v512_v30 }
 0x303   :  { %5621 = vmatpush1.bf16.msra.mxu0 %v7707_v36  ;;  %5662 = vmatpush1.bf16.msra.mxu1 %v7709_v48  ;;  %v559_v36 = vld [vmem:[#allocation6 + $0xef0] sm:$0xff]  ;;  %v9225_v48 = vld [vmem:[#allocation6 + $0xe38] sm:$0xff] }
 0x304   :  { %5622 = vmatprep.subr.bf16.mxu0 %v7756_v5  ;;  %5663 = vmatprep.subr.bf16.mxu1 %v7758_v1  ;;  %v9227_v5 = vld [vmem:[#allocation6 + $0xef8] sm:$0xff]  ;;  %v7995_v1 = vcombine.low %v487_v39, %v511_v28  ;;  %v8043_v59 = vcombine.low %v9223_v31, %v559_v36  ;;  %v8044_v44 = vcombine.high %v9223_v31, %v559_v36  ;;  %v703_v36 = vld [vmem:[#allocation6 + $0x1370] sm:$0xff] }
 0x305   :  { %v8045_v7 = vcombine.low %v9225_v48, %v9227_v5 }
 0x307   :  { %5623 = vmatpush1.bf16.msra.mxu0 %v7755_v6  ;;  %5664 = vmatpush1.bf16.msra.mxu1 %v7757_v42  ;;  %v7997_v42 = vcombine.low %v488_v43, %v512_v30 }
 0x308   :  { %5624 = vmatprep.subr.bf16.mxu0 %v7804_v37  ;;  %5665 = vmatprep.subr.bf16.mxu1 %v7806_v3  ;;  %v9231_v37 = vld [vmem:[#allocation6 + $0x1070] sm:$0xff]  ;;  %v9233_v3 = vld [vmem:[#allocation6 + $0xfb8] sm:$0xff] }
 0x309   :  { %v8091_v10 = vcombine.low %v9229_v8, %v9231_v37  ;;  %v8092_v11 = vcombine.high %v9229_v8, %v9231_v37  ;;  %v8093_v43 = vcombine.low %v9233_v3, %v9235_v61  ;;  %v704_v8 = vld [vmem:[#allocation6 + $0x1378] sm:$0xff] }
 0x30b   :  { %5625 = vmatpush1.bf16.msra.mxu0 %v7803_v63  ;;  %5666 = vmatpush1.bf16.msra.mxu1 %v7805_v38  ;;  %v8046_v63 = vcombine.high %v9225_v48, %v9227_v5 }
 0x30c   :  { %5626 = vmatprep.subr.bf16.mxu0 %v7852_v25  ;;  %5667 = vmatprep.subr.bf16.mxu1 %v7854_v33 }
 0x30d   :  { %v5322_v15 = vpop.f32.mrb[28].mxu0  ;;  %v5363_v18 = vpop.f32.mrb[28].mxu1 }
 0x30e   :  { %v5324_v34 = vpop.f32.mrb[29].mxu0  ;;  %v5365_v58 = vpop.f32.mrb[29].mxu1 }
 0x30f   :  { %v5865_v13 = vcombine.low %v5322_v15, %v5324_v34  ;;  %v5326_v50 = vpop.f32.mrb[30].mxu0  ;;  %5627 = vmatpush1.bf16.msra.mxu0 %v7851_v12  ;;  %v5866_v22 = vcombine.low %v5363_v18, %v5365_v58  ;;  %v5367_v14 = vpop.f32.mrb[30].mxu1  ;;  %5668 = vmatpush1.bf16.msra.mxu1 %v7853_v32  ;;  %v8094_v12 = vcombine.high %v9233_v3, %v9235_v61 }
 0x310   :  { %v5327_v20 = vpop.f32.mrb[31].mxu0  ;;  %5628 = vmatprep.subr.bf16.mxu0 %v7900_v40  ;;  %v5368_v45 = vpop.f32.mrb[31].mxu1  ;;  %5669 = vmatprep.subr.bf16.mxu1 %v7902_v16  ;;  %v655_v14 = vld [vmem:[#allocation6 + $0x11f0] sm:$0xff] }
 0x311   :  { %v5873_v60 = vrot.slane %v5865_v13, %v8560_v27  ;;  %v5880_v23 = vrot.slane %v5866_v22, %v8560_v27  ;;  %v631_v22 = vld [vmem:[#allocation6 + $0x1130] sm:$0xff]  ;;  %v632_v45 = vld [vmem:[#allocation6 + $0x1138] sm:$0xff] }
 0x313   :  { %5629 = vmatpush1.bf16.msra.mxu0 %v7899_v17  ;;  %v5881_v35 = vcombine.low %v5873_v60, %v5880_v23  ;;  %5670 = vmatpush1.bf16.msra.mxu1 %v7901_v49 }
 0x314   :  { %5630 = vmatprep.subr.bf16.mxu0 %v7948_v53  ;;  %5671 = vmatprep.subr.bf16.mxu1 %v7950_v46  ;;  %v656_v46 = vld [vmem:[#allocation6 + $0x11f8] sm:$0xff] }
 0x315   :  { %v6020_v56 = vsub.f32 %v5881_v35, %v6008_v55  ;;  %v6032_v57 = vmul.f32 %v6008_v55, %v5881_v35  ;;  %v6406_v6 = vsub.f32 0.0, %v5881_v35 }
 0x317   :  { %5631 = vmatpush1.bf16.msra.mxu0 %v7947_v62  ;;  %v6168_v38 = vcombine.high %v6032_v57, %v6032_v57  ;;  %v6175_v25 = vrot.slane %v6032_v57, %v8560_v27  ;;  %v6425_v33 = vmul.f32 1.442695, %v6406_v6  ;;  %v6803_v41 = vmul.f32 %v6020_v56, %v6020_v56  ;;  %5672 = vmatpush1.bf16.msra.mxu1 %v7949_v2 }
 0x318   :  { %5632 = vmatprep.subr.bf16.mxu0 %v7996_v19  ;;  %v7176_v9 = vand.u32 2147483647, %v6020_v56  ;;  %5673 = vmatprep.subr.bf16.mxu1 %v7998_v4  ;;  %v8140_v62 = vcombine.high %v631_v22, %v655_v14  ;;  %v8142_v2 = vcombine.high %v632_v45, %v656_v46  ;;  %v679_v19 = vld [vmem:[#allocation6 + $0x12b0] sm:$0xff]  ;;  %v680_v4 = vld [vmem:[#allocation6 + $0x12b8] sm:$0xff]  ;;  %v8139_v57 = vcombine.low %v631_v22, %v655_v14 }
 0x319   :  { %v6182_v32 = vrot.slane %v6168_v38, %v8560_v27  ;;  %v6183_v40 = vcombine.high %v6175_v25, %v6175_v25  ;;  %v6357_v15 = vsel %vm6301_vm0, %v6175_v25, 0.0  ;;  %8357 = vpow2.f32 %v6425_v33  ;;  %v727_v38 = vld [vmem:[#allocation6 + $0x1430] sm:$0xff] }
 0x31a   :  { %v6358_v16 = vadd.f32 %v6357_v15, %v9199_v54  ;;  %v6939_v47 = vcombine.high %v6803_v41, %v6803_v41  ;;  %v6946_v24 = vrot.slane %v6803_v41, %v8560_v27  ;;  %v7312_v18 = vcombine.high %v7176_v9, %v7176_v9  ;;  %v751_v25 = vld [vmem:[#allocation6 + $0x14f0] sm:$0xff]  ;;  %v728_v41 = vld [vmem:[#allocation6 + $0x1438] sm:$0xff] }
 0x31b   :  { %5633 = vmatpush1.bf16.msra.mxu0 %v7995_v1  ;;  %v6184_v34 = vcombine.high %v6182_v32, %v6182_v32  ;;  %v6359_v51 = vsel %vm6301_vm0, %v6183_v40, 0.0  ;;  %v6361_v0 = vsel %vm6301_vm0, %v6182_v32, 0.0  ;;  %v7319_v13 = vrot.slane %v7176_v9, %v8560_v27  ;;  %5674 = vmatpush1.bf16.msra.mxu1 %v7997_v42  ;;  %v752_v9 = vld [vmem:[#allocation6 + $0x14f8] sm:$0xff] }
 0x31c   :  { %5634 = vmatprep.subr.bf16.mxu0 %v8044_v44  ;;  %v6360_v58 = vadd.f32 %v6359_v51, %v6358_v16  ;;  %v6953_v50 = vrot.slane %v6939_v47, %v8560_v27  ;;  %v6954_v17 = vcombine.high %v6946_v24, %v6946_v24  ;;  %v7127_v54 = vsel %vm6301_vm0, %v6946_v24, 0.0  ;;  %5675 = vmatprep.subr.bf16.mxu1 %v8046_v63  ;;  %v775_v51 = vld [vmem:[#allocation6 + $0x15b0] sm:$0xff] }
 0x31d   :  { %v7128_v20 = vadd.f32 %v7127_v54, %v9203_v29  ;;  %v7326_v49 = vrot.slane %v7312_v18, %v8560_v27  ;;  %v7327_v53 = vcombine.high %v7319_v13, %v7319_v13  ;;  %v7500_v60 = vsel %vm6301_vm0, %v7319_v13, 0.0 }
 0x31e   :  { %v6362_v39 = vadd.f32 %v6361_v0, %v6360_v58  ;;  %v6955_v28 = vcombine.high %v6953_v50, %v6953_v50  ;;  %v7129_v23 = vsel %vm6301_vm0, %v6954_v17, 0.0  ;;  %v7501_v55 = vadd.f32 %v7500_v60, %v9207_v52  ;;  %v799_v0 = vld [vmem:[#allocation6 + $0x1670] sm:$0xff]  ;;  %v776_v58 = vld [vmem:[#allocation6 + $0x15b8] sm:$0xff] }
 0x31f   :  { %5635 = vmatpush1.bf16.msra.mxu0 %v8043_v59  ;;  %v7130_v30 = vadd.f32 %v7129_v23, %v7128_v20  ;;  %v7502_v29 = vsel %vm6301_vm0, %v7327_v53, 0.0  ;;  %5676 = vmatpush1.bf16.msra.mxu1 %v8045_v7  ;;  %v7131_v31 = vsel %vm6301_vm0, %v6953_v50, 0.0  ;;  %v7328_v35 = vcombine.high %v7326_v49, %v7326_v49  ;;  %v800_v50 = vld [vmem:[#allocation6 + $0x1678] sm:$0xff]  ;;  %v847_v53 = vld [vmem:[#allocation6 + $0x17f0] sm:$0xff] }
 0x320   :  { %5636 = vmatprep.subr.bf16.mxu0 %v8092_v11  ;;  %5677 = vmatprep.subr.bf16.mxu1 %v8094_v12  ;;  %v6363_v48 = vsel %vm6301_vm0, %v6184_v34, 0.0  ;;  %v7503_v1 = vadd.f32 %v7502_v29, %v7501_v55  ;;  %v7504_v52 = vsel %vm6301_vm0, %v7326_v49, 0.0  ;;  %v8141_v6 = vcombine.low %v632_v45, %v656_v46  ;;  %v823_v49 = vld [vmem:[#allocation6 + $0x1730] sm:$0xff]  ;;  %v824_v45 = vld [vmem:[#allocation6 + $0x1738] sm:$0xff] }
 0x321   :  { %v7132_v5 = vadd.f32 %v7131_v31, %v7130_v30  ;;  %v9269_v56 = vadd.f32 %v6363_v48, %v6362_v39  ;;  %v7133_v42 = vsel %vm6301_vm0, %v6955_v28, 0.0  ;;  %v8188_v61 = vcombine.high %v679_v19, %v703_v36  ;;  %v848_v46 = vld [vmem:[#allocation6 + $0x17f8] sm:$0xff] }
 0x322   :  { %v7505_v3 = vadd.f32 %v7504_v52, %v7503_v1  ;;  %v8190_v63 = vcombine.high %v680_v4, %v704_v8  ;;  %v7506_v33 = vsel %vm6301_vm0, %v7328_v35, 0.0  ;;  %v8187_v40 = vcombine.low %v679_v19, %v703_v36 }
 0x323   :  { %5637 = vmatpush1.bf16.msra.mxu0 %v8091_v10  ;;  %v8358_v37 = vpop.eup %8357  ;;  %5678 = vmatpush1.bf16.msra.mxu1 %v8093_v43  ;;  %v9273_v59 = vadd.f32 %v7133_v42, %v7132_v5  ;;  %v8189_v16 = vcombine.low %v680_v4, %v704_v8  ;;  %v8236_v47 = vcombine.high %v727_v38, %v751_v25 }
 0x324   :  { %5638 = vmatprep.subr.bf16.mxu0 %v8140_v62  ;;  %v6566_v44 = vcombine.high %v8358_v37, %v8358_v37  ;;  %v6573_v7 = vrot.slane %v8358_v37, %v8560_v27  ;;  %5679 = vmatprep.subr.bf16.mxu1 %v8142_v2  ;;  %v9277_v10 = vadd.f32 %v7506_v33, %v7505_v3 }
 0x325   :  { %v8238_v34 = vcombine.high %v728_v41, %v752_v9  ;;  %v8235_v54 = vcombine.low %v727_v38, %v751_v25  ;;  %v8284_v14 = vcombine.high %v775_v51, %v799_v0  ;;  %v8286_v20 = vcombine.high %v776_v58, %v800_v50 }
 0x326   :  { %v6580_v11 = vrot.slane %v6566_v44, %v8560_v27  ;;  %v6581_v12 = vcombine.high %v6573_v7, %v6573_v7  ;;  %v6754_v32 = vsel %vm6301_vm0, %v6573_v7, 0.0  ;;  %v8283_v28 = vcombine.low %v775_v51, %v799_v0 }
 0x327   :  { %5639 = vmatpush1.bf16.msra.mxu0 %v8139_v57  ;;  %v6755_v15 = vadd.f32 %v6754_v32, %v9215_v26  ;;  %5680 = vmatpush1.bf16.msra.mxu1 %v8141_v6  ;;  %v8237_v26 = vcombine.low %v728_v41, %v752_v9  ;;  %v8285_v23 = vcombine.low %v776_v58, %v800_v50  ;;  %v6009_v57 = vld [vmem:[#allocation8 + $0x40] sm:$0xff] }
 0x328   :  { %5640 = vmatprep.subr.bf16.mxu0 %v8188_v61  ;;  %v6582_v24 = vcombine.high %v6580_v11, %v6580_v11  ;;  %v6756_v18 = vsel %vm6301_vm0, %v6581_v12, 0.0  ;;  %5681 = vmatprep.subr.bf16.mxu1 %v8190_v63  ;;  %v6758_v17 = vsel %vm6301_vm0, %v6580_v11, 0.0  ;;  %v8332_v43 = vcombine.high %v823_v49, %v847_v53 }
 0x329   :  { %v6757_v13 = vadd.f32 %v6756_v18, %v6755_v15  ;;  %v8334_v30 = vcombine.high %v824_v45, %v848_v46  ;;  %v8331_v55 = vcombine.low %v823_v49, %v847_v53  ;;  %v8333_v29 = vcombine.low %v824_v45, %v848_v46 }
 0x32a   :  { %v6760_v60 = vsel %vm6301_vm0, %v6582_v24, 0.0 }
 0x32b   :  { %5641 = vmatpush1.bf16.msra.mxu0 %v8187_v40  ;;  %v6759_v22 = vadd.f32 %v6758_v17, %v6757_v13  ;;  %5682 = vmatpush1.bf16.msra.mxu1 %v8189_v16 }
 0x32c   :  { %5642 = vmatprep.subr.bf16.mxu0 %v8236_v47  ;;  %5683 = vmatprep.subr.bf16.mxu1 %v8238_v34 }
 0x32d   :  { %v9285_v39 = vadd.f32 %v6760_v60, %v6759_v22 }
 0x32f   :  { %5643 = vmatpush1.bf16.msra.mxu0 %v8235_v54  ;;  %5684 = vmatpush1.bf16.msra.mxu1 %v8237_v26 }
 0x330   :  { %5644 = vmatprep.subr.bf16.mxu0 %v8284_v14  ;;  %5685 = vmatprep.subr.bf16.mxu1 %v8286_v20 }
 0x333   :  { %5645 = vmatpush1.bf16.msra.mxu0 %v8283_v28  ;;  %5686 = vmatpush1.bf16.msra.mxu1 %v8285_v23 }
 0x334   :  { %5646 = vmatprep.subr.bf16.mxu0 %v8332_v43  ;;  %5687 = vmatprep.subr.bf16.mxu1 %v8334_v30 }
 0x337   :  { %5647 = vmatpush1.bf16.msra.mxu0 %v8331_v55  ;;  %5688 = vmatpush1.bf16.msra.mxu1 %v8333_v29 }
 0x33a   :  { %5649 = vmatmul.mubr.bf16.vlgmr.msra.gmra.mrb[44].mxu0 %v8541_v21  ;;  %5690 = vmatmul.mubr.bf16.vlgmr.msra.gmra.mrb[44].mxu1 %v8541_v21 }
 0x34d   :  { %v5404_v62 = vpop.f32.mrb[32].mxu0  ;;  %v5445_v31 = vpop.f32.mrb[32].mxu1 }
 0x34e   :  { %v5406_v35 = vpop.f32.mrb[33].mxu0  ;;  %v5447_v19 = vpop.f32.mrb[33].mxu1 }
 0x34f   :  { %v5882_v2 = vcombine.low %v5404_v62, %v5406_v35  ;;  %v5408_v36 = vpop.f32.mrb[34].mxu0  ;;  %v5883_v48 = vcombine.low %v5445_v31, %v5447_v19  ;;  %v5449_v5 = vpop.f32.mrb[34].mxu1 }
 0x350   :  { %v5409_v1 = vpop.f32.mrb[35].mxu0  ;;  %v5450_v8 = vpop.f32.mrb[35].mxu1 }
 0x351   :  { %v5890_v4 = vrot.slane %v5882_v2, %v8560_v27  ;;  %v5897_v52 = vrot.slane %v5883_v48, %v8560_v27 }
 0x353   :  { %v5898_v6 = vcombine.low %v5890_v4, %v5897_v52 }
 0x355   :  { %v6021_v42 = vsub.f32 %v5898_v6, %v6009_v57  ;;  %v6033_v37 = vmul.f32 %v6009_v57, %v5898_v6  ;;  %v6407_v3 = vsub.f32 0.0, %v5898_v6 }
 0x357   :  { %v6185_v21 = vcombine.high %v6033_v37, %v6033_v37  ;;  %v6192_v61 = vrot.slane %v6033_v37, %v8560_v27  ;;  %v6427_v44 = vmul.f32 1.442695, %v6407_v3  ;;  %v6804_v7 = vmul.f32 %v6021_v42, %v6021_v42 }
 0x358   :  { %v7177_v63 = vand.u32 2147483647, %v6021_v42 }
 0x359   :  { %v6199_v38 = vrot.slane %v6185_v21, %v8560_v27  ;;  %v6200_v25 = vcombine.high %v6192_v61, %v6192_v61  ;;  %v6365_v33 = vsel %vm6301_vm0, %v6192_v61, 0.0  ;;  %8359 = vpow2.f32 %v6427_v44 }
 0x35a   :  { %v6366_v41 = vadd.f32 %v6365_v33, %v9269_v56  ;;  %v6956_v9 = vcombine.high %v6804_v7, %v6804_v7  ;;  %v6963_v11 = vrot.slane %v6804_v7, %v8560_v27  ;;  %v7329_v12 = vcombine.high %v7177_v63, %v7177_v63 }
 0x35b   :  { %v6201_v32 = vcombine.high %v6199_v38, %v6199_v38  ;;  %v6367_v40 = vsel %vm6301_vm0, %v6200_v25, 0.0  ;;  %v6369_v15 = vsel %vm6301_vm0, %v6199_v38, 0.0  ;;  %v7336_v16 = vrot.slane %v7177_v63, %v8560_v27  ;;  %v6010_v38 = vld [vmem:[#allocation8 + $0x48] sm:$0xff] }
 0x35c   :  { %v6368_v47 = vadd.f32 %v6367_v40, %v6366_v41  ;;  %v6970_v24 = vrot.slane %v6956_v9, %v8560_v27  ;;  %v6971_v18 = vcombine.high %v6963_v11, %v6963_v11  ;;  %v7135_v34 = vsel %vm6301_vm0, %v6963_v11, 0.0 }
 0x35d   :  { %v7136_v51 = vadd.f32 %v7135_v34, %v9273_v59  ;;  %v7343_v56 = vrot.slane %v7329_v12, %v8560_v27  ;;  %v7344_v0 = vcombine.high %v7336_v16, %v7336_v16  ;;  %v7508_v13 = vsel %vm6301_vm0, %v7336_v16, 0.0 }
 0x35e   :  { %v6370_v58 = vadd.f32 %v6369_v15, %v6368_v47  ;;  %v6972_v50 = vcombine.high %v6970_v24, %v6970_v24  ;;  %v7137_v17 = vsel %vm6301_vm0, %v6971_v18, 0.0  ;;  %v7509_v22 = vadd.f32 %v7508_v13, %v9277_v10 }
 0x35f   :  { %v7138_v54 = vadd.f32 %v7137_v17, %v7136_v51  ;;  %v7510_v26 = vsel %vm6301_vm0, %v7344_v0, 0.0  ;;  %v7139_v14 = vsel %vm6301_vm0, %v6970_v24, 0.0  ;;  %v7345_v20 = vcombine.high %v7343_v56, %v7343_v56 }
 0x360   :  { %v6371_v49 = vsel %vm6301_vm0, %v6201_v32, 0.0  ;;  %v7511_v53 = vadd.f32 %v7510_v26, %v7509_v22  ;;  %v7512_v45 = vsel %vm6301_vm0, %v7343_v56, 0.0  ;;  %v7141_v46 = vsel %vm6301_vm0, %v6972_v50, 0.0 }
 0x361   :  { %v7140_v59 = vadd.f32 %v7139_v14, %v7138_v54  ;;  %v6372_v60 = vadd.f32 %v6371_v49, %v6370_v58  ;;  %v7514_v55 = vsel %vm6301_vm0, %v7345_v20, 0.0 }
 0x362   :  { %v7513_v23 = vadd.f32 %v7512_v45, %v7511_v53 }
 0x363   :  { %v8360_v28 = vpop.eup %8359  ;;  %v7142_v43 = vadd.f32 %v7141_v46, %v7140_v59 }
 0x364   :  { %v6583_v30 = vcombine.high %v8360_v28, %v8360_v28  ;;  %v6590_v10 = vrot.slane %v8360_v28, %v8560_v27  ;;  %v7515_v29 = vadd.f32 %v7514_v55, %v7513_v23 }
 0x366   :  { %v6597_v62 = vrot.slane %v6583_v30, %v8560_v27  ;;  %v6598_v31 = vcombine.high %v6590_v10, %v6590_v10  ;;  %v6762_v35 = vsel %vm6301_vm0, %v6590_v10, 0.0 }
 0x367   :  { %v6763_v2 = vadd.f32 %v6762_v35, %v9285_v39 }
 0x368   :  { %v6599_v19 = vcombine.high %v6597_v62, %v6597_v62  ;;  %v6764_v36 = vsel %vm6301_vm0, %v6598_v31, 0.0  ;;  %v6766_v5 = vsel %vm6301_vm0, %v6597_v62, 0.0 }
 0x369   :  { %v6765_v48 = vadd.f32 %v6764_v36, %v6763_v2 }
 0x36a   :  { %v6768_v4 = vsel %vm6301_vm0, %v6599_v19, 0.0 }
 0x36b   :  { %v6767_v1 = vadd.f32 %v6766_v5, %v6765_v48 }
 0x36d   :  { %v9319_v8 = vadd.f32 %v6768_v4, %v6767_v1 }
 0x38d   :  { %v5486_v52 = vpop.f32.mrb[36].mxu0  ;;  %v5527_v57 = vpop.f32.mrb[36].mxu1 }
 0x38e   :  { %v5488_v6 = vpop.f32.mrb[37].mxu0  ;;  %v5529_v37 = vpop.f32.mrb[37].mxu1 }
 0x38f   :  { %v5899_v42 = vcombine.low %v5486_v52, %v5488_v6  ;;  %v5490_v3 = vpop.f32.mrb[38].mxu0  ;;  %v5900_v21 = vcombine.low %v5527_v57, %v5529_v37  ;;  %v5531_v61 = vpop.f32.mrb[38].mxu1 }
 0x390   :  { %v5491_v39 = vpop.f32.mrb[39].mxu0  ;;  %v5532_v7 = vpop.f32.mrb[39].mxu1 }
 0x391   :  { %v5907_v44 = vrot.slane %v5899_v42, %v8560_v27  ;;  %v5914_v63 = vrot.slane %v5900_v21, %v8560_v27 }
 0x393   :  { %v5915_v25 = vcombine.low %v5907_v44, %v5914_v63 }
 0x395   :  { %v6022_v33 = vsub.f32 %v5915_v25, %v6010_v38  ;;  %v6034_v41 = vmul.f32 %v6010_v38, %v5915_v25  ;;  %v6408_v9 = vsub.f32 0.0, %v5915_v25 }
 0x397   :  { %v6202_v11 = vcombine.high %v6034_v41, %v6034_v41  ;;  %v6209_v12 = vrot.slane %v6034_v41, %v8560_v27  ;;  %v6429_v32 = vmul.f32 1.442695, %v6408_v9  ;;  %v6805_v40 = vmul.f32 %v6022_v33, %v6022_v33 }
 0x398   :  { %v7178_v15 = vand.u32 2147483647, %v6022_v33 }
 0x399   :  { %v6216_v16 = vrot.slane %v6202_v11, %v8560_v27  ;;  %v6217_v47 = vcombine.high %v6209_v12, %v6209_v12  ;;  %v6373_v24 = vsel %vm6301_vm0, %v6209_v12, 0.0  ;;  %8361 = vpow2.f32 %v6429_v32 }
 0x39a   :  { %v6374_v18 = vadd.f32 %v6373_v24, %v6372_v60  ;;  %v6973_v34 = vcombine.high %v6805_v40, %v6805_v40  ;;  %v6980_v51 = vrot.slane %v6805_v40, %v8560_v27  ;;  %v7346_v56 = vcombine.high %v7178_v15, %v7178_v15 }
 0x39b   :  { %v6218_v0 = vcombine.high %v6216_v16, %v6216_v16  ;;  %v6375_v13 = vsel %vm6301_vm0, %v6217_v47, 0.0  ;;  %v6377_v58 = vsel %vm6301_vm0, %v6216_v16, 0.0  ;;  %v7353_v50 = vrot.slane %v7178_v15, %v8560_v27  ;;  %v6011_v16 = vld [vmem:[#allocation8 + $0x50] sm:$0xff] }
 0x39c   :  { %v6376_v17 = vadd.f32 %v6375_v13, %v6374_v18  ;;  %v6987_v54 = vrot.slane %v6973_v34, %v8560_v27  ;;  %v6988_v22 = vcombine.high %v6980_v51, %v6980_v51  ;;  %v7143_v26 = vsel %vm6301_vm0, %v6980_v51, 0.0 }
 0x39d   :  { %v7144_v14 = vadd.f32 %v7143_v26, %v7142_v43  ;;  %v7360_v20 = vrot.slane %v7346_v56, %v8560_v27  ;;  %v7361_v49 = vcombine.high %v7353_v50, %v7353_v50  ;;  %v7516_v59 = vsel %vm6301_vm0, %v7353_v50, 0.0 }
 0x39e   :  { %v6378_v53 = vadd.f32 %v6377_v58, %v6376_v17  ;;  %v6989_v60 = vcombine.high %v6987_v54, %v6987_v54  ;;  %v7145_v45 = vsel %vm6301_vm0, %v6988_v22, 0.0  ;;  %v7517_v28 = vadd.f32 %v7516_v59, %v7515_v29 }
 0x39f   :  { %v7146_v46 = vadd.f32 %v7145_v45, %v7144_v14  ;;  %v7518_v23 = vsel %vm6301_vm0, %v7361_v49, 0.0  ;;  %v7147_v30 = vsel %vm6301_vm0, %v6987_v54, 0.0  ;;  %v7362_v10 = vcombine.high %v7360_v20, %v7360_v20 }
 0x3a0   :  { %v6379_v55 = vsel %vm6301_vm0, %v6218_v0, 0.0  ;;  %v7519_v62 = vadd.f32 %v7518_v23, %v7517_v28  ;;  %v7520_v35 = vsel %vm6301_vm0, %v7360_v20, 0.0  ;;  %v7149_v2 = vsel %vm6301_vm0, %v6989_v60, 0.0 }
 0x3a1   :  { %v6380_v43 = vadd.f32 %v6379_v55, %v6378_v53  ;;  %v7148_v31 = vadd.f32 %v7147_v30, %v7146_v46  ;;  %v7522_v1 = vsel %vm6301_vm0, %v7362_v10, 0.0 }
 0x3a2   :  { %v7521_v36 = vadd.f32 %v7520_v35, %v7519_v62 }
 0x3a3   :  { %v8362_v19 = vpop.eup %8361  ;;  %v7150_v48 = vadd.f32 %v7149_v2, %v7148_v31 }
 0x3a4   :  { %v6600_v5 = vcombine.high %v8362_v19, %v8362_v19  ;;  %v6607_v29 = vrot.slane %v8362_v19, %v8560_v27  ;;  %v7523_v4 = vadd.f32 %v7522_v1, %v7521_v36 }
 0x3a6   :  { %v6615_v52 = vcombine.high %v6607_v29, %v6607_v29  ;;  %v6770_v57 = vsel %vm6301_vm0, %v6607_v29, 0.0  ;;  %v6614_v6 = vrot.slane %v6600_v5, %v8560_v27 }
 0x3a7   :  { %v6771_v42 = vadd.f32 %v6770_v57, %v9319_v8 }
 0x3a8   :  { %v6616_v37 = vcombine.high %v6614_v6, %v6614_v6  ;;  %v6772_v3 = vsel %vm6301_vm0, %v6615_v52, 0.0  ;;  %v6774_v61 = vsel %vm6301_vm0, %v6614_v6, 0.0 }
 0x3a9   :  { %v6773_v21 = vadd.f32 %v6772_v3, %v6771_v42 }
 0x3aa   :  { %v6776_v44 = vsel %vm6301_vm0, %v6616_v37, 0.0 }
 0x3ab   :  { %v6775_v39 = vadd.f32 %v6774_v61, %v6773_v21 }
 0x3ad   :  { %v9348_v7 = vadd.f32 %v6776_v44, %v6775_v39 }
 0x3cd   :  { %v5568_v63 = vpop.f32.mrb[40].mxu0  ;;  %v5609_v38 = vpop.f32.mrb[40].mxu1 }
 0x3ce   :  { %v5570_v25 = vpop.f32.mrb[41].mxu0  ;;  %v5611_v41 = vpop.f32.mrb[41].mxu1 }
 0x3cf   :  { %v5916_v33 = vcombine.low %v5568_v63, %v5570_v25  ;;  %v5572_v9 = vpop.f32.mrb[42].mxu0  ;;  %v5917_v11 = vcombine.low %v5609_v38, %v5611_v41  ;;  %v5613_v12 = vpop.f32.mrb[42].mxu1 }
 0x3d0   :  { %v5573_v8 = vpop.f32.mrb[43].mxu0  ;;  %v5614_v40 = vpop.f32.mrb[43].mxu1 }
 0x3d1   :  { %v5924_v32 = vrot.slane %v5916_v33, %v8560_v27  ;;  %v5931_v15 = vrot.slane %v5917_v11, %v8560_v27 }
 0x3d3   :  { %v5932_v47 = vcombine.low %v5924_v32, %v5931_v15 }
 0x3d5   :  { %v6023_v24 = vsub.f32 %v5932_v47, %v6011_v16  ;;  %v6035_v18 = vmul.f32 %v6011_v16, %v5932_v47  ;;  %v6409_v34 = vsub.f32 0.0, %v5932_v47 }
 0x3d7   :  { %v6219_v51 = vcombine.high %v6035_v18, %v6035_v18  ;;  %v6226_v56 = vrot.slane %v6035_v18, %v8560_v27  ;;  %v6431_v0 = vmul.f32 1.442695, %v6409_v34  ;;  %v6806_v13 = vmul.f32 %v6023_v24, %v6023_v24 }
 0x3d8   :  { %v7179_v58 = vand.u32 2147483647, %v6023_v24 }
 0x3d9   :  { %v6234_v50 = vcombine.high %v6226_v56, %v6226_v56  ;;  %v6381_v17 = vsel %vm6301_vm0, %v6226_v56, 0.0  ;;  %8363 = vpow2.f32 %v6431_v0  ;;  %v6990_v54 = vcombine.high %v6806_v13, %v6806_v13 }
 0x3da   :  { %v6997_v22 = vrot.slane %v6806_v13, %v8560_v27  ;;  %v7363_v26 = vcombine.high %v7179_v58, %v7179_v58  ;;  %v7370_v14 = vrot.slane %v7179_v58, %v8560_v27  ;;  %v6233_v20 = vrot.slane %v6219_v51, %v8560_v27 }
 0x3db   :  { %v6382_v49 = vadd.f32 %v6381_v17, %v6380_v43  ;;  %v6383_v59 = vsel %vm6301_vm0, %v6234_v50, 0.0  ;;  %v7004_v53 = vrot.slane %v6990_v54, %v8560_v27  ;;  %v6012_v50 = vld [vmem:[#allocation8 + $0x58] sm:$0xff] }
 0x3dc   :  { %v7378_v60 = vcombine.high %v7370_v14, %v7370_v14  ;;  %v7524_v45 = vsel %vm6301_vm0, %v7370_v14, 0.0  ;;  %v6235_v46 = vcombine.high %v6233_v20, %v6233_v20  ;;  %v7005_v23 = vcombine.high %v6997_v22, %v6997_v22 }
 0x3dd   :  { %v6384_v28 = vadd.f32 %v6383_v59, %v6382_v49  ;;  %v7151_v30 = vsel %vm6301_vm0, %v6997_v22, 0.0  ;;  %v6385_v10 = vsel %vm6301_vm0, %v6233_v20, 0.0  ;;  %v7377_v62 = vrot.slane %v7363_v26, %v8560_v27 }
 0x3de   :  { %v7152_v55 = vadd.f32 %v7151_v30, %v7150_v48  ;;  %v7006_v35 = vcombine.high %v7004_v53, %v7004_v53  ;;  %v7153_v43 = vsel %vm6301_vm0, %v7005_v23, 0.0  ;;  %v7525_v2 = vadd.f32 %v7524_v45, %v7523_v4 }
 0x3df   :  { %v6386_v31 = vadd.f32 %v6385_v10, %v6384_v28  ;;  %v6387_v19 = vsel %vm6301_vm0, %v6235_v46, 0.0  ;;  %v7379_v5 = vcombine.high %v7377_v62, %v7377_v62  ;;  %v7526_v29 = vsel %vm6301_vm0, %v7378_v60, 0.0 }
 0x3e0   :  { %v7154_v36 = vadd.f32 %v7153_v43, %v7152_v55  ;;  %v7155_v52 = vsel %vm6301_vm0, %v7004_v53, 0.0  ;;  %v7527_v57 = vadd.f32 %v7526_v29, %v7525_v2  ;;  %v7528_v48 = vsel %vm6301_vm0, %v7377_v62, 0.0 }
 0x3e1   :  { %v6388_v1 = vadd.f32 %v6387_v19, %v6386_v31  ;;  %v7157_v37 = vsel %vm6301_vm0, %v7006_v35, 0.0  ;;  %v7530_v4 = vsel %vm6301_vm0, %v7379_v5, 0.0 }
 0x3e2   :  { %v7156_v6 = vadd.f32 %v7155_v52, %v7154_v36  ;;  %v7529_v3 = vadd.f32 %v7528_v48, %v7527_v57 }
 0x3e3   :  { %v8364_v42 = vpop.eup %8363 }
 0x3e4   :  { %v7158_v21 = vadd.f32 %v7157_v37, %v7156_v6  ;;  %v6617_v61 = vcombine.high %v8364_v42, %v8364_v42  ;;  %v6624_v39 = vrot.slane %v8364_v42, %v8560_v27  ;;  %v7531_v44 = vadd.f32 %v7530_v4, %v7529_v3 }
 0x3e6   :  { %v6631_v63 = vrot.slane %v6617_v61, %v8560_v27  ;;  %v6632_v38 = vcombine.high %v6624_v39, %v6624_v39  ;;  %v6778_v25 = vsel %vm6301_vm0, %v6624_v39, 0.0 }
 0x3e7   :  { %v6779_v33 = vadd.f32 %v6778_v25, %v9348_v7 }
 0x3e8   :  { %v6633_v41 = vcombine.high %v6631_v63, %v6631_v63  ;;  %v6780_v9 = vsel %vm6301_vm0, %v6632_v38, 0.0  ;;  %v6782_v12 = vsel %vm6301_vm0, %v6631_v63, 0.0 }
 0x3e9   :  { %v6781_v11 = vadd.f32 %v6780_v9, %v6779_v33 }
 0x3ea   :  { %v6784_v32 = vsel %vm6301_vm0, %v6633_v41, 0.0 }
 0x3eb   :  { %v6783_v8 = vadd.f32 %v6782_v12, %v6781_v11 }
 0x3ed   :  { %v9377_v40 = vadd.f32 %v6784_v32, %v6783_v8 }
 0x40d   :  { %v5650_v15 = vpop.f32.mrb[44].mxu0  ;;  %v5691_v16 = vpop.f32.mrb[44].mxu1 }
 0x40e   :  { %v5652_v47 = vpop.f32.mrb[45].mxu0  ;;  %v5693_v18 = vpop.f32.mrb[45].mxu1 }
 0x40f   :  { %v5933_v24 = vcombine.low %v5650_v15, %v5652_v47  ;;  %v5654_v34 = vpop.f32.mrb[46].mxu0  ;;  %v5934_v51 = vcombine.low %v5691_v16, %v5693_v18  ;;  %v5695_v56 = vpop.f32.mrb[46].mxu1 }
 0x410   :  { %v5655_v7 = vpop.f32.mrb[47].mxu0  ;;  %v5696_v13 = vpop.f32.mrb[47].mxu1 }
 0x411   :  { %v5941_v0 = vrot.slane %v5933_v24, %v8560_v27  ;;  %v5948_v58 = vrot.slane %v5934_v51, %v8560_v27 }
 0x413   :  { %v5949_v17 = vcombine.low %v5941_v0, %v5948_v58 }
 0x415   :  { %v6024_v54 = vsub.f32 %v5949_v17, %v6012_v50  ;;  %v6410_v22 = vsub.f32 0.0, %v5949_v17  ;;  %v6036_v26 = vmul.f32 %v6012_v50, %v5949_v17 }
 0x417   :  { %v6433_v14 = vmul.f32 1.442695, %v6410_v22  ;;  %v6236_v20 = vcombine.high %v6036_v26, %v6036_v26  ;;  %v6243_v49 = vrot.slane %v6036_v26, %v8560_v27  ;;  %v6807_v59 = vmul.f32 %v6024_v54, %v6024_v54 }
 0x418   :  { %v7180_v53 = vand.u32 2147483647, %v6024_v54 }
 0x419   :  { %8365 = vpow2.f32 %v6433_v14  ;;  %v6250_v60 = vrot.slane %v6236_v20, %v8560_v27  ;;  %v6251_v45 = vcombine.high %v6243_v49, %v6243_v49  ;;  %v6389_v46 = vsel %vm6301_vm0, %v6243_v49, 0.0 }
 0x41a   :  { %v6390_v28 = vadd.f32 %v6389_v46, %v6388_v1  ;;  %v7007_v23 = vcombine.high %v6807_v59, %v6807_v59  ;;  %v7014_v30 = vrot.slane %v6807_v59, %v8560_v27  ;;  %v7380_v10 = vcombine.high %v7180_v53, %v7180_v53 }
 0x41b   :  { %v6252_v55 = vcombine.high %v6250_v60, %v6250_v60  ;;  %v6391_v62 = vsel %vm6301_vm0, %v6251_v45, 0.0  ;;  %v7387_v31 = vrot.slane %v7180_v53, %v8560_v27  ;;  %v6393_v36 = vsel %vm6301_vm0, %v6250_v60, 0.0 }
 0x41c   :  { %v6392_v35 = vadd.f32 %v6391_v62, %v6390_v28  ;;  %v7021_v43 = vrot.slane %v7007_v23, %v8560_v27  ;;  %v7022_v2 = vcombine.high %v7014_v30, %v7014_v30  ;;  %v7159_v19 = vsel %vm6301_vm0, %v7014_v30, 0.0 }
 0x41d   :  { %v7160_v5 = vadd.f32 %v7159_v19, %v7158_v21  ;;  %v7394_v29 = vrot.slane %v7380_v10, %v8560_v27  ;;  %v7395_v1 = vcombine.high %v7387_v31, %v7387_v31  ;;  %v6395_v48 = vsel %vm6301_vm0, %v6252_v55, 0.0 }
 0x41e   :  { %v6394_v52 = vadd.f32 %v6393_v36, %v6392_v35  ;;  %v7023_v57 = vcombine.high %v7021_v43, %v7021_v43  ;;  %v7161_v6 = vsel %vm6301_vm0, %v7022_v2, 0.0  ;;  %v7532_v37 = vsel %vm6301_vm0, %v7387_v31, 0.0 }
 0x41f   :  { %v7162_v42 = vadd.f32 %v7161_v6, %v7160_v5  ;;  %v7534_v3 = vsel %vm6301_vm0, %v7395_v1, 0.0  ;;  %v7163_v61 = vsel %vm6301_vm0, %v7021_v43, 0.0  ;;  %v7533_v39 = vadd.f32 %v7532_v37, %v7531_v44 }
 0x420   :  { %v6396_v4 = vadd.f32 %v6395_v48, %v6394_v52  ;;  %v7396_v21 = vcombine.high %v7394_v29, %v7394_v29  ;;  %v7165_v38 = vsel %vm6301_vm0, %v7023_v57, 0.0  ;;  %v7536_v9 = vsel %vm6301_vm0, %v7394_v29, 0.0 }
 0x421   :  { %v7164_v63 = vadd.f32 %v7163_v61, %v7162_v42  ;;  %v7535_v25 = vadd.f32 %v7534_v3, %v7533_v39 }
 0x422   :  { %6397 = vadd.xlane.f32.xlu0 %v6396_v4  ;;  %v7538_v32 = vsel %vm6301_vm0, %v7396_v21, 0.0 }
 0x423   :  { %v8366_v33 = vpop.eup %8365  ;;  %v7166_v41 = vadd.f32 %v7165_v38, %v7164_v63  ;;  %v7537_v11 = vadd.f32 %v7536_v9, %v7535_v25 }
 0x424   :  { %v6634_v12 = vcombine.high %v8366_v33, %v8366_v33  ;;  %v6641_v8 = vrot.slane %v8366_v33, %v8560_v27 }
 0x425   :  { %7167 = vadd.xlane.f32.xlu1 %v7166_v41  ;;  %v7539_v15 = vadd.f32 %v7538_v32, %v7537_v11 }
 0x426   :  { %v6648_v44 = vrot.slane %v6634_v12, %v8560_v27  ;;  %v6649_v16 = vcombine.high %v6641_v8, %v6641_v8  ;;  %v6786_v47 = vsel %vm6301_vm0, %v6641_v8, 0.0 }
 0x427   :  { %v6787_v24 = vadd.f32 %v6786_v47, %v9377_v40 }
 0x428   :  { %v6650_v18 = vcombine.high %v6648_v44, %v6648_v44  ;;  %v6788_v34 = vsel %vm6301_vm0, %v6649_v16, 0.0  ;;  %v6790_v56 = vsel %vm6301_vm0, %v6648_v44, 0.0 }
 0x429   :  { %7540 = vadd.xlane.f32.xlu1 %v7539_v15  ;;  %v6789_v51 = vadd.f32 %v6788_v34, %v6787_v24 }
 0x42a   :  { %v6792_v0 = vsel %vm6301_vm0, %v6650_v18, 0.0 }
 0x42b   :  { %v6791_v7 = vadd.f32 %v6790_v56, %v6789_v51 }
 0x42d   :  { %v6793_v13 = vadd.f32 %v6792_v0, %v6791_v7 }
 0x42f   :  { %6794 = vadd.xlane.f32.xlu0 %v6793_v13 }
 0x4af   :  { %v6398_v58 = vpop.xlane.xlu0 %6397 }
 0x4b2   :  { %v7168_v50 = vpop.xlane.xlu1 %7167 }
 0x4b6   :  { %v7541_v17 = vpop.xlane.xlu1 %7540 }
 0x4bc   :  { %v6795_v27 = vpop.xlane.xlu0 %6794 }
 0x4bd   :  { %v7543_v40 = vsel %vm7542_vm1, %v6398_v58, %v6795_v27 }
 0x4be   :  { %v7545_v54 = vsel %vm7544_vm2, %v7543_v40, %v7168_v50 }
 0x4bf   :  { %v7547_v22 = vsel %vm7546_vm3, %v7545_v54, %v7541_v17 }
 0x4c0   :  { %7549 = vst.msk [vmem:[#allocation9] sm:$0x3] %vm7548_vm4, %v7547_v22 }
 0x4c1   :  { %8444 = shalt.err (!%p8441_p0)
}
 0x4c2   :  { %s8445_s25 = scalar_lea.hbm %s9421_s3, 32 }
 0x4c3   :  { %p8446_p1 = scmp.ne.s32.totalorder %s9421_s3, %s8445_s25  ;;  %p8449_p2 = scmp.lt.u32.totalorder %s8445_s25, %s9421_s3 }
 0x4c5   :  { %p8451_p3 = pnand %p8449_p2, %p8446_p1 }
 0x4c7   :  { %8454 = shalt.err (!%p8451_p3)
}
 0x4c8   :  { %7559 = dma.vmem_to_hbm [thread:$0]  %s7557_s21, 32, %s9421_s3, [#allocation5]  }
 0x4c9   :  { %8459 = dma.done.wait [#allocation5], 32  }
 0x4ca   :  { %8460 = vsyncadd [#allocation5], 4294967264 }
 0x4cb   :  { %7563 = vsyncpa [#allocation4], 1 }
 0x4cc   :  { %7564 = vsyncpa [#allocation7], 1 }
 0x4cd   :  { %7565 = vsyncpa [#allocation5], 1 }

</bundles_post_ra>
